<compile_context>
chip_gen: v7x
topology: tpu7x:2x2x1
jax: 0.10.0
libtpu: 0.0.40
codegen_flags: <defaults>
</compile_context>

<pallas_src>
import functools

import jax
import jax.numpy as jnp
from jax.experimental import pallas as pl
from jax.experimental.pallas import tpu as pltpu

EPS = 1e-5  # torch.nn.InstanceNorm3d default


def _make_masks(D, H, W, PL):
    """Rows 0..5: the six padded-volume faces (w-lo/hi, h-lo/hi, d-lo/hi).
    Row 6: interior (valid D*H*W output positions). Row 7: padding (unused)."""
    Dp, Hp, Wp = D + 2, H + 2, W + 2
    P = Dp * Hp * Wp
    p = jnp.arange(PL)
    dp = p // (Hp * Wp)
    hp = (p // Wp) % Hp
    wp = p % Wp
    valid = p < P
    rows = jnp.stack([
        valid & (wp == 0),
        valid & (wp == Wp - 1),
        valid & (hp == 0),
        valid & (hp == Hp - 1),
        valid & (dp == 0),
        valid & (dp == Dp - 1),
        valid & (dp >= 1) & (dp <= D) & (hp >= 1) & (hp <= H)
              & (wp >= 1) & (wp <= W),
        jnp.zeros((PL,), dtype=bool),
    ])
    return rows.astype(jnp.float32)  # (8, PL)


def _resnet_block_kernel(xp_ref, w1_ref, w2_ref, m_ref, o_ref, *, C, D, H, W, PL):
    """One batch element. xp_ref: (1, C, PL) zero-padded, interior-placed,
    lane-flattened volume. w{1,2}_ref: (9, C, 3*C) tap-grouped weights.
    m_ref: (8, PL) face/interior masks. o_ref: (1, C, PL)."""
    Dp, Hp, Wp = D + 2, H + 2, W + 2
    n_interior = jnp.float32(D * H * W)

    def mask(i):
        # Built on demand so at most one mask value is live at a time.
        return m_ref[i:i + 1, :] > 0.5            # (1, PL) bool

    def shift_left(v, off):
        # out[:, p] = v[:, (p + off) mod PL]; wrapped values only ever land on
        # border / lane-pad columns, which are masked out of the stats and
        # sliced off by the wrapper.
        s = (-off) % PL
        return v if s == 0 else pltpu.roll(v, shift=s, axis=1)

    def reflect_fill(v):
        # In-VMEM ReflectionPad3d(1) on the interior-placed flat layout:
        # fill W faces, then H, then D -- each fill copies from columns that
        # are already valid, so the composition reproduces torch reflection.
        v = jnp.where(mask(0), shift_left(v, 2), v)
        v = jnp.where(mask(1), shift_left(v, -2), v)
        v = jnp.where(mask(2), shift_left(v, 2 * Wp), v)
        v = jnp.where(mask(3), shift_left(v, -2 * Wp), v)
        v = jnp.where(mask(4), shift_left(v, 2 * Hp * Wp), v)
        v = jnp.where(mask(5), shift_left(v, -2 * Hp * Wp), v)
        return v

    def conv3_instnorm(v, w_ref):
        # 3x3x3 conv as 9 grouped MXU matmuls (K = 3*C per (kd, kh) tap pair);
        # each group's im2col rows are built in-register by lane rolls, so no
        # strided slab copies are materialized and live ranges stay bounded.
        acc = jnp.zeros((C, PL), jnp.float32)
        for kd in range(3):
            for kh in range(3):
                base = (kd - 1) * Hp * Wp + (kh - 1) * Wp
                group = jnp.concatenate(
                    [shift_left(v, base + (kw - 1)) for kw in range(3)], axis=0)
                acc = acc + jnp.dot(w_ref[kd * 3 + kh], group,
                                    preferred_element_type=jnp.float32)
        # InstanceNorm3d (affine=False, biased variance) over the D*H*W valid
        # columns only; reductions run along lanes (XLU). No conv bias: it
        # cancels exactly under the mean subtraction.
        m_int = mask(6)
        mean = jnp.sum(jnp.where(m_int, acc, 0.0), axis=1,
                       keepdims=True) / n_interior
        diff = jnp.where(m_int, acc - mean, 0.0)
        var = jnp.sum(diff * diff, axis=1, keepdims=True) / n_interior
        return (acc - mean) * jax.lax.rsqrt(var + EPS)

    x = xp_ref[0].astype(jnp.float32)                       # (C, PL)
    h = jnp.maximum(conv3_instnorm(reflect_fill(x), w1_ref), 0.0)
    y = conv3_instnorm(reflect_fill(h), w2_ref)
    # Residual add: interior columns of xp hold x, border columns hold 0 and
    # are discarded by the wrapper slice. Lane-dense (PL-wide) store.
    o_ref[0] = (xp_ref[0].astype(jnp.float32) + y).astype(o_ref.dtype)


def resnet_block_3d(x, params):
    """ResnetBlock3D forward. x: (N, C, D, H, W); params['w1'/'w2']: (3,3,3,C,C)
    in (kd,kh,kw,Cin,Cout) order. Biases are accepted but unused (they cancel
    under InstanceNorm with affine=False)."""
    N, C, D, H, W = x.shape
    Dp, Hp, Wp = D + 2, H + 2, W + 2
    P = Dp * Hp * Wp
    PL = ((P + 127) // 128) * 128

    # Interior-placed, zero-padded, lane-flattened layout (N, C, PL): a single
    # cheap XLA zero-pad; the reflected borders are built inside the kernel.
    xp = jnp.pad(x, ((0, 0), (0, 0), (1, 1), (1, 1), (1, 1)))
    xp = jnp.pad(xp.reshape(N, C, P), ((0, 0), (0, 0), (0, PL - P)))

    def group_weights(w):
        # (kd,kh,kw,ci,co) -> (co, kd,kh,kw,ci) -> (co, 27*C) -> (9, co, 3*C)
        w2d = jnp.transpose(w, (4, 0, 1, 2, 3)).reshape(C, 27 * C)
        return jnp.transpose(w2d.reshape(C, 9, 3 * C), (1, 0, 2))

    w1g = group_weights(params["w1"])
    w2g = group_weights(params["w2"])
    masks = _make_masks(D, H, W, PL)

    kernel = functools.partial(_resnet_block_kernel, C=C, D=D, H=H, W=W, PL=PL)
    out_flat = pl.pallas_call(
        kernel,
        out_shape=jax.ShapeDtypeStruct((N, C, PL), x.dtype),
        grid=(N,),
        in_specs=[
            pl.BlockSpec((1, C, PL), lambda n: (n, 0, 0)),
            pl.BlockSpec((9, C, 3 * C), lambda n: (0, 0, 0)),
            pl.BlockSpec((9, C, 3 * C), lambda n: (0, 0, 0)),
            pl.BlockSpec((8, PL), lambda n: (0, 0)),
        ],
        out_specs=pl.BlockSpec((1, C, PL), lambda n: (n, 0, 0)),
        compiler_params=pltpu.CompilerParams(
            dimension_semantics=("parallel",)),
    )(xp, w1g, w2g, masks)

    # Strip the lane padding and the halo (cheap XLA slice), back to NCDHW.
    out = out_flat[:, :, :P].reshape(N, C, Dp, Hp, Wp)[:, :, 1:-1, 1:-1, 1:-1]
    return out


def _reference_forward(x_ncdhw, params):
    """Pure-JAX reference (lax conv + InstanceNorm, WITH the conv bias)."""
    x = jnp.transpose(x_ncdhw, (0, 2, 3, 4, 1))
    pad = ((0, 0), (1, 1), (1, 1), (1, 1), (0, 0))

    def stage(xp, w, b, relu):
        y = jax.lax.conv_general_dilated(
            xp, w, window_strides=(1, 1, 1), padding="VALID",
            dimension_numbers=("NDHWC", "DHWIO", "NDHWC"))
        y = y + b
        mean = jnp.mean(y, axis=(1, 2, 3), keepdims=True)
        var = jnp.mean(jnp.square(y - mean), axis=(1, 2, 3), keepdims=True)
        y = (y - mean) * jax.lax.rsqrt(var + EPS)
        return jnp.maximum(y, 0.0) if relu else y

    h = stage(jnp.pad(x, pad, mode="reflect"), params["w1"], params["b1"], True)
    out = x + stage(jnp.pad(h, pad, mode="reflect"), params["w2"], params["b2"],
                    False)
    return jnp.transpose(out, (0, 4, 1, 2, 3))


if __name__ == "__main__":
    # Small shapes: batch=2, dim(channels)=8, spatial D=H=W=8 (NCDHW input).
    N, C, D, H, W = 2, 8, 8, 8, 8

    key = jax.random.PRNGKey(0)
    kx, kw1, kb1, kw2, kb2 = jax.random.split(key, 5)

    x = jax.random.normal(kx, (N, C, D, H, W), dtype=jnp.float32)

    scale = 1.0 / jnp.sqrt(jnp.float32(27 * C))
    params = {
        "w1": jax.random.normal(kw1, (3, 3, 3, C, C), jnp.float32) * scale,
        "b1": jax.random.normal(kb1, (C,), jnp.float32) * scale,
        "w2": jax.random.normal(kw2, (3, 3, 3, C, C), jnp.float32) * scale,
        "b2": jax.random.normal(kb2, (C,), jnp.float32) * scale,
    }

    out = jax.block_until_ready(jax.jit(resnet_block_3d)(x, params))
    ref = jax.block_until_ready(jax.jit(_reference_forward)(x, params))

    assert out.shape == (N, C, D, H, W), out.shape
    max_err = float(jnp.max(jnp.abs(out - ref)))
    assert jnp.allclose(out, ref, atol=2e-4, rtol=2e-4), max_err

    print("KERNEL_OK")
</pallas_src>

<mosaic_0001>
module attributes {stable_mosaic.version = 11 : i64} {
  func.func @_resnet_block_kernel(%arg0: i32, %arg1: memref<1x8x1024xf32, #tpu.memory_space<vmem>>, %arg2: memref<9x8x24xf32, #tpu.memory_space<vmem>>, %arg3: memref<9x8x24xf32, #tpu.memory_space<vmem>>, %arg4: memref<8x1024xf32, #tpu.memory_space<vmem>>, %arg5: memref<1x8x1024xf32, #tpu.memory_space<vmem>>) attributes {dimension_semantics = [#tpu.dimension_semantics<parallel>], iteration_bounds = array<i64: 2>, scalar_prefetch = 0 : i64, scratch_operands = 0 : i64, tpu.core_type = #tpu.core_type<tc>, window_params = [{transform_indices = @transform_0, window_bounds = array<i64: 1, 8, 1024>}, {pipeline_mode = #tpu.pipeline_mode<synchronous>, transform_indices = @transform_1, window_bounds = array<i64: 9, 8, 24>}, {pipeline_mode = #tpu.pipeline_mode<synchronous>, transform_indices = @transform_2, window_bounds = array<i64: 9, 8, 24>}, {pipeline_mode = #tpu.pipeline_mode<synchronous>, transform_indices = @transform_3, window_bounds = array<i64: 8, 1024>}, {transform_indices = @transform_4, window_bounds = array<i64: 1, 8, 1024>}]} {
    %c0 = arith.constant 0 : index
    %c0_0 = arith.constant 0 : index
    %c0_1 = arith.constant 0 : index
    %0 = vector.load %arg1[%c0, %c0_0, %c0_1] : memref<1x8x1024xf32, #tpu.memory_space<vmem>>, vector<1x8x1024xf32>
    %1 = vector.shape_cast %0 : vector<1x8x1024xf32> to vector<8x1024xf32>
    %c0_2 = arith.constant 0 : index
    %c0_3 = arith.constant 0 : index
    %2 = vector.load %arg4[%c0_2, %c0_3] : memref<8x1024xf32, #tpu.memory_space<vmem>>, vector<1x1024xf32>
    %cst = arith.constant 5.000000e-01 : f32
    %3 = vector.broadcast %cst : f32 to vector<1x1024xf32>
    %4 = arith.cmpf ogt, %2, %3 : vector<1x1024xf32>
    %c1022_i32 = arith.constant 1022 : i32
    %5 = tpu.dynamic_rotate %1 by %c1022_i32 dim 1 : vector<8x1024xf32>, i32 -> vector<8x1024xf32>
    %6 = vector.shape_cast %4 : vector<1x1024xi1> to vector<1x1024xi1>
    %7 = vector.broadcast %6 : vector<1x1024xi1> to vector<8x1024xi1>
    %8 = arith.select %7, %5, %1 : vector<8x1024xi1>, vector<8x1024xf32>
    %c1 = arith.constant 1 : index
    %c0_4 = arith.constant 0 : index
    %9 = vector.load %arg4[%c1, %c0_4] : memref<8x1024xf32, #tpu.memory_space<vmem>>, vector<1x1024xf32>
    %cst_5 = arith.constant 5.000000e-01 : f32
    %10 = vector.broadcast %cst_5 : f32 to vector<1x1024xf32>
    %11 = arith.cmpf ogt, %9, %10 : vector<1x1024xf32>
    %c2_i32 = arith.constant 2 : i32
    %12 = tpu.dynamic_rotate %8 by %c2_i32 dim 1 : vector<8x1024xf32>, i32 -> vector<8x1024xf32>
    %13 = vector.shape_cast %11 : vector<1x1024xi1> to vector<1x1024xi1>
    %14 = vector.broadcast %13 : vector<1x1024xi1> to vector<8x1024xi1>
    %15 = arith.select %14, %12, %8 : vector<8x1024xi1>, vector<8x1024xf32>
    %c2 = arith.constant 2 : index
    %c0_6 = arith.constant 0 : index
    %16 = vector.load %arg4[%c2, %c0_6] : memref<8x1024xf32, #tpu.memory_space<vmem>>, vector<1x1024xf32>
    %cst_7 = arith.constant 5.000000e-01 : f32
    %17 = vector.broadcast %cst_7 : f32 to vector<1x1024xf32>
    %18 = arith.cmpf ogt, %16, %17 : vector<1x1024xf32>
    %c1004_i32 = arith.constant 1004 : i32
    %19 = tpu.dynamic_rotate %15 by %c1004_i32 dim 1 : vector<8x1024xf32>, i32 -> vector<8x1024xf32>
    %20 = vector.shape_cast %18 : vector<1x1024xi1> to vector<1x1024xi1>
    %21 = vector.broadcast %20 : vector<1x1024xi1> to vector<8x1024xi1>
    %22 = arith.select %21, %19, %15 : vector<8x1024xi1>, vector<8x1024xf32>
    %c3 = arith.constant 3 : index
    %c0_8 = arith.constant 0 : index
    %23 = vector.load %arg4[%c3, %c0_8] : memref<8x1024xf32, #tpu.memory_space<vmem>>, vector<1x1024xf32>
    %cst_9 = arith.constant 5.000000e-01 : f32
    %24 = vector.broadcast %cst_9 : f32 to vector<1x1024xf32>
    %25 = arith.cmpf ogt, %23, %24 : vector<1x1024xf32>
    %c20_i32 = arith.constant 20 : i32
    %26 = tpu.dynamic_rotate %22 by %c20_i32 dim 1 : vector<8x1024xf32>, i32 -> vector<8x1024xf32>
    %27 = vector.shape_cast %25 : vector<1x1024xi1> to vector<1x1024xi1>
    %28 = vector.broadcast %27 : vector<1x1024xi1> to vector<8x1024xi1>
    %29 = arith.select %28, %26, %22 : vector<8x1024xi1>, vector<8x1024xf32>
    %c4 = arith.constant 4 : index
    %c0_10 = arith.constant 0 : index
    %30 = vector.load %arg4[%c4, %c0_10] : memref<8x1024xf32, #tpu.memory_space<vmem>>, vector<1x1024xf32>
    %cst_11 = arith.constant 5.000000e-01 : f32
    %31 = vector.broadcast %cst_11 : f32 to vector<1x1024xf32>
    %32 = arith.cmpf ogt, %30, %31 : vector<1x1024xf32>
    %c824_i32 = arith.constant 824 : i32
    %33 = tpu.dynamic_rotate %29 by %c824_i32 dim 1 : vector<8x1024xf32>, i32 -> vector<8x1024xf32>
    %34 = vector.shape_cast %32 : vector<1x1024xi1> to vector<1x1024xi1>
    %35 = vector.broadcast %34 : vector<1x1024xi1> to vector<8x1024xi1>
    %36 = arith.select %35, %33, %29 : vector<8x1024xi1>, vector<8x1024xf32>
    %c5 = arith.constant 5 : index
    %c0_12 = arith.constant 0 : index
    %37 = vector.load %arg4[%c5, %c0_12] : memref<8x1024xf32, #tpu.memory_space<vmem>>, vector<1x1024xf32>
    %cst_13 = arith.constant 5.000000e-01 : f32
    %38 = vector.broadcast %cst_13 : f32 to vector<1x1024xf32>
    %39 = arith.cmpf ogt, %37, %38 : vector<1x1024xf32>
    %c200_i32 = arith.constant 200 : i32
    %40 = tpu.dynamic_rotate %36 by %c200_i32 dim 1 : vector<8x1024xf32>, i32 -> vector<8x1024xf32>
    %41 = vector.shape_cast %39 : vector<1x1024xi1> to vector<1x1024xi1>
    %42 = vector.broadcast %41 : vector<1x1024xi1> to vector<8x1024xi1>
    %43 = arith.select %42, %40, %36 : vector<8x1024xi1>, vector<8x1024xf32>
    %cst_14 = arith.constant 0.000000e+00 : f32
    %44 = vector.broadcast %cst_14 : f32 to vector<8x1024xf32>
    %c111_i32 = arith.constant 111 : i32
    %45 = tpu.dynamic_rotate %43 by %c111_i32 dim 1 : vector<8x1024xf32>, i32 -> vector<8x1024xf32>
    %c110_i32 = arith.constant 110 : i32
    %46 = tpu.dynamic_rotate %43 by %c110_i32 dim 1 : vector<8x1024xf32>, i32 -> vector<8x1024xf32>
    %c109_i32 = arith.constant 109 : i32
    %47 = tpu.dynamic_rotate %43 by %c109_i32 dim 1 : vector<8x1024xf32>, i32 -> vector<8x1024xf32>
    %48 = tpu.concatenate %45, %46, %47 in 0 : vector<8x1024xf32>, vector<8x1024xf32>, vector<8x1024xf32> -> vector<24x1024xf32>
    %c0_15 = arith.constant 0 : index
    %c0_16 = arith.constant 0 : index
    %c0_17 = arith.constant 0 : index
    %49 = vector.load %arg2[%c0_15, %c0_16, %c0_17] : memref<9x8x24xf32, #tpu.memory_space<vmem>>, vector<1x8x24xf32>
    %50 = vector.shape_cast %49 : vector<1x8x24xf32> to vector<8x24xf32>
    %cst_18 = arith.constant dense<0.000000e+00> : vector<8x1024xf32>
    %51 = tpu.matmul %50, %48, %cst_18 {dimension_numbers = #tpu.dot_dimension_numbers<[1], [0], [0], [1], [0, 0, 1, 1], [], []>} : vector<8x24xf32>, vector<24x1024xf32>, vector<8x1024xf32> -> vector<8x1024xf32>
    %52 = arith.addf %44, %51 : vector<8x1024xf32>
    %c101_i32 = arith.constant 101 : i32
    %53 = tpu.dynamic_rotate %43 by %c101_i32 dim 1 : vector<8x1024xf32>, i32 -> vector<8x1024xf32>
    %c100_i32 = arith.constant 100 : i32
    %54 = tpu.dynamic_rotate %43 by %c100_i32 dim 1 : vector<8x1024xf32>, i32 -> vector<8x1024xf32>
    %c99_i32 = arith.constant 99 : i32
    %55 = tpu.dynamic_rotate %43 by %c99_i32 dim 1 : vector<8x1024xf32>, i32 -> vector<8x1024xf32>
    %56 = tpu.concatenate %53, %54, %55 in 0 : vector<8x1024xf32>, vector<8x1024xf32>, vector<8x1024xf32> -> vector<24x1024xf32>
    %c1_19 = arith.constant 1 : index
    %c0_20 = arith.constant 0 : index
    %c0_21 = arith.constant 0 : index
    %57 = vector.load %arg2[%c1_19, %c0_20, %c0_21] : memref<9x8x24xf32, #tpu.memory_space<vmem>>, vector<1x8x24xf32>
    %58 = vector.shape_cast %57 : vector<1x8x24xf32> to vector<8x24xf32>
    %cst_22 = arith.constant dense<0.000000e+00> : vector<8x1024xf32>
    %59 = tpu.matmul %58, %56, %cst_22 {dimension_numbers = #tpu.dot_dimension_numbers<[1], [0], [0], [1], [0, 0, 1, 1], [], []>} : vector<8x24xf32>, vector<24x1024xf32>, vector<8x1024xf32> -> vector<8x1024xf32>
    %60 = arith.addf %52, %59 : vector<8x1024xf32>
    %c91_i32 = arith.constant 91 : i32
    %61 = tpu.dynamic_rotate %43 by %c91_i32 dim 1 : vector<8x1024xf32>, i32 -> vector<8x1024xf32>
    %c90_i32 = arith.constant 90 : i32
    %62 = tpu.dynamic_rotate %43 by %c90_i32 dim 1 : vector<8x1024xf32>, i32 -> vector<8x1024xf32>
    %c89_i32 = arith.constant 89 : i32
    %63 = tpu.dynamic_rotate %43 by %c89_i32 dim 1 : vector<8x1024xf32>, i32 -> vector<8x1024xf32>
    %64 = tpu.concatenate %61, %62, %63 in 0 : vector<8x1024xf32>, vector<8x1024xf32>, vector<8x1024xf32> -> vector<24x1024xf32>
    %c2_23 = arith.constant 2 : index
    %c0_24 = arith.constant 0 : index
    %c0_25 = arith.constant 0 : index
    %65 = vector.load %arg2[%c2_23, %c0_24, %c0_25] : memref<9x8x24xf32, #tpu.memory_space<vmem>>, vector<1x8x24xf32>
    %66 = vector.shape_cast %65 : vector<1x8x24xf32> to vector<8x24xf32>
    %cst_26 = arith.constant dense<0.000000e+00> : vector<8x1024xf32>
    %67 = tpu.matmul %66, %64, %cst_26 {dimension_numbers = #tpu.dot_dimension_numbers<[1], [0], [0], [1], [0, 0, 1, 1], [], []>} : vector<8x24xf32>, vector<24x1024xf32>, vector<8x1024xf32> -> vector<8x1024xf32>
    %68 = arith.addf %60, %67 : vector<8x1024xf32>
    %c11_i32 = arith.constant 11 : i32
    %69 = tpu.dynamic_rotate %43 by %c11_i32 dim 1 : vector<8x1024xf32>, i32 -> vector<8x1024xf32>
    %c10_i32 = arith.constant 10 : i32
    %70 = tpu.dynamic_rotate %43 by %c10_i32 dim 1 : vector<8x1024xf32>, i32 -> vector<8x1024xf32>
    %c9_i32 = arith.constant 9 : i32
    %71 = tpu.dynamic_rotate %43 by %c9_i32 dim 1 : vector<8x1024xf32>, i32 -> vector<8x1024xf32>
    %72 = tpu.concatenate %69, %70, %71 in 0 : vector<8x1024xf32>, vector<8x1024xf32>, vector<8x1024xf32> -> vector<24x1024xf32>
    %c3_27 = arith.constant 3 : index
    %c0_28 = arith.constant 0 : index
    %c0_29 = arith.constant 0 : index
    %73 = vector.load %arg2[%c3_27, %c0_28, %c0_29] : memref<9x8x24xf32, #tpu.memory_space<vmem>>, vector<1x8x24xf32>
    %74 = vector.shape_cast %73 : vector<1x8x24xf32> to vector<8x24xf32>
    %cst_30 = arith.constant dense<0.000000e+00> : vector<8x1024xf32>
    %75 = tpu.matmul %74, %72, %cst_30 {dimension_numbers = #tpu.dot_dimension_numbers<[1], [0], [0], [1], [0, 0, 1, 1], [], []>} : vector<8x24xf32>, vector<24x1024xf32>, vector<8x1024xf32> -> vector<8x1024xf32>
    %76 = arith.addf %68, %75 : vector<8x1024xf32>
    %c1_i32 = arith.constant 1 : i32
    %77 = tpu.dynamic_rotate %43 by %c1_i32 dim 1 : vector<8x1024xf32>, i32 -> vector<8x1024xf32>
    %c1023_i32 = arith.constant 1023 : i32
    %78 = tpu.dynamic_rotate %43 by %c1023_i32 dim 1 : vector<8x1024xf32>, i32 -> vector<8x1024xf32>
    %79 = tpu.concatenate %77, %43, %78 in 0 : vector<8x1024xf32>, vector<8x1024xf32>, vector<8x1024xf32> -> vector<24x1024xf32>
    %c4_31 = arith.constant 4 : index
    %c0_32 = arith.constant 0 : index
    %c0_33 = arith.constant 0 : index
    %80 = vector.load %arg2[%c4_31, %c0_32, %c0_33] : memref<9x8x24xf32, #tpu.memory_space<vmem>>, vector<1x8x24xf32>
    %81 = vector.shape_cast %80 : vector<1x8x24xf32> to vector<8x24xf32>
    %cst_34 = arith.constant dense<0.000000e+00> : vector<8x1024xf32>
    %82 = tpu.matmul %81, %79, %cst_34 {dimension_numbers = #tpu.dot_dimension_numbers<[1], [0], [0], [1], [0, 0, 1, 1], [], []>} : vector<8x24xf32>, vector<24x1024xf32>, vector<8x1024xf32> -> vector<8x1024xf32>
    %83 = arith.addf %76, %82 : vector<8x1024xf32>
    %c1015_i32 = arith.constant 1015 : i32
    %84 = tpu.dynamic_rotate %43 by %c1015_i32 dim 1 : vector<8x1024xf32>, i32 -> vector<8x1024xf32>
    %c1014_i32 = arith.constant 1014 : i32
    %85 = tpu.dynamic_rotate %43 by %c1014_i32 dim 1 : vector<8x1024xf32>, i32 -> vector<8x1024xf32>
    %c1013_i32 = arith.constant 1013 : i32
    %86 = tpu.dynamic_rotate %43 by %c1013_i32 dim 1 : vector<8x1024xf32>, i32 -> vector<8x1024xf32>
    %87 = tpu.concatenate %84, %85, %86 in 0 : vector<8x1024xf32>, vector<8x1024xf32>, vector<8x1024xf32> -> vector<24x1024xf32>
    %c5_35 = arith.constant 5 : index
    %c0_36 = arith.constant 0 : index
    %c0_37 = arith.constant 0 : index
    %88 = vector.load %arg2[%c5_35, %c0_36, %c0_37] : memref<9x8x24xf32, #tpu.memory_space<vmem>>, vector<1x8x24xf32>
    %89 = vector.shape_cast %88 : vector<1x8x24xf32> to vector<8x24xf32>
    %cst_38 = arith.constant dense<0.000000e+00> : vector<8x1024xf32>
    %90 = tpu.matmul %89, %87, %cst_38 {dimension_numbers = #tpu.dot_dimension_numbers<[1], [0], [0], [1], [0, 0, 1, 1], [], []>} : vector<8x24xf32>, vector<24x1024xf32>, vector<8x1024xf32> -> vector<8x1024xf32>
    %91 = arith.addf %83, %90 : vector<8x1024xf32>
    %c935_i32 = arith.constant 935 : i32
    %92 = tpu.dynamic_rotate %43 by %c935_i32 dim 1 : vector<8x1024xf32>, i32 -> vector<8x1024xf32>
    %c934_i32 = arith.constant 934 : i32
    %93 = tpu.dynamic_rotate %43 by %c934_i32 dim 1 : vector<8x1024xf32>, i32 -> vector<8x1024xf32>
    %c933_i32 = arith.constant 933 : i32
    %94 = tpu.dynamic_rotate %43 by %c933_i32 dim 1 : vector<8x1024xf32>, i32 -> vector<8x1024xf32>
    %95 = tpu.concatenate %92, %93, %94 in 0 : vector<8x1024xf32>, vector<8x1024xf32>, vector<8x1024xf32> -> vector<24x1024xf32>
    %c6 = arith.constant 6 : index
    %c0_39 = arith.constant 0 : index
    %c0_40 = arith.constant 0 : index
    %96 = vector.load %arg2[%c6, %c0_39, %c0_40] : memref<9x8x24xf32, #tpu.memory_space<vmem>>, vector<1x8x24xf32>
    %97 = vector.shape_cast %96 : vector<1x8x24xf32> to vector<8x24xf32>
    %cst_41 = arith.constant dense<0.000000e+00> : vector<8x1024xf32>
    %98 = tpu.matmul %97, %95, %cst_41 {dimension_numbers = #tpu.dot_dimension_numbers<[1], [0], [0], [1], [0, 0, 1, 1], [], []>} : vector<8x24xf32>, vector<24x1024xf32>, vector<8x1024xf32> -> vector<8x1024xf32>
    %99 = arith.addf %91, %98 : vector<8x1024xf32>
    %c925_i32 = arith.constant 925 : i32
    %100 = tpu.dynamic_rotate %43 by %c925_i32 dim 1 : vector<8x1024xf32>, i32 -> vector<8x1024xf32>
    %c924_i32 = arith.constant 924 : i32
    %101 = tpu.dynamic_rotate %43 by %c924_i32 dim 1 : vector<8x1024xf32>, i32 -> vector<8x1024xf32>
    %c923_i32 = arith.constant 923 : i32
    %102 = tpu.dynamic_rotate %43 by %c923_i32 dim 1 : vector<8x1024xf32>, i32 -> vector<8x1024xf32>
    %103 = tpu.concatenate %100, %101, %102 in 0 : vector<8x1024xf32>, vector<8x1024xf32>, vector<8x1024xf32> -> vector<24x1024xf32>
    %c7 = arith.constant 7 : index
    %c0_42 = arith.constant 0 : index
    %c0_43 = arith.constant 0 : index
    %104 = vector.load %arg2[%c7, %c0_42, %c0_43] : memref<9x8x24xf32, #tpu.memory_space<vmem>>, vector<1x8x24xf32>
    %105 = vector.shape_cast %104 : vector<1x8x24xf32> to vector<8x24xf32>
    %cst_44 = arith.constant dense<0.000000e+00> : vector<8x1024xf32>
    %106 = tpu.matmul %105, %103, %cst_44 {dimension_numbers = #tpu.dot_dimension_numbers<[1], [0], [0], [1], [0, 0, 1, 1], [], []>} : vector<8x24xf32>, vector<24x1024xf32>, vector<8x1024xf32> -> vector<8x1024xf32>
    %107 = arith.addf %99, %106 : vector<8x1024xf32>
    %c915_i32 = arith.constant 915 : i32
    %108 = tpu.dynamic_rotate %43 by %c915_i32 dim 1 : vector<8x1024xf32>, i32 -> vector<8x1024xf32>
    %c914_i32 = arith.constant 914 : i32
    %109 = tpu.dynamic_rotate %43 by %c914_i32 dim 1 : vector<8x1024xf32>, i32 -> vector<8x1024xf32>
    %c913_i32 = arith.constant 913 : i32
    %110 = tpu.dynamic_rotate %43 by %c913_i32 dim 1 : vector<8x1024xf32>, i32 -> vector<8x1024xf32>
    %111 = tpu.concatenate %108, %109, %110 in 0 : vector<8x1024xf32>, vector<8x1024xf32>, vector<8x1024xf32> -> vector<24x1024xf32>
    %c8 = arith.constant 8 : index
    %c0_45 = arith.constant 0 : index
    %c0_46 = arith.constant 0 : index
    %112 = vector.load %arg2[%c8, %c0_45, %c0_46] : memref<9x8x24xf32, #tpu.memory_space<vmem>>, vector<1x8x24xf32>
    %113 = vector.shape_cast %112 : vector<1x8x24xf32> to vector<8x24xf32>
    %cst_47 = arith.constant dense<0.000000e+00> : vector<8x1024xf32>
    %114 = tpu.matmul %113, %111, %cst_47 {dimension_numbers = #tpu.dot_dimension_numbers<[1], [0], [0], [1], [0, 0, 1, 1], [], []>} : vector<8x24xf32>, vector<24x1024xf32>, vector<8x1024xf32> -> vector<8x1024xf32>
    %115 = arith.addf %107, %114 : vector<8x1024xf32>
    %c6_48 = arith.constant 6 : index
    %c0_49 = arith.constant 0 : index
    %116 = vector.load %arg4[%c6_48, %c0_49] : memref<8x1024xf32, #tpu.memory_space<vmem>>, vector<1x1024xf32>
    %cst_50 = arith.constant 5.000000e-01 : f32
    %117 = vector.broadcast %cst_50 : f32 to vector<1x1024xf32>
    %118 = arith.cmpf ogt, %116, %117 : vector<1x1024xf32>
    %cst_51 = arith.constant 0.000000e+00 : f32
    %119 = vector.shape_cast %118 : vector<1x1024xi1> to vector<1x1024xi1>
    %120 = vector.broadcast %119 : vector<1x1024xi1> to vector<8x1024xi1>
    %121 = vector.broadcast %cst_51 : f32 to vector<8x1024xf32>
    %122 = arith.select %120, %115, %121 : vector<8x1024xi1>, vector<8x1024xf32>
    %cst_52 = arith.constant dense<0.000000e+00> : vector<8xf32>
    %123 = vector.multi_reduction <add>, %122, %cst_52 [1] : vector<8x1024xf32> to vector<8xf32>
    %124 = vector.shape_cast %123 : vector<8xf32> to vector<8x1xf32>
    %cst_53 = arith.constant 5.120000e+02 : f32
    %125 = vector.broadcast %cst_53 : f32 to vector<8x1xf32>
    %126 = arith.divf %124, %125 : vector<8x1xf32>
    %127 = vector.broadcast %126 : vector<8x1xf32> to vector<8x1024xf32>
    %128 = arith.subf %115, %127 : vector<8x1024xf32>
    %cst_54 = arith.constant 0.000000e+00 : f32
    %129 = vector.shape_cast %118 : vector<1x1024xi1> to vector<1x1024xi1>
    %130 = vector.broadcast %129 : vector<1x1024xi1> to vector<8x1024xi1>
    %131 = vector.broadcast %cst_54 : f32 to vector<8x1024xf32>
    %132 = arith.select %130, %128, %131 : vector<8x1024xi1>, vector<8x1024xf32>
    %133 = arith.mulf %132, %132 : vector<8x1024xf32>
    %cst_55 = arith.constant dense<0.000000e+00> : vector<8xf32>
    %134 = vector.multi_reduction <add>, %133, %cst_55 [1] : vector<8x1024xf32> to vector<8xf32>
    %135 = vector.shape_cast %134 : vector<8xf32> to vector<8x1xf32>
    %cst_56 = arith.constant 5.120000e+02 : f32
    %136 = vector.broadcast %cst_56 : f32 to vector<8x1xf32>
    %137 = arith.divf %135, %136 : vector<8x1xf32>
    %138 = vector.broadcast %126 : vector<8x1xf32> to vector<8x1024xf32>
    %139 = arith.subf %115, %138 : vector<8x1024xf32>
    %cst_57 = arith.constant 9.99999974E-6 : f32
    %140 = vector.broadcast %cst_57 : f32 to vector<8x1xf32>
    %141 = arith.addf %137, %140 : vector<8x1xf32>
    %142 = math.rsqrt %141 : vector<8x1xf32>
    %143 = vector.broadcast %142 : vector<8x1xf32> to vector<8x1024xf32>
    %144 = arith.mulf %139, %143 : vector<8x1024xf32>
    %cst_58 = arith.constant 0.000000e+00 : f32
    %145 = vector.broadcast %cst_58 : f32 to vector<8x1024xf32>
    %146 = arith.maximumf %144, %145 : vector<8x1024xf32>
    %c0_59 = arith.constant 0 : index
    %c0_60 = arith.constant 0 : index
    %147 = vector.load %arg4[%c0_59, %c0_60] : memref<8x1024xf32, #tpu.memory_space<vmem>>, vector<1x1024xf32>
    %cst_61 = arith.constant 5.000000e-01 : f32
    %148 = vector.broadcast %cst_61 : f32 to vector<1x1024xf32>
    %149 = arith.cmpf ogt, %147, %148 : vector<1x1024xf32>
    %c1022_i32_62 = arith.constant 1022 : i32
    %150 = tpu.dynamic_rotate %146 by %c1022_i32_62 dim 1 : vector<8x1024xf32>, i32 -> vector<8x1024xf32>
    %151 = vector.shape_cast %149 : vector<1x1024xi1> to vector<1x1024xi1>
    %152 = vector.broadcast %151 : vector<1x1024xi1> to vector<8x1024xi1>
    %153 = arith.select %152, %150, %146 : vector<8x1024xi1>, vector<8x1024xf32>
    %c1_63 = arith.constant 1 : index
    %c0_64 = arith.constant 0 : index
    %154 = vector.load %arg4[%c1_63, %c0_64] : memref<8x1024xf32, #tpu.memory_space<vmem>>, vector<1x1024xf32>
    %cst_65 = arith.constant 5.000000e-01 : f32
    %155 = vector.broadcast %cst_65 : f32 to vector<1x1024xf32>
    %156 = arith.cmpf ogt, %154, %155 : vector<1x1024xf32>
    %c2_i32_66 = arith.constant 2 : i32
    %157 = tpu.dynamic_rotate %153 by %c2_i32_66 dim 1 : vector<8x1024xf32>, i32 -> vector<8x1024xf32>
    %158 = vector.shape_cast %156 : vector<1x1024xi1> to vector<1x1024xi1>
    %159 = vector.broadcast %158 : vector<1x1024xi1> to vector<8x1024xi1>
    %160 = arith.select %159, %157, %153 : vector<8x1024xi1>, vector<8x1024xf32>
    %c2_67 = arith.constant 2 : index
    %c0_68 = arith.constant 0 : index
    %161 = vector.load %arg4[%c2_67, %c0_68] : memref<8x1024xf32, #tpu.memory_space<vmem>>, vector<1x1024xf32>
    %cst_69 = arith.constant 5.000000e-01 : f32
    %162 = vector.broadcast %cst_69 : f32 to vector<1x1024xf32>
    %163 = arith.cmpf ogt, %161, %162 : vector<1x1024xf32>
    %c1004_i32_70 = arith.constant 1004 : i32
    %164 = tpu.dynamic_rotate %160 by %c1004_i32_70 dim 1 : vector<8x1024xf32>, i32 -> vector<8x1024xf32>
    %165 = vector.shape_cast %163 : vector<1x1024xi1> to vector<1x1024xi1>
    %166 = vector.broadcast %165 : vector<1x1024xi1> to vector<8x1024xi1>
    %167 = arith.select %166, %164, %160 : vector<8x1024xi1>, vector<8x1024xf32>
    %c3_71 = arith.constant 3 : index
    %c0_72 = arith.constant 0 : index
    %168 = vector.load %arg4[%c3_71, %c0_72] : memref<8x1024xf32, #tpu.memory_space<vmem>>, vector<1x1024xf32>
    %cst_73 = arith.constant 5.000000e-01 : f32
    %169 = vector.broadcast %cst_73 : f32 to vector<1x1024xf32>
    %170 = arith.cmpf ogt, %168, %169 : vector<1x1024xf32>
    %c20_i32_74 = arith.constant 20 : i32
    %171 = tpu.dynamic_rotate %167 by %c20_i32_74 dim 1 : vector<8x1024xf32>, i32 -> vector<8x1024xf32>
    %172 = vector.shape_cast %170 : vector<1x1024xi1> to vector<1x1024xi1>
    %173 = vector.broadcast %172 : vector<1x1024xi1> to vector<8x1024xi1>
    %174 = arith.select %173, %171, %167 : vector<8x1024xi1>, vector<8x1024xf32>
    %c4_75 = arith.constant 4 : index
    %c0_76 = arith.constant 0 : index
    %175 = vector.load %arg4[%c4_75, %c0_76] : memref<8x1024xf32, #tpu.memory_space<vmem>>, vector<1x1024xf32>
    %cst_77 = arith.constant 5.000000e-01 : f32
    %176 = vector.broadcast %cst_77 : f32 to vector<1x1024xf32>
    %177 = arith.cmpf ogt, %175, %176 : vector<1x1024xf32>
    %c824_i32_78 = arith.constant 824 : i32
    %178 = tpu.dynamic_rotate %174 by %c824_i32_78 dim 1 : vector<8x1024xf32>, i32 -> vector<8x1024xf32>
    %179 = vector.shape_cast %177 : vector<1x1024xi1> to vector<1x1024xi1>
    %180 = vector.broadcast %179 : vector<1x1024xi1> to vector<8x1024xi1>
    %181 = arith.select %180, %178, %174 : vector<8x1024xi1>, vector<8x1024xf32>
    %c5_79 = arith.constant 5 : index
    %c0_80 = arith.constant 0 : index
    %182 = vector.load %arg4[%c5_79, %c0_80] : memref<8x1024xf32, #tpu.memory_space<vmem>>, vector<1x1024xf32>
    %cst_81 = arith.constant 5.000000e-01 : f32
    %183 = vector.broadcast %cst_81 : f32 to vector<1x1024xf32>
    %184 = arith.cmpf ogt, %182, %183 : vector<1x1024xf32>
    %c200_i32_82 = arith.constant 200 : i32
    %185 = tpu.dynamic_rotate %181 by %c200_i32_82 dim 1 : vector<8x1024xf32>, i32 -> vector<8x1024xf32>
    %186 = vector.shape_cast %184 : vector<1x1024xi1> to vector<1x1024xi1>
    %187 = vector.broadcast %186 : vector<1x1024xi1> to vector<8x1024xi1>
    %188 = arith.select %187, %185, %181 : vector<8x1024xi1>, vector<8x1024xf32>
    %cst_83 = arith.constant 0.000000e+00 : f32
    %189 = vector.broadcast %cst_83 : f32 to vector<8x1024xf32>
    %c111_i32_84 = arith.constant 111 : i32
    %190 = tpu.dynamic_rotate %188 by %c111_i32_84 dim 1 : vector<8x1024xf32>, i32 -> vector<8x1024xf32>
    %c110_i32_85 = arith.constant 110 : i32
    %191 = tpu.dynamic_rotate %188 by %c110_i32_85 dim 1 : vector<8x1024xf32>, i32 -> vector<8x1024xf32>
    %c109_i32_86 = arith.constant 109 : i32
    %192 = tpu.dynamic_rotate %188 by %c109_i32_86 dim 1 : vector<8x1024xf32>, i32 -> vector<8x1024xf32>
    %193 = tpu.concatenate %190, %191, %192 in 0 : vector<8x1024xf32>, vector<8x1024xf32>, vector<8x1024xf32> -> vector<24x1024xf32>
    %c0_87 = arith.constant 0 : index
    %c0_88 = arith.constant 0 : index
    %c0_89 = arith.constant 0 : index
    %194 = vector.load %arg3[%c0_87, %c0_88, %c0_89] : memref<9x8x24xf32, #tpu.memory_space<vmem>>, vector<1x8x24xf32>
    %195 = vector.shape_cast %194 : vector<1x8x24xf32> to vector<8x24xf32>
    %cst_90 = arith.constant dense<0.000000e+00> : vector<8x1024xf32>
    %196 = tpu.matmul %195, %193, %cst_90 {dimension_numbers = #tpu.dot_dimension_numbers<[1], [0], [0], [1], [0, 0, 1, 1], [], []>} : vector<8x24xf32>, vector<24x1024xf32>, vector<8x1024xf32> -> vector<8x1024xf32>
    %197 = arith.addf %189, %196 : vector<8x1024xf32>
    %c101_i32_91 = arith.constant 101 : i32
    %198 = tpu.dynamic_rotate %188 by %c101_i32_91 dim 1 : vector<8x1024xf32>, i32 -> vector<8x1024xf32>
    %c100_i32_92 = arith.constant 100 : i32
    %199 = tpu.dynamic_rotate %188 by %c100_i32_92 dim 1 : vector<8x1024xf32>, i32 -> vector<8x1024xf32>
    %c99_i32_93 = arith.constant 99 : i32
    %200 = tpu.dynamic_rotate %188 by %c99_i32_93 dim 1 : vector<8x1024xf32>, i32 -> vector<8x1024xf32>
    %201 = tpu.concatenate %198, %199, %200 in 0 : vector<8x1024xf32>, vector<8x1024xf32>, vector<8x1024xf32> -> vector<24x1024xf32>
    %c1_94 = arith.constant 1 : index
    %c0_95 = arith.constant 0 : index
    %c0_96 = arith.constant 0 : index
    %202 = vector.load %arg3[%c1_94, %c0_95, %c0_96] : memref<9x8x24xf32, #tpu.memory_space<vmem>>, vector<1x8x24xf32>
    %203 = vector.shape_cast %202 : vector<1x8x24xf32> to vector<8x24xf32>
    %cst_97 = arith.constant dense<0.000000e+00> : vector<8x1024xf32>
    %204 = tpu.matmul %203, %201, %cst_97 {dimension_numbers = #tpu.dot_dimension_numbers<[1], [0], [0], [1], [0, 0, 1, 1], [], []>} : vector<8x24xf32>, vector<24x1024xf32>, vector<8x1024xf32> -> vector<8x1024xf32>
    %205 = arith.addf %197, %204 : vector<8x1024xf32>
    %c91_i32_98 = arith.constant 91 : i32
    %206 = tpu.dynamic_rotate %188 by %c91_i32_98 dim 1 : vector<8x1024xf32>, i32 -> vector<8x1024xf32>
    %c90_i32_99 = arith.constant 90 : i32
    %207 = tpu.dynamic_rotate %188 by %c90_i32_99 dim 1 : vector<8x1024xf32>, i32 -> vector<8x1024xf32>
    %c89_i32_100 = arith.constant 89 : i32
    %208 = tpu.dynamic_rotate %188 by %c89_i32_100 dim 1 : vector<8x1024xf32>, i32 -> vector<8x1024xf32>
    %209 = tpu.concatenate %206, %207, %208 in 0 : vector<8x1024xf32>, vector<8x1024xf32>, vector<8x1024xf32> -> vector<24x1024xf32>
    %c2_101 = arith.constant 2 : index
    %c0_102 = arith.constant 0 : index
    %c0_103 = arith.constant 0 : index
    %210 = vector.load %arg3[%c2_101, %c0_102, %c0_103] : memref<9x8x24xf32, #tpu.memory_space<vmem>>, vector<1x8x24xf32>
    %211 = vector.shape_cast %210 : vector<1x8x24xf32> to vector<8x24xf32>
    %cst_104 = arith.constant dense<0.000000e+00> : vector<8x1024xf32>
    %212 = tpu.matmul %211, %209, %cst_104 {dimension_numbers = #tpu.dot_dimension_numbers<[1], [0], [0], [1], [0, 0, 1, 1], [], []>} : vector<8x24xf32>, vector<24x1024xf32>, vector<8x1024xf32> -> vector<8x1024xf32>
    %213 = arith.addf %205, %212 : vector<8x1024xf32>
    %c11_i32_105 = arith.constant 11 : i32
    %214 = tpu.dynamic_rotate %188 by %c11_i32_105 dim 1 : vector<8x1024xf32>, i32 -> vector<8x1024xf32>
    %c10_i32_106 = arith.constant 10 : i32
    %215 = tpu.dynamic_rotate %188 by %c10_i32_106 dim 1 : vector<8x1024xf32>, i32 -> vector<8x1024xf32>
    %c9_i32_107 = arith.constant 9 : i32
    %216 = tpu.dynamic_rotate %188 by %c9_i32_107 dim 1 : vector<8x1024xf32>, i32 -> vector<8x1024xf32>
    %217 = tpu.concatenate %214, %215, %216 in 0 : vector<8x1024xf32>, vector<8x1024xf32>, vector<8x1024xf32> -> vector<24x1024xf32>
    %c3_108 = arith.constant 3 : index
    %c0_109 = arith.constant 0 : index
    %c0_110 = arith.constant 0 : index
    %218 = vector.load %arg3[%c3_108, %c0_109, %c0_110] : memref<9x8x24xf32, #tpu.memory_space<vmem>>, vector<1x8x24xf32>
    %219 = vector.shape_cast %218 : vector<1x8x24xf32> to vector<8x24xf32>
    %cst_111 = arith.constant dense<0.000000e+00> : vector<8x1024xf32>
    %220 = tpu.matmul %219, %217, %cst_111 {dimension_numbers = #tpu.dot_dimension_numbers<[1], [0], [0], [1], [0, 0, 1, 1], [], []>} : vector<8x24xf32>, vector<24x1024xf32>, vector<8x1024xf32> -> vector<8x1024xf32>
    %221 = arith.addf %213, %220 : vector<8x1024xf32>
    %c1_i32_112 = arith.constant 1 : i32
    %222 = tpu.dynamic_rotate %188 by %c1_i32_112 dim 1 : vector<8x1024xf32>, i32 -> vector<8x1024xf32>
    %c1023_i32_113 = arith.constant 1023 : i32
    %223 = tpu.dynamic_rotate %188 by %c1023_i32_113 dim 1 : vector<8x1024xf32>, i32 -> vector<8x1024xf32>
    %224 = tpu.concatenate %222, %188, %223 in 0 : vector<8x1024xf32>, vector<8x1024xf32>, vector<8x1024xf32> -> vector<24x1024xf32>
    %c4_114 = arith.constant 4 : index
    %c0_115 = arith.constant 0 : index
    %c0_116 = arith.constant 0 : index
    %225 = vector.load %arg3[%c4_114, %c0_115, %c0_116] : memref<9x8x24xf32, #tpu.memory_space<vmem>>, vector<1x8x24xf32>
    %226 = vector.shape_cast %225 : vector<1x8x24xf32> to vector<8x24xf32>
    %cst_117 = arith.constant dense<0.000000e+00> : vector<8x1024xf32>
    %227 = tpu.matmul %226, %224, %cst_117 {dimension_numbers = #tpu.dot_dimension_numbers<[1], [0], [0], [1], [0, 0, 1, 1], [], []>} : vector<8x24xf32>, vector<24x1024xf32>, vector<8x1024xf32> -> vector<8x1024xf32>
    %228 = arith.addf %221, %227 : vector<8x1024xf32>
    %c1015_i32_118 = arith.constant 1015 : i32
    %229 = tpu.dynamic_rotate %188 by %c1015_i32_118 dim 1 : vector<8x1024xf32>, i32 -> vector<8x1024xf32>
    %c1014_i32_119 = arith.constant 1014 : i32
    %230 = tpu.dynamic_rotate %188 by %c1014_i32_119 dim 1 : vector<8x1024xf32>, i32 -> vector<8x1024xf32>
    %c1013_i32_120 = arith.constant 1013 : i32
    %231 = tpu.dynamic_rotate %188 by %c1013_i32_120 dim 1 : vector<8x1024xf32>, i32 -> vector<8x1024xf32>
    %232 = tpu.concatenate %229, %230, %231 in 0 : vector<8x1024xf32>, vector<8x1024xf32>, vector<8x1024xf32> -> vector<24x1024xf32>
    %c5_121 = arith.constant 5 : index
    %c0_122 = arith.constant 0 : index
    %c0_123 = arith.constant 0 : index
    %233 = vector.load %arg3[%c5_121, %c0_122, %c0_123] : memref<9x8x24xf32, #tpu.memory_space<vmem>>, vector<1x8x24xf32>
    %234 = vector.shape_cast %233 : vector<1x8x24xf32> to vector<8x24xf32>
    %cst_124 = arith.constant dense<0.000000e+00> : vector<8x1024xf32>
    %235 = tpu.matmul %234, %232, %cst_124 {dimension_numbers = #tpu.dot_dimension_numbers<[1], [0], [0], [1], [0, 0, 1, 1], [], []>} : vector<8x24xf32>, vector<24x1024xf32>, vector<8x1024xf32> -> vector<8x1024xf32>
    %236 = arith.addf %228, %235 : vector<8x1024xf32>
    %c935_i32_125 = arith.constant 935 : i32
    %237 = tpu.dynamic_rotate %188 by %c935_i32_125 dim 1 : vector<8x1024xf32>, i32 -> vector<8x1024xf32>
    %c934_i32_126 = arith.constant 934 : i32
    %238 = tpu.dynamic_rotate %188 by %c934_i32_126 dim 1 : vector<8x1024xf32>, i32 -> vector<8x1024xf32>
    %c933_i32_127 = arith.constant 933 : i32
    %239 = tpu.dynamic_rotate %188 by %c933_i32_127 dim 1 : vector<8x1024xf32>, i32 -> vector<8x1024xf32>
    %240 = tpu.concatenate %237, %238, %239 in 0 : vector<8x1024xf32>, vector<8x1024xf32>, vector<8x1024xf32> -> vector<24x1024xf32>
    %c6_128 = arith.constant 6 : index
    %c0_129 = arith.constant 0 : index
    %c0_130 = arith.constant 0 : index
    %241 = vector.load %arg3[%c6_128, %c0_129, %c0_130] : memref<9x8x24xf32, #tpu.memory_space<vmem>>, vector<1x8x24xf32>
    %242 = vector.shape_cast %241 : vector<1x8x24xf32> to vector<8x24xf32>
    %cst_131 = arith.constant dense<0.000000e+00> : vector<8x1024xf32>
    %243 = tpu.matmul %242, %240, %cst_131 {dimension_numbers = #tpu.dot_dimension_numbers<[1], [0], [0], [1], [0, 0, 1, 1], [], []>} : vector<8x24xf32>, vector<24x1024xf32>, vector<8x1024xf32> -> vector<8x1024xf32>
    %244 = arith.addf %236, %243 : vector<8x1024xf32>
    %c925_i32_132 = arith.constant 925 : i32
    %245 = tpu.dynamic_rotate %188 by %c925_i32_132 dim 1 : vector<8x1024xf32>, i32 -> vector<8x1024xf32>
    %c924_i32_133 = arith.constant 924 : i32
    %246 = tpu.dynamic_rotate %188 by %c924_i32_133 dim 1 : vector<8x1024xf32>, i32 -> vector<8x1024xf32>
    %c923_i32_134 = arith.constant 923 : i32
    %247 = tpu.dynamic_rotate %188 by %c923_i32_134 dim 1 : vector<8x1024xf32>, i32 -> vector<8x1024xf32>
    %248 = tpu.concatenate %245, %246, %247 in 0 : vector<8x1024xf32>, vector<8x1024xf32>, vector<8x1024xf32> -> vector<24x1024xf32>
    %c7_135 = arith.constant 7 : index
    %c0_136 = arith.constant 0 : index
    %c0_137 = arith.constant 0 : index
    %249 = vector.load %arg3[%c7_135, %c0_136, %c0_137] : memref<9x8x24xf32, #tpu.memory_space<vmem>>, vector<1x8x24xf32>
    %250 = vector.shape_cast %249 : vector<1x8x24xf32> to vector<8x24xf32>
    %cst_138 = arith.constant dense<0.000000e+00> : vector<8x1024xf32>
    %251 = tpu.matmul %250, %248, %cst_138 {dimension_numbers = #tpu.dot_dimension_numbers<[1], [0], [0], [1], [0, 0, 1, 1], [], []>} : vector<8x24xf32>, vector<24x1024xf32>, vector<8x1024xf32> -> vector<8x1024xf32>
    %252 = arith.addf %244, %251 : vector<8x1024xf32>
    %c915_i32_139 = arith.constant 915 : i32
    %253 = tpu.dynamic_rotate %188 by %c915_i32_139 dim 1 : vector<8x1024xf32>, i32 -> vector<8x1024xf32>
    %c914_i32_140 = arith.constant 914 : i32
    %254 = tpu.dynamic_rotate %188 by %c914_i32_140 dim 1 : vector<8x1024xf32>, i32 -> vector<8x1024xf32>
    %c913_i32_141 = arith.constant 913 : i32
    %255 = tpu.dynamic_rotate %188 by %c913_i32_141 dim 1 : vector<8x1024xf32>, i32 -> vector<8x1024xf32>
    %256 = tpu.concatenate %253, %254, %255 in 0 : vector<8x1024xf32>, vector<8x1024xf32>, vector<8x1024xf32> -> vector<24x1024xf32>
    %c8_142 = arith.constant 8 : index
    %c0_143 = arith.constant 0 : index
    %c0_144 = arith.constant 0 : index
    %257 = vector.load %arg3[%c8_142, %c0_143, %c0_144] : memref<9x8x24xf32, #tpu.memory_space<vmem>>, vector<1x8x24xf32>
    %258 = vector.shape_cast %257 : vector<1x8x24xf32> to vector<8x24xf32>
    %cst_145 = arith.constant dense<0.000000e+00> : vector<8x1024xf32>
    %259 = tpu.matmul %258, %256, %cst_145 {dimension_numbers = #tpu.dot_dimension_numbers<[1], [0], [0], [1], [0, 0, 1, 1], [], []>} : vector<8x24xf32>, vector<24x1024xf32>, vector<8x1024xf32> -> vector<8x1024xf32>
    %260 = arith.addf %252, %259 : vector<8x1024xf32>
    %c6_146 = arith.constant 6 : index
    %c0_147 = arith.constant 0 : index
    %261 = vector.load %arg4[%c6_146, %c0_147] : memref<8x1024xf32, #tpu.memory_space<vmem>>, vector<1x1024xf32>
    %cst_148 = arith.constant 5.000000e-01 : f32
    %262 = vector.broadcast %cst_148 : f32 to vector<1x1024xf32>
    %263 = arith.cmpf ogt, %261, %262 : vector<1x1024xf32>
    %cst_149 = arith.constant 0.000000e+00 : f32
    %264 = vector.shape_cast %263 : vector<1x1024xi1> to vector<1x1024xi1>
    %265 = vector.broadcast %264 : vector<1x1024xi1> to vector<8x1024xi1>
    %266 = vector.broadcast %cst_149 : f32 to vector<8x1024xf32>
    %267 = arith.select %265, %260, %266 : vector<8x1024xi1>, vector<8x1024xf32>
    %cst_150 = arith.constant dense<0.000000e+00> : vector<8xf32>
    %268 = vector.multi_reduction <add>, %267, %cst_150 [1] : vector<8x1024xf32> to vector<8xf32>
    %269 = vector.shape_cast %268 : vector<8xf32> to vector<8x1xf32>
    %cst_151 = arith.constant 5.120000e+02 : f32
    %270 = vector.broadcast %cst_151 : f32 to vector<8x1xf32>
    %271 = arith.divf %269, %270 : vector<8x1xf32>
    %272 = vector.broadcast %271 : vector<8x1xf32> to vector<8x1024xf32>
    %273 = arith.subf %260, %272 : vector<8x1024xf32>
    %cst_152 = arith.constant 0.000000e+00 : f32
    %274 = vector.shape_cast %263 : vector<1x1024xi1> to vector<1x1024xi1>
    %275 = vector.broadcast %274 : vector<1x1024xi1> to vector<8x1024xi1>
    %276 = vector.broadcast %cst_152 : f32 to vector<8x1024xf32>
    %277 = arith.select %275, %273, %276 : vector<8x1024xi1>, vector<8x1024xf32>
    %278 = arith.mulf %277, %277 : vector<8x1024xf32>
    %cst_153 = arith.constant dense<0.000000e+00> : vector<8xf32>
    %279 = vector.multi_reduction <add>, %278, %cst_153 [1] : vector<8x1024xf32> to vector<8xf32>
    %280 = vector.shape_cast %279 : vector<8xf32> to vector<8x1xf32>
    %cst_154 = arith.constant 5.120000e+02 : f32
    %281 = vector.broadcast %cst_154 : f32 to vector<8x1xf32>
    %282 = arith.divf %280, %281 : vector<8x1xf32>
    %283 = vector.broadcast %271 : vector<8x1xf32> to vector<8x1024xf32>
    %284 = arith.subf %260, %283 : vector<8x1024xf32>
    %cst_155 = arith.constant 9.99999974E-6 : f32
    %285 = vector.broadcast %cst_155 : f32 to vector<8x1xf32>
    %286 = arith.addf %282, %285 : vector<8x1xf32>
    %287 = math.rsqrt %286 : vector<8x1xf32>
    %288 = vector.broadcast %287 : vector<8x1xf32> to vector<8x1024xf32>
    %289 = arith.mulf %284, %288 : vector<8x1024xf32>
    %c0_156 = arith.constant 0 : index
    %c0_157 = arith.constant 0 : index
    %c0_158 = arith.constant 0 : index
    %290 = vector.load %arg1[%c0_156, %c0_157, %c0_158] : memref<1x8x1024xf32, #tpu.memory_space<vmem>>, vector<1x8x1024xf32>
    %291 = vector.shape_cast %290 : vector<1x8x1024xf32> to vector<8x1024xf32>
    %292 = arith.addf %291, %289 : vector<8x1024xf32>
    %c0_159 = arith.constant 0 : index
    %c0_160 = arith.constant 0 : index
    %c0_161 = arith.constant 0 : index
    %293 = vector.load %arg5[%c0_159, %c0_160, %c0_161] : memref<1x8x1024xf32, #tpu.memory_space<vmem>>, vector<1x8x1024xf32>
    %294 = vector.shape_cast %293 : vector<1x8x1024xf32> to vector<8x1024xf32>
    %295 = vector.shape_cast %292 : vector<8x1024xf32> to vector<1x8x1024xf32>
    tpu.vector_store %arg5[%c0_159, %c0_160, %c0_161], %295 {strides = array<i32>} : memref<1x8x1024xf32, #tpu.memory_space<vmem>>, vector<1x8x1024xf32>,
    return
  }
  func.func @transform_0(%arg0: i32) -> (i32, i32, i32) {
    %c0_i32 = arith.constant 0 : i32
    %c0_i32_0 = arith.constant 0 : i32
    %c0_i32_1 = arith.constant 0 : i32
    return %arg0, %c0_i32, %c0_i32_0 : i32, i32, i32
  }
  func.func @transform_1(%arg0: i32) -> (i32, i32, i32) {
    %c0_i32 = arith.constant 0 : i32
    %c0_i32_0 = arith.constant 0 : i32
    %c0_i32_1 = arith.constant 0 : i32
    %c0_i32_2 = arith.constant 0 : i32
    return %c0_i32, %c0_i32_0, %c0_i32_1 : i32, i32, i32
  }
  func.func @transform_2(%arg0: i32) -> (i32, i32, i32) {
    %c0_i32 = arith.constant 0 : i32
    %c0_i32_0 = arith.constant 0 : i32
    %c0_i32_1 = arith.constant 0 : i32
    %c0_i32_2 = arith.constant 0 : i32
    return %c0_i32, %c0_i32_0, %c0_i32_1 : i32, i32, i32
  }
  func.func @transform_3(%arg0: i32) -> (i32, i32) {
    %c0_i32 = arith.constant 0 : i32
    %c0_i32_0 = arith.constant 0 : i32
    %c0_i32_1 = arith.constant 0 : i32
    return %c0_i32, %c0_i32_0 : i32, i32
  }
  func.func @transform_4(%arg0: i32) -> (i32, i32, i32) {
    %c0_i32 = arith.constant 0 : i32
    %c0_i32_0 = arith.constant 0 : i32
    %c0_i32_1 = arith.constant 0 : i32
    return %arg0, %c0_i32, %c0_i32_0 : i32, i32, i32
  }
}

</mosaic_0001>

<bundles_post_ra>
// kernel: resnet_block_3d.1
= control target key start
LH: loop header
LB: loop body
LE: loop exit
PB: predicated region body
PF: predicated region fallthrough
CT: control target
= control target key end

     0   :  { %s9030_s15 = smov 0   ;;  %s11997_s0 = inlined_call_operand.vmem [shape: f32[2,8,1024], index: 0, kind: input, shape index: {}]   ;;  %s11998_s1 = inlined_call_operand.vmem [shape: f32[9,8,24], index: 1, kind: input, shape index: {}]   ;;  %s11999_s2 = inlined_call_operand.vmem [shape: f32[9,8,24], index: 2, kind: input, shape index: {}]   ;;  %s12000_s3 = inlined_call_operand.vmem [shape: f32[8,1024], index: 3, kind: input, shape index: {}]   ;;  %s12001_s4 = inlined_call_operand.vmem [shape: f32[2,8,1024], index: 4, kind: output, shape index: {}]  }
   0x1 LB: > { %s7710_s16 = sadd.s32 4294967295, %s8969_s15   ;;  %p7714_p0 = scmp.ge.s32.totalorder %s8969_s15, 1  ;;  %s8969_s15 = sphi %s9030_s15, %s14_s15  }
   0x2   : > { %p162_p1 = scmp.lt.s32.totalorder %s8969_s15, 3 }
   0x4   : > { %p163_p2 = pnand %p7714_p0, %p162_p1 }
   0x6   : > { %166 = sbr.rel (%p163_p2) target bundleno = 3376 (0xd30), region = 36 }
   0xd   : > { %p188_p3 = scmp.lt.s32.totalorder %s7710_s16, 1  ;;  %s8971_s21 = smov 126   ;;  %v206_v8 = vld [vmem:[%s12000_s3] ss:$8 sm:$0xf]  ;;  %v226_v10 = vlaneseq  ;;  %v12026_v15 = vmov 0  }
   0xe   : > { %v207_v9 = vld [vmem:[%s12000_s3] ss:$8 sm:$0xf0]  ;;  %s8973_s26 = smov 2   ;;  %s8974_s5 = smov 108  }
   0xf   : > { %s12660_s16 = smov (!%p188_p3, %s7710_s16), 1  ;;  %v208_v11 = vor.u32 %v207_v9, %v206_v8  ;;  %v239_v12 = vshrl.u32 %v226_v10, 7  ;;  %v9084_v17 = vand.u32 127, %v226_v10  ;;  %s8975_s10 = smov 20  }
  0x10   : > { %s12083_s17 = sshll.u32 %s12660_s16, 6  ;;  %s8976_s18 = smov 56  }
  0x11   : > { %s9046_s20 = scalar_lea.vmem %s11997_s0, %s12083_s17  ;;  %vm209_vm0 = vcmp.gt.f32.partialorder %v208_v11, 0.5  ;;  %v9079_v13 = vsub.s32 0, %v239_v12  ;;  %v9081_v14 = vsub.s32 1, %v239_v12  ;;  %v9088_v20 = vsub.s32 2, %v239_v12  ;;  %s8977_s25 = smov 72  }
  0x12   : > { %v200_v0 = vld [vmem:[%s9046_s20 + $0x10] sm:$0xff]  ;;  %v198_v1 = vld [vmem:[%s9046_s20] sm:$0xff]  ;;  %v201_v2 = vld [vmem:[%s9046_s20 + $0x18] sm:$0xff]  ;;  %v237_v16 = vsel %vm209_vm0, 1, %v12026_v15  ;;  %v9090_v21 = vsub.s32 3, %v239_v12  ;;  %vm12002_vm1 = vcmp.lt.s32.totalorder %v9084_v17, 126 }
  0x13   : > { %214 = vrot.lane.b32.xlu1 %v200_v0, %s8971_s21  ;;  %210 = vrot.lane.b32.xlu0 %v198_v1, %s8971_s21  ;;  %v199_v3 = vld [vmem:[%s9046_s20 + $0x8] sm:$0xff]  ;;  %v9060_v5 = vld [vmem:[%s9046_s20 + $0x20] sm:$0xff]  ;;  %v241_v18 = vrot.slane %v237_v16, %v9079_v13  ;;  %v245_v19 = vrot.slane %v237_v16, %v9081_v14  ;;  %v9093_v24 = vsub.s32 5, %v239_v12  ;;  %v9095_v25 = vsub.s32 6, %v239_v12  ;;  %s8978_s6 = smov 100   ;;  %s8979_s7 = smov 101  }
  0x14   : > { %v9057_v4 = vld [vmem:[%s9046_s20 + $0x28] sm:$0xff]  ;;  %v9067_v6 = vld [vmem:[%s9046_s20 + $0x38] sm:$0xff]  ;;  %v204_v7 = vld [vmem:[%s9046_s20 + $0x30] sm:$0xff]  ;;  %v249_v28 = vrot.slane %v237_v16, %v9088_v20  ;;  %v253_v29 = vrot.slane %v237_v16, %v9090_v21  ;;  %v9111_v34 = vsub.s32 7, %v239_v12  ;;  %v9120_v38 = vsub.s32 4, %v239_v12  ;;  %s8981_s8 = smov 99  }
  0x15   : > { %vm9097_vm2 = vcmp.eq.s32.totalorder %v241_v18, 1  ;;  %vm9101_vm3 = vcmp.eq.s32.totalorder %v245_v19, 1  ;;  %v261_v37 = vrot.slane %v237_v16, %v9093_v24  ;;  %v265_v42 = vrot.slane %v237_v16, %v9095_v25  ;;  %s8982_s9 = smov 111   ;;  %s8983_s11 = smov 110  }
  0x16   : > { %vm9127_vm4 = vcmp.eq.s32.totalorder %v249_v28, 1  ;;  %vm9131_vm5 = vcmp.eq.s32.totalorder %v253_v29, 1  ;;  %v269_v50 = vrot.slane %v237_v16, %v9111_v34  ;;  %v257_v51 = vrot.slane %v237_v16, %v9120_v38  ;;  %s8984_s12 = smov 109   ;;  %s8985_s13 = smov 91  }
  0x17   : > { %216 = vrot.lane.b32.xlu1 %v201_v2, %s8971_s21  ;;  %212 = vrot.lane.b32.xlu0 %v199_v3, %s8971_s21  ;;  %vm9147_vm6 = vcmp.eq.s32.totalorder %v261_v37, 1  ;;  %vm9151_vm7 = vcmp.eq.s32.totalorder %v265_v42, 1  ;;  %vm12004_vm11 = vcmp.lt.s32.totalorder %v9084_v17, 2  ;;  %v12167_v11 = vmov 0  ;;  %s8986_s14 = smov 90   ;;  %s8987_s19 = smov 89  }
  0x18   : > { %vm9175_vm8 = vcmp.eq.s32.totalorder %v269_v50, 1  ;;  %vm9179_vm9 = vcmp.eq.s32.totalorder %v257_v51, 1  ;;  %v12175_v51 = vmov 0  ;;  %s8988_s22 = smov 11   ;;  %s8989_s23 = smov 10  }
  0x19   : > { %s8990_s24 = smov 9   ;;  %s8991_s27 = smov 1  }
  0x1a   : > { %s12087_s30 = smov 127   ;;  %s12098_s28 = smov 119  }
  0x1b   : > { %220 = vrot.lane.b32.xlu1 %v9057_v4, %s8971_s21  ;;  %218 = vrot.lane.b32.xlu0 %v9060_v5, %s8971_s21  ;;  %s12084_s29 = smov 118   ;;  %s12109_s17 = smov 39  }
  0x1f   : > { %224 = vrot.lane.b32.xlu1 %v9067_v6, %s8971_s21  ;;  %222 = vrot.lane.b32.xlu0 %v204_v7, %s8971_s21 }
  0x85   : > { %v215_v22 = vpop.permute.xlu1 %214  ;;  %v211_v23 = vpop.permute.xlu0 %210 }
  0x89   : > { %v217_v30 = vpop.permute.xlu1 %216  ;;  %v213_v31 = vpop.permute.xlu0 %212 }
  0x8a   : > { %v234_v32 = vsel %vm12002_vm1, %v213_v31, %v215_v22  ;;  %v235_v33 = vsel %vm12002_vm1, %v211_v23, %v213_v31  ;;  %v233_v39 = vsel %vm12002_vm1, %v215_v22, %v217_v30  ;;  %v12169_v31 = vmov 0 }
  0x8b   : > { %v9115_v35 = vsel %vm9097_vm2, %v235_v33, %v198_v1  ;;  %v279_v36 = vsel %vm9101_vm3, %v234_v32, %v199_v3  ;;  %v9140_v46 = vsel %vm9127_vm4, %v233_v39, %v200_v0  ;;  %v7719_v0 = vld [vmem:[%s12000_s3 + $0x1] ss:$8 sm:$0xf]  ;;  %v12171_v32 = vmov 0 }
  0x8c   : > { %291 = vrot.lane.b32.xlu0 %v9115_v35, %s8973_s26  ;;  %293 = vrot.lane.b32.xlu1 %v279_v36, %s8973_s26  ;;  %v7720_v1 = vld [vmem:[%s12000_s3 + $0x1] ss:$8 sm:$0xf0] }
  0x8d   : > { %v221_v43 = vpop.permute.xlu1 %220  ;;  %v219_v44 = vpop.permute.xlu0 %218 }
  0x8e   : > { %v232_v45 = vsel %vm12002_vm1, %v217_v30, %v219_v44  ;;  %v231_v58 = vsel %vm12002_vm1, %v219_v44, %v221_v43 }
  0x8f   : > { %v281_v47 = vsel %vm9131_vm5, %v232_v45, %v201_v2  ;;  %v282_v63 = vsel %vm9179_vm9, %v231_v58, %v9060_v5  ;;  %v289_v2 = vor.u32 %v7720_v1, %v7719_v0  ;;  %v12165_v5 = vmov 0  ;;  %v7721_v0 = vld [vmem:[%s12000_s3 + $0x2] ss:$8 sm:$0xf] }
  0x90   : > { %295 = vrot.lane.b32.xlu0 %v9140_v46, %s8973_s26  ;;  %297 = vrot.lane.b32.xlu1 %v281_v47, %s8973_s26  ;;  %v12173_v45 = vmov 0 }
  0x91   : > { %v225_v52 = vpop.permute.xlu1 %224  ;;  %v223_v53 = vpop.permute.xlu0 %222  ;;  %vm290_vm10 = vcmp.gt.f32.partialorder %v289_v2, 0.5 }
  0x92   : > { %v229_v54 = vsel %vm12002_vm1, %v223_v53, %v225_v52  ;;  %v230_v55 = vsel %vm12002_vm1, %v221_v43, %v223_v53  ;;  %v236_v59 = vsel %vm12002_vm1, %v225_v52, %v211_v23  ;;  %v316_v3 = vsel %vm290_vm10, 1, %v12026_v15 }
  0x93   : > { %v9164_v56 = vsel %vm9147_vm6, %v230_v55, %v9057_v4  ;;  %v284_v57 = vsel %vm9151_vm7, %v229_v54, %v204_v7  ;;  %v285_v62 = vsel %vm9175_vm8, %v236_v59, %v9067_v6  ;;  %v324_v4 = vrot.slane %v316_v3, %v9081_v14 }
  0x94   : > { %301 = vrot.lane.b32.xlu0 %v9164_v56, %s8973_s26  ;;  %303 = vrot.lane.b32.xlu1 %v284_v57, %s8973_s26  ;;  %v332_v6 = vrot.slane %v316_v3, %v9090_v21  ;;  %v320_v22 = vrot.slane %v316_v3, %v9079_v13  ;;  %v348_v23 = vrot.slane %v316_v3, %v9111_v34  ;;  %v12177_v55 = vmov 0 }
  0x95   : > { %vm9200_vm12 = vcmp.eq.s32.totalorder %v324_v4, 1  ;;  %v328_v30 = vrot.slane %v316_v3, %v9088_v20  ;;  %v336_v33 = vrot.slane %v316_v3, %v9120_v38  ;;  %v340_v58 = vrot.slane %v316_v3, %v9093_v24 }
  0x96   : > { %v12166_v5 = vsel %vm9200_vm12, 4294967295, %v12165_v5  ;;  %vm9213_vm13 = vcmp.eq.s32.totalorder %v332_v6, 1  ;;  %vm9228_vm14 = vcmp.eq.s32.totalorder %v320_v22, 1  ;;  %vm9232_vm15 = vcmp.eq.s32.totalorder %v348_v23, 1 }
  0x97   : > { %v12168_v11 = vsel %vm9213_vm13, 4294967295, %v12167_v11  ;;  %v12170_v31 = vsel %vm9228_vm14, 4294967295, %v12169_v31  ;;  %v12172_v32 = vsel %vm9232_vm15, 4294967295, %v12171_v32  ;;  %vm9246_vm0 = vcmp.eq.s32.totalorder %v328_v30, 1 }
  0x98   : > { %305 = vrot.lane.b32.xlu0 %v285_v62, %s8973_s26  ;;  %299 = vrot.lane.b32.xlu1 %v282_v63, %s8973_s26  ;;  %v12174_v45 = vsel %vm9246_vm0, 4294967295, %v12173_v45  ;;  %vm9256_vm10 = vcmp.eq.s32.totalorder %v336_v33, 1  ;;  %v12183_v23 = vmov 0 }
  0x99   : > { %v12176_v51 = vsel %vm9256_vm10, 4294967295, %v12175_v51 }
  0xfe   : > { %v294_v7 = vpop.permute.xlu1 %293  ;;  %v292_v8 = vpop.permute.xlu0 %291 }
  0xff   : > { %v314_v9 = vsel %vm12004_vm11, %v292_v8, %v294_v7 }
 0x100   : > { %v9209_v10 = vsel %vm9200_vm12, %v314_v9, %v279_v36 }
 0x101   : > { %372 = vrot.lane.b32.xlu1 %v9209_v10, %s8974_s5 }
 0x102   : > { %v298_v12 = vpop.permute.xlu1 %297  ;;  %v296_v16 = vpop.permute.xlu0 %295 }
 0x103   : > { %v312_v18 = vsel %vm12004_vm11, %v296_v16, %v298_v12 }
 0x104   : > { %v9221_v19 = vsel %vm9213_vm13, %v312_v18, %v281_v47  ;;  %v313_v47 = vsel %vm12004_vm11, %v294_v7, %v296_v16 }
 0x105   : > { %376 = vrot.lane.b32.xlu1 %v9221_v19, %s8974_s5  ;;  %v359_v52 = vsel %vm9246_vm0, %v313_v47, %v9140_v46  ;;  %v12190_v47 = vmov 0 }
 0x106   : > { %v304_v28 = vpop.permute.xlu1 %303  ;;  %v302_v29 = vpop.permute.xlu0 %301 }
 0x107   : > { %v309_v54 = vsel %vm12004_vm11, %v302_v29, %v304_v28 }
 0x10a   : > { %v300_v36 = vpop.permute.xlu1 %299  ;;  %v306_v37 = vpop.permute.xlu0 %305 }
 0x10b   : > { %v308_v39 = vsel %vm12004_vm11, %v304_v28, %v306_v37  ;;  %v315_v42 = vsel %vm12004_vm11, %v306_v37, %v292_v8  ;;  %v311_v50 = vsel %vm12004_vm11, %v298_v12, %v300_v36  ;;  %v310_v59 = vsel %vm12004_vm11, %v300_v36, %v302_v29 }
 0x10c   : > { %v357_v43 = vsel %vm9228_vm14, %v315_v42, %v9115_v35  ;;  %v364_v44 = vsel %vm9232_vm15, %v308_v39, %v285_v62  ;;  %v344_v35 = vrot.slane %v316_v3, %v9095_v25  ;;  %v9266_v53 = vsel %vm9256_vm10, %v311_v50, %v282_v63 }
 0x10d   : > { %370 = vrot.lane.b32.xlu0 %v357_v43, %s8974_s5  ;;  %384 = vrot.lane.b32.xlu1 %v364_v44, %s8974_s5  ;;  %vm9283_vm10 = vcmp.eq.s32.totalorder %v340_v58, 1  ;;  %v12179_v62 = vmov 0  ;;  %v12185_v28 = vmov 0  ;;  %v12187_v42 = vmov 0 }
 0x10e   : > { %vm9273_vm1 = vcmp.eq.s32.totalorder %v344_v35, 1  ;;  %v12180_v62 = vsel %vm9283_vm10, 4294967295, %v12179_v62  ;;  %v362_v63 = vsel %vm9283_vm10, %v310_v59, %v9164_v56  ;;  %vm12013_vm10 = vcmp.lt.s32.totalorder %v9084_v17, 108 }
 0x10f   : > { %v12178_v55 = vsel %vm9273_vm1, 4294967295, %v12177_v55  ;;  %v363_v46 = vsel %vm9273_vm1, %v309_v54, %v284_v57  ;;  %v7722_v57 = vld [vmem:[%s12000_s3 + $0x2] ss:$8 sm:$0xf0]  ;;  %v12181_v56 = vmov 0 }
 0x110   : > { %v368_v1 = vor.u32 %v7722_v57, %v7721_v0  ;;  %v12193_v57 = vmov 0 }
 0x111   : > { %374 = vrot.lane.b32.xlu0 %v359_v52, %s8974_s5  ;;  %378 = vrot.lane.b32.xlu1 %v9266_v53, %s8974_s5 }
 0x112   : > { %vm369_vm11 = vcmp.gt.f32.partialorder %v368_v1, 0.5  ;;  %v12196_v1 = vmov 0 }
 0x113   : > { %v395_v3 = vsel %vm369_vm11, 1, %v12026_v15 }
 0x114   : > { %v399_v4 = vrot.slane %v395_v3, %v9079_v13  ;;  %v407_v7 = vrot.slane %v395_v3, %v9088_v20  ;;  %v403_v8 = vrot.slane %v395_v3, %v9081_v14  ;;  %v427_v22 = vrot.slane %v395_v3, %v9111_v34 }
 0x115   : > { %382 = vrot.lane.b32.xlu0 %v363_v46, %s8974_s5  ;;  %v423_v29 = vrot.slane %v395_v3, %v9095_v25  ;;  %v419_v50 = vrot.slane %v395_v3, %v9093_v24 }
 0x116   : > { %vm9300_vm1 = vcmp.eq.s32.totalorder %v399_v4, 1  ;;  %vm9315_vm11 = vcmp.eq.s32.totalorder %v407_v7, 1  ;;  %vm9319_vm0 = vcmp.eq.s32.totalorder %v403_v8, 1 }
 0x117   : > { %v12182_v56 = vsel %vm9300_vm1, 4294967295, %v12181_v56  ;;  %v12184_v23 = vsel %vm9315_vm11, 4294967295, %v12183_v23  ;;  %v12186_v28 = vsel %vm9319_vm0, 4294967295, %v12185_v28  ;;  %vm9344_vm15 = vcmp.eq.s32.totalorder %v423_v29, 1 }
 0x118   : > { %v12191_v47 = vsel %vm9344_vm15, 4294967295, %v12190_v47 }
 0x119   : > { %380 = vrot.lane.b32.xlu0 %v362_v63, %s8974_s5  ;;  %12192 = vst [vmem:[#allocation3_spill] sm:$0xff] %v12191_v47 }
 0x173   : > { %v373_v2 = vpop.permute.xlu1 %372 }
 0x177   : > { %v377_v6 = vpop.permute.xlu1 %376 }
 0x17f   : > { %v371_v9 = vpop.permute.xlu0 %370  ;;  %v385_v16 = vpop.permute.xlu1 %384 }
 0x180   : > { %v393_v12 = vsel %vm12013_vm10, %v371_v9, %v373_v2 }
 0x181   : > { %v9310_v18 = vsel %vm9300_vm1, %v393_v12, %v357_v43  ;;  %vm9335_vm1 = vcmp.eq.s32.totalorder %v427_v22, 1  ;;  %v394_v43 = vsel %vm12013_vm10, %v385_v16, %v371_v9 }
 0x182   : > { %449 = vrot.lane.b32.xlu0 %v9310_v18, %s8975_s10  ;;  %v12188_v42 = vsel %vm9335_vm1, 4294967295, %v12187_v42  ;;  %v443_v58 = vsel %vm9335_vm1, %v394_v43, %v364_v44  ;;  %v415_v44 = vrot.slane %v395_v3, %v9120_v38 }
 0x183   : > { %v375_v30 = vpop.permute.xlu0 %374  ;;  %12189 = vst [vmem:[#allocation2_spill] sm:$0xff] %v12188_v42  ;;  %v379_v35 = vpop.permute.xlu1 %378  ;;  %v10028_v42 = vld [vmem:[%s11998_s1] sm:$0xff] }
 0x184   : > { %v391_v33 = vsel %vm12013_vm10, %v375_v30, %v377_v6  ;;  %v392_v36 = vsel %vm12013_vm10, %v373_v2, %v375_v30  ;;  %v390_v0 = vsel %vm12013_vm10, %v377_v6, %v379_v35 }
 0x185   : > { %v9330_v37 = vsel %vm9315_vm11, %v391_v33, %v359_v52  ;;  %v437_v39 = vsel %vm9319_vm0, %v392_v36, %v9209_v10  ;;  %v411_v10 = vrot.slane %v395_v3, %v9090_v21  ;;  %vm9363_vm11 = vcmp.eq.s32.totalorder %v419_v50, 1 }
 0x186   : > { %453 = vrot.lane.b32.xlu0 %v9330_v37, %s8975_s10  ;;  %451 = vrot.lane.b32.xlu1 %v437_v39, %s8975_s10  ;;  %v12194_v57 = vsel %vm9363_vm11, 4294967295, %v12193_v57  ;;  %v12199_v3 = vmov 0 }
 0x187   : > { %v383_v52 = vpop.permute.xlu0 %382  ;;  %12195 = vst [vmem:[#allocation4_spill] sm:$0xff] %v12194_v57  ;;  %vm9367_vm0 = vcmp.eq.s32.totalorder %v411_v10, 1 }
 0x188   : > { %v387_v54 = vsel %vm12013_vm10, %v383_v52, %v385_v16  ;;  %v12197_v1 = vsel %vm9367_vm0, 4294967295, %v12196_v1  ;;  %v439_v6 = vsel %vm9367_vm0, %v390_v0, %v9221_v19  ;;  %v7723_v19 = vld [vmem:[%s12000_s3 + $0x3] ss:$8 sm:$0xf]  ;;  %vm12022_vm0 = vcmp.lt.s32.totalorder %v9084_v17, 20 }
 0x189   : > { %v9356_v59 = vsel %vm9344_vm15, %v387_v54, %v363_v46  ;;  %12198 = vst [vmem:[#allocation5_spill] sm:$0xff] %v12197_v1  ;;  %vm9383_vm15 = vcmp.eq.s32.totalorder %v415_v44, 1 }
 0x18a   : > { %463 = vrot.lane.b32.xlu0 %v443_v58, %s8975_s10  ;;  %461 = vrot.lane.b32.xlu1 %v9356_v59, %s8975_s10  ;;  %v12200_v3 = vsel %vm9383_vm15, 4294967295, %v12199_v3 }
 0x18b   : > { %v381_v46 = vpop.permute.xlu0 %380  ;;  %12201 = vst [vmem:[#allocation6_spill] sm:$0xff] %v12200_v3 }
 0x18c   : > { %v388_v2 = vsel %vm12013_vm10, %v381_v46, %v383_v52  ;;  %v389_v7 = vsel %vm12013_vm10, %v379_v35, %v381_v46  ;;  %v12205_v35 = vmov 0  ;;  %v12208_v52 = vmov 0 }
 0x18d   : > { %v441_v4 = vsel %vm9363_vm11, %v388_v2, %v362_v63  ;;  %v440_v8 = vsel %vm9383_vm15, %v389_v7, %v9266_v53  ;;  %v7724_v63 = vld [vmem:[%s12000_s3 + $0x3] ss:$8 sm:$0xf0]  ;;  %v12202_v53 = vmov 0 }
 0x18e   : > { %459 = vrot.lane.b32.xlu1 %v441_v4, %s8975_s10  ;;  %455 = vrot.lane.b32.xlu0 %v439_v6, %s8975_s10  ;;  %v447_v9 = vor.u32 %v7724_v63, %v7723_v19  ;;  %v12211_v19 = vmov 0 }
 0x190   : > { %vm448_vm10 = vcmp.gt.f32.partialorder %v447_v9, 0.5  ;;  %v12214_v9 = vmov 0 }
 0x191   : > { %v474_v12 = vsel %vm448_vm10, 1, %v12026_v15 }
 0x192   : > { %457 = vrot.lane.b32.xlu1 %v440_v8, %s8975_s10  ;;  %v482_v16 = vrot.slane %v474_v12, %v9081_v14  ;;  %v478_v29 = vrot.slane %v474_v12, %v9079_v13  ;;  %v506_v30 = vrot.slane %v474_v12, %v9111_v34  ;;  %v486_v10 = vrot.slane %v474_v12, %v9088_v20 }
 0x193   : > { %v490_v54 = vrot.slane %v474_v12, %v9090_v21 }
 0x194   : > { %vm9400_vm15 = vcmp.eq.s32.totalorder %v482_v16, 1  ;;  %vm9415_vm10 = vcmp.eq.s32.totalorder %v478_v29, 1  ;;  %vm9419_vm11 = vcmp.eq.s32.totalorder %v506_v30, 1  ;;  %v498_v16 = vrot.slane %v474_v12, %v9093_v24 }
 0x195   : > { %v12203_v53 = vsel %vm9400_vm15, 4294967295, %v12202_v53  ;;  %v12206_v35 = vsel %vm9415_vm10, 4294967295, %v12205_v35  ;;  %v12209_v52 = vsel %vm9419_vm11, 4294967295, %v12208_v52  ;;  %vm9441_vm1 = vcmp.eq.s32.totalorder %v490_v54, 1 }
 0x196   : > { %12204 = vst [vmem:[#allocation7_spill] sm:$0xff] %v12203_v53  ;;  %12207 = vst [vmem:[#allocation8_spill] sm:$0xff] %v12206_v35  ;;  %v12215_v9 = vsel %vm9441_vm1, 4294967295, %v12214_v9 }
 0x197   : > { %12210 = vst [vmem:[#allocation9_spill] sm:$0xff] %v12209_v52  ;;  %12216 = vst [vmem:[#allocation11_spill] sm:$0xff] %v12215_v9  ;;  %v12266_v9 = vmov 0 }
 0x1f4   : > { %v450_v22 = vpop.permute.xlu0 %449 }
 0x1f8   : > { %v454_v33 = vpop.permute.xlu0 %453  ;;  %v452_v36 = vpop.permute.xlu1 %451 }
 0x1f9   : > { %v472_v43 = vsel %vm12022_vm0, %v450_v22, %v452_v36  ;;  %v471_v63 = vsel %vm12022_vm0, %v452_v36, %v454_v33 }
 0x1fa   : > { %v9410_v50 = vsel %vm9400_vm15, %v472_v43, %v437_v39  ;;  %vm9433_vm15 = vcmp.eq.s32.totalorder %v486_v10, 1 }
 0x1fb   : > { %530 = vrot.lane.b32.xlu1 %v9410_v50, %s8976_s18  ;;  %v12212_v19 = vsel %vm9433_vm15, 4294967295, %v12211_v19  ;;  %v9452_v30 = vsel %vm9433_vm15, %v471_v63, %v9330_v37  ;;  %v12220_v37 = vmov 0 }
 0x1fc   : > { %v464_v0 = vpop.permute.xlu0 %463  ;;  %v462_v44 = vpop.permute.xlu1 %461  ;;  %12213 = vst [vmem:[#allocation10_spill] sm:$0xff] %v12212_v19 }
 0x1fd   : > { %v473_v39 = vsel %vm12022_vm0, %v464_v0, %v450_v22  ;;  %v466_v46 = vsel %vm12022_vm0, %v462_v44, %v464_v0 }
 0x1fe   : > { %v515_v2 = vsel %vm9415_vm10, %v473_v39, %v9310_v18  ;;  %v522_v7 = vsel %vm9419_vm11, %v466_v46, %v443_v58  ;;  %v502_v18 = vrot.slane %v474_v12, %v9095_v25  ;;  %vm9468_vm10 = vcmp.eq.s32.totalorder %v498_v16, 1 }
 0x1ff   : > { %528 = vrot.lane.b32.xlu0 %v515_v2, %s8976_s18  ;;  %542 = vrot.lane.b32.xlu1 %v522_v7, %s8976_s18  ;;  %v12221_v37 = vsel %vm9468_vm10, 4294967295, %v12220_v37 }
 0x200   : > { %v456_v58 = vpop.permute.xlu0 %455  ;;  %v460_v22 = vpop.permute.xlu1 %459  ;;  %vm9464_vm11 = vcmp.eq.s32.totalorder %v502_v18, 1  ;;  %12222 = vst [vmem:[#allocation13_spill] sm:$0xff] %v12221_v37 }
 0x201   : > { %v470_v29 = vsel %vm12022_vm0, %v454_v33, %v456_v58  ;;  %v467_v43 = vsel %vm12022_vm0, %v460_v22, %v462_v44  ;;  %v12217_v33 = vmov 0 }
 0x202   : > { %v9456_v36 = vsel %vm9441_vm1, %v470_v29, %v439_v6  ;;  %v12218_v33 = vsel %vm9464_vm11, 4294967295, %v12217_v33  ;;  %v494_v6 = vrot.slane %v474_v12, %v9120_v38  ;;  %v521_v0 = vsel %vm9464_vm11, %v467_v43, %v9356_v59  ;;  %v7725_v59 = vld [vmem:[%s12000_s3 + $0x4] ss:$8 sm:$0xf] }
 0x203   : > { %532 = vrot.lane.b32.xlu0 %v9452_v30, %s8976_s18  ;;  %534 = vrot.lane.b32.xlu1 %v9456_v36, %s8976_s18  ;;  %12219 = vst [vmem:[#allocation12_spill] sm:$0xff] %v12218_v33  ;;  %v12223_v12 = vmov 0 }
 0x204   : > { %v458_v10 = vpop.permute.xlu1 %457  ;;  %vm9484_vm1 = vcmp.eq.s32.totalorder %v494_v6, 1 }
 0x205   : > { %v468_v54 = vsel %vm12022_vm0, %v458_v10, %v460_v22  ;;  %v469_v39 = vsel %vm12022_vm0, %v456_v58, %v458_v10  ;;  %v12224_v12 = vsel %vm9484_vm1, 4294967295, %v12223_v12 }
 0x206   : > { %v520_v44 = vsel %vm9468_vm10, %v468_v54, %v441_v4  ;;  %12225 = vst [vmem:[#allocation14_spill] sm:$0xff] %v12224_v12  ;;  %v519_v46 = vsel %vm9484_vm1, %v469_v39, %v440_v8  ;;  %v7726_v4 = vld [vmem:[%s12000_s3 + $0x4] ss:$8 sm:$0xf0]  ;;  %vm12037_vm10 = vcmp.lt.s32.totalorder %v9084_v17, 56  ;;  %v12226_v8 = vmov 0 }
 0x207   : > { %540 = vrot.lane.b32.xlu0 %v521_v0, %s8976_s18  ;;  %538 = vrot.lane.b32.xlu1 %v520_v44, %s8976_s18  ;;  %v526_v63 = vor.u32 %v7726_v4, %v7725_v59  ;;  %v12229_v54 = vmov 0 }
 0x209   : > { %vm527_vm0 = vcmp.gt.f32.partialorder %v526_v63, 0.5 }
 0x20a   : > { %v553_v18 = vsel %vm527_vm0, 1, %v12026_v15  ;;  %v12232_v15 = vmov 0 }
 0x20b   : > { %536 = vrot.lane.b32.xlu0 %v519_v46, %s8976_s18  ;;  %v581_v16 = vrot.slane %v553_v18, %v9095_v25  ;;  %v557_v22 = vrot.slane %v553_v18, %v9079_v13  ;;  %v585_v39 = vrot.slane %v553_v18, %v9111_v34  ;;  %v577_v59 = vrot.slane %v553_v18, %v9093_v24 }
 0x20c   : > { %v565_v12 = vrot.slane %v553_v18, %v9088_v20 }
 0x20d   : > { %vm9500_vm1 = vcmp.eq.s32.totalorder %v581_v16, 1  ;;  %vm9513_vm0 = vcmp.eq.s32.totalorder %v557_v22, 1  ;;  %vm9531_vm11 = vcmp.eq.s32.totalorder %v577_v59, 1 }
 0x20e   : > { %v12227_v8 = vsel %vm9500_vm1, 4294967295, %v12226_v8  ;;  %v12230_v54 = vsel %vm9513_vm0, 4294967295, %v12229_v54  ;;  %vm9553_vm15 = vcmp.eq.s32.totalorder %v565_v12, 1 }
 0x20f   : > { %12228 = vst [vmem:[#allocation15_spill] sm:$0xff] %v12227_v8  ;;  %12231 = vst [vmem:[#allocation16_spill] sm:$0xff] %v12230_v54  ;;  %v12235_v8 = vmov 0 }
 0x210   : > { %v12236_v8 = vsel %vm9531_vm11, 4294967295, %v12235_v8 }
 0x211   : > { %12237 = vst [vmem:[#allocation18_spill] sm:$0xff] %v12236_v8 }
 0x26d   : > { %v531_v58 = vpop.permute.xlu1 %530 }
 0x271   : > { %v529_v29 = vpop.permute.xlu0 %528  ;;  %v543_v43 = vpop.permute.xlu1 %542 }
 0x272   : > { %v552_v6 = vsel %vm12037_vm10, %v543_v43, %v529_v29  ;;  %v551_v22 = vsel %vm12037_vm10, %v529_v29, %v531_v58  ;;  %v12238_v29 = vmov 0 }
 0x273   : > { %v9509_v10 = vsel %vm9500_vm1, %v552_v6, %v521_v0  ;;  %v561_v6 = vrot.slane %v553_v18, %v9081_v14  ;;  %vm9527_vm1 = vcmp.eq.s32.totalorder %v585_v39, 1 }
 0x274   : > { %619 = vrot.lane.b32.xlu1 %v9509_v10, %s8977_s25  ;;  %v12233_v15 = vsel %vm9527_vm1, 4294967295, %v12232_v15 }
 0x275   : > { %v533_v4 = vpop.permute.xlu0 %532  ;;  %v535_v16 = vpop.permute.xlu1 %534  ;;  %12234 = vst [vmem:[#allocation17_spill] sm:$0xff] %v12233_v15  ;;  %v12260_v15 = vmov 0 }
 0x276   : > { %v550_v63 = vsel %vm12037_vm10, %v531_v58, %v533_v4  ;;  %v549_v39 = vsel %vm12037_vm10, %v533_v4, %v535_v16 }
 0x277   : > { %v594_v0 = vsel %vm9513_vm0, %v550_v63, %v515_v2  ;;  %v601_v63 = vsel %vm9527_vm1, %v551_v22, %v522_v7  ;;  %vm9544_vm0 = vcmp.eq.s32.totalorder %v561_v6, 1  ;;  %v569_v7 = vrot.slane %v553_v18, %v9090_v21 }
 0x278   : > { %607 = vrot.lane.b32.xlu0 %v594_v0, %s8977_s25  ;;  %v12239_v29 = vsel %vm9544_vm0, 4294967295, %v12238_v29  ;;  %v595_v4 = vsel %vm9544_vm0, %v549_v39, %v9410_v50  ;;  %v12247_v50 = vmov 0  ;;  %v7728_v39 = vld [vmem:[%s12000_s3 + $0x5] ss:$8 sm:$0xf0] }
 0x279   : > { %v541_v37 = vpop.permute.xlu0 %540  ;;  %12240 = vst [vmem:[#allocation19_spill] sm:$0xff] %v12239_v29  ;;  %v539_v59 = vpop.permute.xlu1 %538  ;;  %v12257_v29 = vmov 0 }
 0x27a   : > { %v545_v2 = vsel %vm12037_vm10, %v541_v37, %v543_v43  ;;  %v12241_v43 = vmov 0 }
 0x27b   : > { %v9542_v58 = vsel %vm9531_vm11, %v545_v2, %v520_v44  ;;  %v12242_v43 = vsel %vm9553_vm15, 4294967295, %v12241_v43  ;;  %v573_v44 = vrot.slane %v553_v18, %v9120_v38  ;;  %v546_v2 = vsel %vm12037_vm10, %v539_v59, %v541_v37 }
 0x27c   : > { %621 = vrot.lane.b32.xlu0 %v601_v63, %s8977_s25  ;;  %617 = vrot.lane.b32.xlu1 %v9542_v58, %s8977_s25  ;;  %12243 = vst [vmem:[#allocation20_spill] sm:$0xff] %v12242_v43  ;;  %vm9573_vm11 = vcmp.eq.s32.totalorder %v569_v7, 1  ;;  %v12244_v18 = vmov 0 }
 0x27d   : > { %v537_v6 = vpop.permute.xlu0 %536  ;;  %v12245_v18 = vsel %vm9573_vm11, 4294967295, %v12244_v18  ;;  %vm9577_vm1 = vcmp.eq.s32.totalorder %v573_v44, 1  ;;  %v12250_v44 = vmov 0  }
 0x27e   : > { %v548_v22 = vsel %vm12037_vm10, %v535_v16, %v537_v6  ;;  %v547_v8 = vsel %vm12037_vm10, %v537_v6, %v539_v59  ;;  %12246 = vst [vmem:[#allocation21_spill] sm:$0xff] %v12245_v18  ;;  %v12248_v50 = vsel %vm9577_vm1, 4294967295, %v12247_v50  ;;  %v598_v37 = vsel %vm9577_vm1, %v546_v2, %v519_v46  ;;  %v7727_v16 = vld [vmem:[%s12000_s3 + $0x5] ss:$8 sm:$0xf] }
 0x27f   : > { %v596_v12 = vsel %vm9553_vm15, %v548_v22, %v9452_v30  ;;  %12249 = vst [vmem:[#allocation22_spill] sm:$0xff] %v12248_v50  ;;  %v597_v30 = vsel %vm9573_vm11, %v547_v8, %v9456_v36  ;;  %v605_v7 = vor.u32 %v7728_v39, %v7727_v16  ;;  %vm12056_vm1 = vcmp.lt.s32.totalorder %v9084_v17, 72 }
 0x280   : > { %609 = vrot.lane.b32.xlu0 %v595_v4, %s8977_s25  ;;  %611 = vrot.lane.b32.xlu1 %v596_v12, %s8977_s25  ;;  %v12251_v50 = vmov 0  ;;  %v12254_v16 = vmov 0 }
 0x281   : > { %vm606_vm10 = vcmp.gt.f32.partialorder %v605_v7, 0.5 }
 0x282   : > { %v632_v59 = vsel %vm606_vm10, 1, %v12250_v44 }
 0x283   : > { %v636_v36 = vrot.slane %v632_v59, %v9079_v13  ;;  %v640_v46 = vrot.slane %v632_v59, %v9081_v14  ;;  %v664_v22 = vrot.slane %v632_v59, %v9111_v34  ;;  %v644_v2 = vrot.slane %v632_v59, %v9088_v20 }
 0x284   : > { %613 = vrot.lane.b32.xlu0 %v597_v30, %s8977_s25  ;;  %615 = vrot.lane.b32.xlu1 %v598_v37, %s8977_s25  ;;  %v648_v54 = vrot.slane %v632_v59, %v9090_v21 }
 0x285   : > { %vm9600_vm11 = vcmp.eq.s32.totalorder %v636_v36, 1  ;;  %vm9604_vm15 = vcmp.eq.s32.totalorder %v640_v46, 1  ;;  %vm9612_vm10 = vcmp.eq.s32.totalorder %v664_v22, 1  ;;  %vm9624_vm0 = vcmp.eq.s32.totalorder %v644_v2, 1 }
 0x286   : > { %v12252_v50 = vsel %vm9600_vm11, 4294967295, %v12251_v50  ;;  %v12255_v16 = vsel %vm9604_vm15, 4294967295, %v12254_v16  ;;  %v12258_v29 = vsel %vm9612_vm10, 4294967295, %v12257_v29  ;;  %v12261_v15 = vsel %vm9624_vm0, 4294967295, %v12260_v15 }
 0x287   : > { %12253 = vst [vmem:[#allocation23_spill] sm:$0xff] %v12252_v50  ;;  %12256 = vst [vmem:[#allocation24_spill] sm:$0xff] %v12255_v16 }
 0x288   : > { %12259 = vst [vmem:[#allocation25_spill] sm:$0xff] %v12258_v29  ;;  %12262 = vst [vmem:[#allocation26_spill] sm:$0xff] %v12261_v15 }
 0x2e6   : > { %v620_v8 = vpop.permute.xlu1 %619 }
 0x2ea   : > { %v608_v6 = vpop.permute.xlu0 %607 }
 0x2ee   : > { %v622_v39 = vpop.permute.xlu0 %621  ;;  %v618_v7 = vpop.permute.xlu1 %617 }
 0x2ef   : > { %v624_v18 = vsel %vm12056_vm1, %v620_v8, %v622_v39  ;;  %v631_v43 = vsel %vm12056_vm1, %v622_v39, %v608_v6  ;;  %v625_v22 = vsel %vm12056_vm1, %v618_v7, %v620_v8  ;;  %v660_v8 = vrot.slane %v632_v59, %v9095_v25 }
 0x2f0   : > { %v9618_v36 = vsel %vm9600_vm11, %v624_v18, %v594_v0  ;;  %v9622_v46 = vsel %vm9604_vm15, %v631_v43, %v595_v4  ;;  %v652_v0 = vrot.slane %v632_v59, %v9120_v38  ;;  %v656_v43 = vrot.slane %v632_v59, %v9093_v24 }
 0x2f1   : > { %v9633_v39 = vpack.i.bf16 %v9622_v46, %v9618_v36  ;;  %v9646_v2 = vsel %vm9612_vm10, %v625_v22, %v601_v63  ;;  %vm9652_vm15 = vcmp.eq.s32.totalorder %v648_v54, 1  ;;  %v12269_v22 = vmov 0 }
 0x2f2   : > { %v610_v18 = vpop.permute.xlu0 %609  ;;  %v612_v50 = vpop.permute.xlu1 %611  ;;  %vm9658_vm11 = vcmp.eq.s32.totalorder %v652_v0, 1  ;;  %vm9666_vm10 = vcmp.eq.s32.totalorder %v656_v43, 1 }
 0x2f3   : > { %v630_v4 = vsel %vm12056_vm1, %v608_v6, %v610_v18  ;;  %8287 = vrot.lane.b32.xlu1 %v9633_v39, %s8978_s6  ;;  %8282 = vrot.lane.b32.xlu0 %v9633_v39, %s8979_s7  ;;  %v12263_v6 = vmov 0  ;;  %v629_v33 = vsel %vm12056_vm1, %v610_v18, %v612_v50  ;;  %v12267_v9 = vsel %vm9658_vm11, 4294967295, %v12266_v9 }
 0x2f4   : > { %v9650_v16 = vsel %vm9624_vm0, %v630_v4, %v596_v12  ;;  %v12264_v6 = vsel %vm9652_vm15, 4294967295, %v12263_v6  ;;  %12268 = vst [vmem:[#allocation28_spill] sm:$0xff] %v12267_v9  ;;  %v12270_v22 = vsel %vm9666_vm10, 4294967295, %v12269_v22  ;;  %vm9672_vm0 = vcmp.eq.s32.totalorder %v660_v8, 1 }
 0x2f5   : > { %12265 = vst [vmem:[#allocation27_spill] sm:$0xff] %v12264_v6  ;;  %v9664_v59 = vpack.i.bf16 %v9650_v16, %v9646_v2  ;;  %12271 = vst [vmem:[#allocation29_spill] sm:$0xff] %v12270_v22  ;;  %v12272_v4 = vmov 0  ;;  %v9686_v43 = vsel %vm9652_vm15, %v629_v33, %v597_v30  ;;  %v12058_v30 = vmov 0.0  }
 0x2f6   : > { %v614_v63 = vpop.permute.xlu0 %613  ;;  %v616_v54 = vpop.permute.xlu1 %615  ;;  %v12273_v4 = vsel %vm9672_vm0, 4294967295, %v12272_v4  ;;  %902 = vmatprep.mubr.f32.mxu0 %v12058_v30  ;;  %973 = vmatprep.mubr.f32.mxu1 %v12058_v30 }
 0x2f7   : > { %v628_v12 = vsel %vm12056_vm1, %v612_v50, %v614_v63  ;;  %12274 = vst [vmem:[#allocation30_spill] sm:$0xff] %v12273_v4  ;;  %v626_v0 = vsel %vm12056_vm1, %v616_v54, %v618_v7  ;;  %v627_v18 = vsel %vm12056_vm1, %v614_v63, %v616_v54  ;;  %8297 = vrot.lane.b32.xlu1 %v9664_v59, %s8978_s6  ;;  %vm12077_vm1 = vcmp.lt.s32.totalorder %v9084_v17, 101 }
 0x2f8   : > { %8292 = vrot.lane.b32.xlu0 %v9664_v59, %s8979_s7  ;;  %v9690_v50 = vsel %vm9658_vm11, %v628_v12, %v598_v37  ;;  %v9699_v8 = vsel %vm9666_vm10, %v627_v18, %v9542_v58  ;;  %v9704_v63 = vsel %vm9672_vm0, %v626_v0, %v9509_v10  ;;  %vm12076_vm0 = vcmp.lt.s32.totalorder %v9084_v17, 100 }
 0x2f9   : > { %v9694_v7 = vpack.i.bf16 %v9690_v50, %v9686_v43  ;;  %v9712_v33 = vpack.i.bf16 %v9704_v63, %v9699_v8  ;;  %vm12081_vm10 = vcmp.lt.s32.totalorder %v9084_v17, 99  ;;  %vm12138_vm11 = vcmask 195584  }
 0x2fb   : > { %8307 = vrot.lane.b32.xlu1 %v9694_v7, %s8978_s6 }
 0x2fc   : > { %8302 = vrot.lane.b32.xlu0 %v9694_v7, %s8979_s7 }
 0x2ff   : > { %8317 = vrot.lane.b32.xlu1 %v9712_v33, %s8978_s6 }
 0x300   : > { %8312 = vrot.lane.b32.xlu0 %v9712_v33, %s8979_s7 }
 0x303   : > { %809 = vrot.lane.b32.xlu1 %v9622_v46, %s8981_s8 }
 0x304   : > { %807 = vrot.lane.b32.xlu0 %v9618_v36, %s8981_s8 }
 0x307   : > { %811 = vrot.lane.b32.xlu1 %v9650_v16, %s8981_s8 }
 0x308   : > { %821 = vrot.lane.b32.xlu0 %v9646_v2, %s8981_s8 }
 0x30b   : > { %8322 = vrot.lane.b32.xlu1 %v9633_v39, %s8982_s9 }
 0x30c   : > { %813 = vrot.lane.b32.xlu0 %v9686_v43, %s8981_s8 }
 0x30f   : > { %815 = vrot.lane.b32.xlu1 %v9690_v50, %s8981_s8 }
 0x310   : > { %8327 = vrot.lane.b32.xlu0 %v9633_v39, %s8983_s11 }
 0x313   : > { %8332 = vrot.lane.b32.xlu1 %v9664_v59, %s8982_s9 }
 0x314   : > { %817 = vrot.lane.b32.xlu0 %v9699_v8, %s8981_s8 }
 0x317   : > { %8342 = vrot.lane.b32.xlu1 %v9694_v7, %s8982_s9 }
 0x318   : > { %8337 = vrot.lane.b32.xlu0 %v9664_v59, %s8983_s11 }
 0x31b   : > { %819 = vrot.lane.b32.xlu1 %v9704_v63, %s8981_s8 }
 0x31c   : > { %8347 = vrot.lane.b32.xlu0 %v9694_v7, %s8983_s11 }
 0x31f   : > { %8357 = vrot.lane.b32.xlu1 %v9712_v33, %s8983_s11 }
 0x320   : > { %8352 = vrot.lane.b32.xlu0 %v9712_v33, %s8982_s9 }
 0x323   : > { %733 = vrot.lane.b32.xlu1 %v9622_v46, %s8984_s12 }
 0x324   : > { %731 = vrot.lane.b32.xlu0 %v9618_v36, %s8984_s12 }
 0x327   : > { %735 = vrot.lane.b32.xlu1 %v9650_v16, %s8984_s12 }
 0x328   : > { %745 = vrot.lane.b32.xlu0 %v9646_v2, %s8984_s12 }
 0x32b   : > { %739 = vrot.lane.b32.xlu1 %v9690_v50, %s8984_s12 }
 0x32c   : > { %737 = vrot.lane.b32.xlu0 %v9686_v43, %s8984_s12 }
 0x32f   : > { %8362 = vrot.lane.b32.xlu1 %v9633_v39, %s8985_s13 }
 0x330   : > { %741 = vrot.lane.b32.xlu0 %v9699_v8, %s8984_s12 }
 0x333   : > { %8372 = vrot.lane.b32.xlu1 %v9664_v59, %s8985_s13 }
 0x334   : > { %8367 = vrot.lane.b32.xlu0 %v9633_v39, %s8986_s14 }
 0x337   : > { %743 = vrot.lane.b32.xlu1 %v9704_v63, %s8984_s12 }
 0x338   : > { %8377 = vrot.lane.b32.xlu0 %v9664_v59, %s8986_s14 }
 0x33b   : > { %8387 = vrot.lane.b32.xlu1 %v9694_v7, %s8986_s14 }
 0x33c   : > { %8382 = vrot.lane.b32.xlu0 %v9694_v7, %s8985_s13 }
 0x33f   : > { %8397 = vrot.lane.b32.xlu1 %v9712_v33, %s8986_s14 }
 0x340   : > { %8392 = vrot.lane.b32.xlu0 %v9712_v33, %s8985_s13 }
 0x343   : > { %1461 = vrot.lane.b32.xlu1 %v9622_v46, %s8987_s19 }
 0x344   : > { %1459 = vrot.lane.b32.xlu0 %v9618_v36, %s8987_s19 }
 0x347   : > { %1463 = vrot.lane.b32.xlu1 %v9650_v16, %s8987_s19 }
 0x348   : > { %1473 = vrot.lane.b32.xlu0 %v9646_v2, %s8987_s19 }
 0x34b   : > { %1467 = vrot.lane.b32.xlu1 %v9690_v50, %s8987_s19 }
 0x34c   : > { %1465 = vrot.lane.b32.xlu0 %v9686_v43, %s8987_s19 }
 0x34f   : > { %8402 = vrot.lane.b32.xlu1 %v9633_v39, %s8988_s22 }
 0x350   : > { %1469 = vrot.lane.b32.xlu0 %v9699_v8, %s8987_s19 }
 0x353   : > { %8412 = vrot.lane.b32.xlu1 %v9664_v59, %s8988_s22 }
 0x354   : > { %8407 = vrot.lane.b32.xlu0 %v9633_v39, %s8989_s23 }
 0x357   : > { %1471 = vrot.lane.b32.xlu1 %v9704_v63, %s8987_s19 }
 0x358   : > { %8417 = vrot.lane.b32.xlu0 %v9664_v59, %s8989_s23 }
 0x35b   : > { %8427 = vrot.lane.b32.xlu1 %v9694_v7, %s8989_s23 }
 0x35c   : > { %8422 = vrot.lane.b32.xlu0 %v9694_v7, %s8988_s22 }
 0x35f   : > { %8437 = vrot.lane.b32.xlu1 %v9712_v33, %s8989_s23 }
 0x360   : > { %8432 = vrot.lane.b32.xlu0 %v9712_v33, %s8988_s22 }
 0x363   : > { %1833 = vrot.lane.b32.xlu1 %v9622_v46, %s8990_s24 }
 0x364   : > { %1831 = vrot.lane.b32.xlu0 %v9618_v36, %s8990_s24 }
 0x365   : > { %v8283_v10 = vpop.permute.xlu0 %8282  ;;  %v8288_v58 = vpop.permute.xlu1 %8287 }
 0x366   : > { %v8285_v37 = vunpack.i.h.bf16 %v8283_v10  ;;  %v8284_v54 = vunpack.i.l.bf16 %v8283_v10  ;;  %v8290_v12 = vunpack.i.h.bf16 %v8288_v58  ;;  %v8289_v0 = vunpack.i.l.bf16 %v8288_v58 }
 0x367   : > { %1835 = vrot.lane.b32.xlu1 %v9650_v16, %s8990_s24 }
 0x368   : > { %1845 = vrot.lane.b32.xlu0 %v9646_v2, %s8990_s24  ;;  %v780_v18 = vsel %vm12077_vm1, %v8284_v54, %v8285_v37  ;;  %v805_v30 = vsel %vm12076_vm0, %v8289_v0, %v8290_v12 }
 0x369   : > { %v9832_v22 = vpop.permute.xlu1 %8297  ;;  %v7823_v9 = vpack.c.bf16 %v805_v30, %v780_v18 }
 0x36a   : > { %v9830_v4 = vpop.permute.xlu0 %8292  ;;  %v12070_v58 = vunpack.i.l.bf16 %v9832_v22  ;;  %v8300_v15 = vunpack.i.h.bf16 %v9832_v22 }
 0x36b   : > { %v12071_v10 = vunpack.i.l.bf16 %v9830_v4  ;;  %1839 = vrot.lane.b32.xlu1 %v9690_v50, %s8990_s24  ;;  %v8295_v6 = vunpack.i.h.bf16 %v9830_v4  ;;  %7824 = vmatprep.subr.bf16.mxu0 %v7823_v9 }
 0x36c   : > { %1837 = vrot.lane.b32.xlu0 %v9686_v43, %s8990_s24  ;;  %v806_v18 = vsel %vm12076_vm0, %v12070_v58, %v8289_v0 }
 0x36d   : > { %v781_v30 = vsel %vm12077_vm1, %v12071_v10, %v8284_v54  ;;  %v8308_v19 = vpop.permute.xlu1 %8307  ;;  %v779_v0 = vsel %vm12077_vm1, %v8285_v37, %v8295_v6 }
 0x36e   : > { %v8303_v29 = vpop.permute.xlu0 %8302  ;;  %v7825_v52 = vpack.c.bf16 %v806_v18, %v781_v30  ;;  %v8309_v53 = vunpack.i.l.bf16 %v8308_v19  ;;  %v804_v30 = vsel %vm12076_vm0, %v8290_v12, %v8300_v15 }
 0x36f   : > { %v8304_v35 = vunpack.i.l.bf16 %v8303_v29  ;;  %8442 = vrot.lane.b32.xlu1 %v9633_v39, %s8991_s27  ;;  %v8305_v1 = vunpack.i.h.bf16 %v8303_v29 }
 0x370   : > { %1841 = vrot.lane.b32.xlu0 %v9699_v8, %s8990_s24  ;;  %7826 = vmatpush1.bf16.msra.mxu0 %v7825_v52  ;;  %v803_v54 = vsel %vm12076_vm0, %v8300_v15, %v8309_v53  ;;  %v7829_v52 = vpack.c.bf16 %v804_v30, %v779_v0  ;;  %v9889_v30 = vld [vmem:[%s11998_s1 + $0x8] sm:$0xff] }
 0x371   : > { %v778_v9 = vsel %vm12077_vm1, %v8295_v6, %v8304_v35  ;;  %v8318_v58 = vpop.permute.xlu1 %8317  ;;  %v8310_v6 = vunpack.i.h.bf16 %v8308_v19  ;;  %v777_v19 = vsel %vm12077_vm1, %v8304_v35, %v8305_v1 }
 0x372   : > { %v8313_v18 = vpop.permute.xlu0 %8312  ;;  %v7827_v10 = vpack.c.bf16 %v803_v54, %v778_v9  ;;  %v8319_v3 = vunpack.i.l.bf16 %v8318_v58  ;;  %v8320_v54 = vunpack.i.h.bf16 %v8318_v58 }
 0x373   : > { %1843 = vrot.lane.b32.xlu1 %v9704_v63, %s8990_s24  ;;  %v8314_v39 = vunpack.i.l.bf16 %v8313_v18  ;;  %v8315_v9 = vunpack.i.h.bf16 %v8313_v18  ;;  %v12275_v18 = vunpack.i.l.bf16 %v9830_v4 }
 0x374   : > { %8447 = vrot.lane.b32.xlu0 %v9664_v59, %s8991_s27  ;;  %7828 = vmatprep.subr.bf16.mxu1 %v7827_v10  ;;  %v801_v29 = vsel %vm12076_vm0, %v8310_v6, %v8319_v3  ;;  %v802_v10 = vsel %vm12076_vm0, %v8309_v53, %v8310_v6  ;;  %v12276_v6 = vunpack.i.l.bf16 %v9832_v22 }
 0x375   : > { %7830 = vmatpush1.bf16.msra.mxu1 %v7829_v52  ;;  %v810_v15 = vpop.permute.xlu1 %809  ;;  %v776_v59 = vsel %vm12077_vm1, %v8305_v1, %v8314_v39  ;;  %v7833_v53 = vpack.c.bf16 %v802_v10, %v777_v19  ;;  %v774_v52 = vsel %vm12077_vm1, %v8315_v9, %v12275_v18  ;;  %v12277_v19 = vmov 0.0  }
 0x376   : > { %v808_v37 = vpop.permute.xlu0 %807  ;;  %v7831_v1 = vpack.c.bf16 %v801_v29, %v776_v59  ;;  %v800_v59 = vsel %vm12076_vm0, %v8319_v3, %v8320_v54 }
 0x377   : > { %v830_v12 = vsel %vm12081_vm10, %v808_v37, %v810_v15  ;;  %8457 = vrot.lane.b32.xlu1 %v9712_v33, %s8991_s27 }
 0x378   : > { %8452 = vrot.lane.b32.xlu0 %v9694_v7, %s8991_s27  ;;  %842 = vmatprep.subr.mxu0 %v830_v12  ;;  %v775_v12 = vsel %vm12077_vm1, %v8314_v39, %v8315_v9  ;;  %vm12089_vm1 = vcmp.lt.s32.totalorder %v9084_v17, 111 }
 0x379   : > { %v812_v33 = vpop.permute.xlu1 %811  ;;  %v7837_v10 = vpack.c.bf16 %v800_v59, %v775_v12 }
 0x37a   : > { %v9881_v0 = vpop.permute.xlu0 %821  ;;  %v829_v22 = vsel %vm12081_vm10, %v810_v15, %v812_v33 }
 0x37b   : > { %v831_v7 = vsel %vm12081_vm10, %v9881_v0, %v808_v37  ;;  %2182 = vrot.lane.b32.xlu1 %v9650_v16, %s12087_s30  ;;  %v799_v37 = vsel %vm12076_vm0, %v8320_v54, %v12276_v6  ;;  %vm12090_vm0 = vcmp.lt.s32.totalorder %v9084_v17, 110 }
 0x37c   : > { %2180 = vrot.lane.b32.xlu0 %v9622_v46, %s12087_s30  ;;  %843 = vmatpush1.msra.mxu0 %v831_v7  ;;  %v7835_v4 = vpack.c.bf16 %v799_v37, %v774_v52 }
 0x37d   : > { %7832 = vmatprep.subr.bf16.mxu0 %v7831_v1  ;;  %v9895_v58 = vpop.permute.xlu1 %8322  ;;  %7730 = vmatmul.mubr.msk.f32.vlgmr.msra.gmra.mrb[0].mxu0 %vm12138_vm11, %v9889_v30 }
 0x37e   : > { %v814_v35 = vpop.permute.xlu0 %813  ;;  %7834 = vmatpush1.bf16.msra.mxu0 %v7833_v53  ;;  %1044 = vmatprep.mubr.f32.mxu0 %v12277_v19  ;;  %v8325_v9 = vunpack.i.h.bf16 %v9895_v58  ;;  %v8324_v54 = vunpack.i.l.bf16 %v9895_v58  ;;  %v9937_v58 = vpack.i.bf16 %v9650_v16, %v9622_v46 }
 0x37f   : > { %v828_v29 = vsel %vm12081_vm10, %v812_v33, %v814_v35  ;;  %2184 = vrot.lane.b32.xlu1 %v9686_v43, %s12087_s30 }
 0x380   : > { %2178 = vrot.lane.b32.xlu0 %v9618_v36, %s12087_s30  ;;  %913 = vmatprep.subr.mxu1 %v828_v29  ;;  %v704_v52 = vsel %vm12089_vm1, %v8324_v54, %v8325_v9 }
 0x381   : > { %914 = vmatpush1.msra.mxu1 %v829_v22  ;;  %v816_v3 = vpop.permute.xlu1 %815  ;;  %v9956_v22 = vpack.i.bf16 %v9686_v43, %v9618_v36 }
 0x382   : > { %v8328_v39 = vpop.permute.xlu0 %8327  ;;  %7836 = vmatprep.subr.bf16.mxu1 %v7835_v4  ;;  %7731 = vmatmul.mubr.msk.f32.vlgmr.msra.gmra.mrb[0].mxu1 %vm12138_vm11, %v9889_v30  ;;  %v827_v6 = vsel %vm12081_vm10, %v814_v35, %v816_v3 }
 0x383   : > { %v8330_v7 = vunpack.i.h.bf16 %v8328_v39  ;;  %v8329_v1 = vunpack.i.l.bf16 %v8328_v39  ;;  %7838 = vmatpush1.bf16.msra.mxu1 %v7837_v10  ;;  %2188 = vrot.lane.b32.xlu1 %v9699_v8, %s12087_s30 }
 0x384   : > { %2186 = vrot.lane.b32.xlu0 %v9690_v50, %s12087_s30  ;;  %1115 = vmatprep.mubr.f32.mxu1 %v12277_v19 }
 0x385   : > { %v729_v15 = vsel %vm12090_vm0, %v8329_v1, %v8330_v7  ;;  %v9933_v53 = vpop.permute.xlu1 %8332 }
 0x386   : > { %v818_v33 = vpop.permute.xlu0 %817  ;;  %v7839_v37 = vpack.c.bf16 %v729_v15, %v704_v52  ;;  %v12078_v12 = vunpack.i.l.bf16 %v9933_v53  ;;  %v8335_v15 = vunpack.i.h.bf16 %v9933_v53 }
 0x387   : > { %v826_v18 = vsel %vm12081_vm10, %v816_v3, %v818_v33  ;;  %8462 = vrot.lane.b32.xlu1 %v9937_v58, %s12098_s28 }
 0x388   : > { %984 = vmatprep.subr.mxu0 %v826_v18  ;;  %2190 = vrot.lane.b32.xlu0 %v9704_v63, %s12087_s30  ;;  %v705_v39 = vsel %vm12089_vm1, %v12078_v12, %v8324_v54 }
 0x389   : > { %985 = vmatpush1.msra.mxu0 %v827_v6  ;;  %v9952_v29 = vpop.permute.xlu1 %8342 }
 0x38a   : > { %v9950_v59 = vpop.permute.xlu0 %8337  ;;  %7840 = vmatprep.subr.bf16.mxu0 %v7839_v37  ;;  %7732 = vmatmul.mubr.msk.f32.vlgmr.msra.gmra.mrb[2].mxu0 %vm12138_vm11, %v9889_v30  ;;  %v8344_v10 = vunpack.i.l.bf16 %v9952_v29 }
 0x38b   : > { %v12079_v35 = vunpack.i.l.bf16 %v9950_v59  ;;  %1189 = vmatprep.mubr.f32.mxu0 %v12277_v19  ;;  %v8340_v4 = vunpack.i.h.bf16 %v9950_v59  ;;  %8472 = vrot.lane.b32.xlu1 %v9956_v22, %s12098_s28 }
 0x38c   : > { %8467 = vrot.lane.b32.xlu0 %v9937_v58, %s12084_s29 }
 0x38d   : > { %v730_v3 = vsel %vm12090_vm0, %v12079_v35, %v8329_v1  ;;  %v820_v52 = vpop.permute.xlu1 %819  ;;  %v728_v1 = vsel %vm12090_vm0, %v8330_v7, %v8340_v4 }
 0x38e   : > { %v8348_v18 = vpop.permute.xlu0 %8347  ;;  %v7841_v6 = vpack.c.bf16 %v730_v3, %v705_v39  ;;  %v824_v54 = vsel %vm12081_vm10, %v820_v52, %v9881_v0  ;;  %v825_v12 = vsel %vm12081_vm10, %v818_v33, %v820_v52  ;;  %v702_v39 = vsel %vm12089_vm1, %v8335_v15, %v8344_v10 }
 0x38f   : > { %v8349_v37 = vunpack.i.l.bf16 %v8348_v18  ;;  %2192 = vrot.lane.b32.xlu1 %v9646_v2, %s12087_s30  ;;  %1055 = vmatprep.subr.mxu1 %v824_v54  ;;  %v703_v33 = vsel %vm12089_vm1, %v8325_v9, %v8335_v15  ;;  %v9996_v52 = vpack.i.bf16 %v9699_v8, %v9690_v50  ;;  %vm12091_vm10 = vcmp.lt.s32.totalorder %v9084_v17, 109  ;;  %s12096_s30 = smov 117  }
 0x390   : > { %8477 = vrot.lane.b32.xlu0 %v9956_v22, %s12084_s29  ;;  %7842 = vmatpush1.bf16.msra.mxu0 %v7841_v6  ;;  %v7845_v6 = vpack.c.bf16 %v728_v1, %v703_v33  ;;  %v8345_v9 = vunpack.i.h.bf16 %v9952_v29 }
 0x391   : > { %v727_v0 = vsel %vm12090_vm0, %v8340_v4, %v8349_v37  ;;  %1056 = vmatpush1.msra.mxu1 %v825_v12  ;;  %v8358_v7 = vpop.permute.xlu1 %8357  ;;  %v8350_v12 = vunpack.i.h.bf16 %v8348_v18 }
 0x392   : > { %v8353_v3 = vpop.permute.xlu0 %8352  ;;  %v7843_v54 = vpack.c.bf16 %v727_v0, %v702_v39  ;;  %7733 = vmatmul.mubr.msk.f32.vlgmr.msra.gmra.mrb[2].mxu1 %vm12138_vm11, %v9889_v30  ;;  %v8359_v57 = vunpack.i.l.bf16 %v8358_v7  ;;  %v10008_v30 = vpack.i.bf16 %v9646_v2, %v9704_v63  ;;  %v8360_v0 = vunpack.i.h.bf16 %v8358_v7 }
 0x393   : > { %v8354_v35 = vunpack.i.l.bf16 %v8353_v3  ;;  %8487 = vrot.lane.b32.xlu1 %v9996_v52, %s12084_s29  ;;  %1260 = vmatprep.mubr.f32.mxu1 %v12277_v19  ;;  %v8355_v18 = vunpack.i.h.bf16 %v8353_v3  ;;  %v726_v33 = vsel %vm12090_vm0, %v8349_v37, %v8350_v12  ;;  %v701_v3 = vsel %vm12089_vm1, %v8344_v10, %v8345_v9 }
 0x394   : > { %7844 = vmatprep.subr.bf16.mxu1 %v7843_v54  ;;  %8482 = vrot.lane.b32.xlu0 %v9996_v52, %s12098_s28  ;;  %v725_v29 = vsel %vm12090_vm0, %v8350_v12, %v8359_v57  ;;  %v7849_v37 = vpack.c.bf16 %v726_v33, %v701_v3  ;;  %v12278_v7 = vunpack.i.l.bf16 %v9933_v53 }
 0x395   : > { %7846 = vmatpush1.bf16.msra.mxu1 %v7845_v6  ;;  %v734_v15 = vpop.permute.xlu1 %733  ;;  %v700_v39 = vsel %vm12089_vm1, %v8345_v9, %v8354_v35  ;;  %v699_v9 = vsel %vm12089_vm1, %v8354_v35, %v8355_v18 }
 0x396   : > { %v732_v4 = vpop.permute.xlu0 %731  ;;  %v698_v12 = vsel %vm12089_vm1, %v8355_v18, %v12278_v7  ;;  %vm12101_vm1 = vcmp.lt.s32.totalorder %v9084_v17, 91 }
 0x397   : > { %v754_v1 = vsel %vm12091_vm10, %v732_v4, %v734_v15  ;;  %8497 = vrot.lane.b32.xlu1 %v10008_v30, %s12084_s29  ;;  %s12094_s29 = smov 38  }
 0x398   : > { %1129 = vmatprep.subr.mxu0 %v754_v1  ;;  %8492 = vrot.lane.b32.xlu0 %v10008_v30, %s12098_s28  ;;  %v7847_v1 = vpack.c.bf16 %v725_v29, %v700_v39  ;;  %s12107_s28 = smov 37  }
 0x399   : > { %v736_v6 = vpop.permute.xlu1 %735 }
 0x39a   : > { %v746_v54 = vpop.permute.xlu0 %745 }
 0x39b   : > { %v755_v47 = vsel %vm12091_vm10, %v746_v54, %v732_v4  ;;  %2554 = vrot.lane.b32.xlu1 %v9650_v16, %s12096_s30  ;;  %v12279_v4 = vunpack.i.l.bf16 %v9950_v59  ;;  %v753_v59 = vsel %vm12091_vm10, %v734_v15, %v736_v6 }
 0x39c   : > { %1130 = vmatpush1.msra.mxu0 %v755_v47  ;;  %2552 = vrot.lane.b32.xlu0 %v9622_v46, %s12096_s30  ;;  %v724_v47 = vsel %vm12090_vm0, %v8359_v57, %v8360_v0 }
 0x39d   : > { %7848 = vmatprep.subr.bf16.mxu0 %v7847_v1  ;;  %v723_v10 = vsel %vm12090_vm0, %v8360_v0, %v12279_v4  ;;  %v740_v29 = vpop.permute.xlu1 %739  ;;  %7734 = vmatmul.mubr.msk.f32.vlgmr.msra.gmra.mrb[0].mxu0 %vm12138_vm11, %v10028_v42  ;;  %v7853_v57 = vpack.c.bf16 %v724_v47, %v699_v9  ;;  %vm12100_vm0 = vcmp.lt.s32.totalorder %v9084_v17, 90 }
 0x39e   : > { %v738_v39 = vpop.permute.xlu0 %737  ;;  %7850 = vmatpush1.bf16.msra.mxu0 %v7849_v37  ;;  %1331 = vmatprep.mubr.f32.mxu0 %v12277_v19  ;;  %v7851_v35 = vpack.c.bf16 %v723_v10, %v698_v12 }
 0x39f   : > { %v752_v53 = vsel %vm12091_vm10, %v736_v6, %v738_v39  ;;  %2556 = vrot.lane.b32.xlu1 %v9686_v43, %s12096_s30  ;;  %v751_v15 = vsel %vm12091_vm10, %v738_v39, %v740_v29 }
 0x3a0   : > { %1200 = vmatprep.subr.mxu1 %v752_v53  ;;  %2550 = vrot.lane.b32.xlu0 %v9618_v36, %s12096_s30 }
 0x3a1   : > { %1201 = vmatpush1.msra.mxu1 %v753_v59  ;;  %v8363_v0 = vpop.permute.xlu1 %8362 }
 0x3a2   : > { %v742_v18 = vpop.permute.xlu0 %741  ;;  %7852 = vmatprep.subr.bf16.mxu1 %v7851_v35  ;;  %7735 = vmatmul.mubr.msk.f32.vlgmr.msra.gmra.mrb[0].mxu1 %vm12138_vm11, %v10028_v42  ;;  %v8365_v6 = vunpack.i.h.bf16 %v8363_v0  ;;  %v8364_v1 = vunpack.i.l.bf16 %v8363_v0 }
 0x3a3   : > { %7854 = vmatpush1.bf16.msra.mxu1 %v7853_v57  ;;  %v750_v33 = vsel %vm12091_vm10, %v740_v29, %v742_v18  ;;  %1402 = vmatprep.mubr.f32.mxu1 %v12277_v19 }
 0x3a4   : > { %2560 = vrot.lane.b32.xlu1 %v9699_v8, %s12096_s30  ;;  %1271 = vmatprep.subr.mxu0 %v750_v33  ;;  %v1432_v10 = vsel %vm12101_vm1, %v8364_v1, %v8365_v6 }
 0x3a5   : > { %2558 = vrot.lane.b32.xlu0 %v9690_v50, %s12096_s30  ;;  %1272 = vmatpush1.msra.mxu0 %v751_v15  ;;  %v10071_v37 = vpop.permute.xlu1 %8372 }
 0x3a6   : > { %v8368_v3 = vpop.permute.xlu0 %8367  ;;  %7736 = vmatmul.mubr.msk.f32.vlgmr.msra.gmra.mrb[2].mxu0 %vm12138_vm11, %v10028_v42  ;;  %v12093_v4 = vunpack.i.l.bf16 %v10071_v37 }
 0x3a7   : > { %v8370_v7 = vunpack.i.h.bf16 %v8368_v3  ;;  %v8369_v12 = vunpack.i.l.bf16 %v8368_v3  ;;  %1553 = vmatprep.mubr.f32.mxu0 %v12277_v19 }
 0x3a8   : > { %8502 = vrot.lane.b32.xlu1 %v9937_v58, %s12109_s17  ;;  %v1433_v0 = vsel %vm12101_vm1, %v12093_v4, %v8364_v1 }
 0x3a9   : > { %2562 = vrot.lane.b32.xlu0 %v9704_v63, %s12096_s30  ;;  %v1457_v9 = vsel %vm12100_vm0, %v8369_v12, %v8370_v7  ;;  %v744_v39 = vpop.permute.xlu1 %743 }
 0x3aa   : > { %v10086_v47 = vpop.permute.xlu0 %8377  ;;  %v7855_v29 = vpack.c.bf16 %v1457_v9, %v1432_v10  ;;  %v748_v59 = vsel %vm12091_vm10, %v744_v39, %v746_v54  ;;  %v749_v35 = vsel %vm12091_vm10, %v742_v18, %v744_v39  ;;  %v8375_v54 = vunpack.i.h.bf16 %v10071_v37 }
 0x3ab   : > { %v12092_v53 = vunpack.i.l.bf16 %v10086_v47  ;;  %v8380_v57 = vunpack.i.h.bf16 %v10086_v47  ;;  %1342 = vmatprep.subr.mxu1 %v748_v59  ;;  %vm12102_vm10 = vcmp.lt.s32.totalorder %v9084_v17, 89 }
 0x3ac   : > { %8512 = vrot.lane.b32.xlu1 %v9956_v22, %s12109_s17  ;;  %7856 = vmatprep.subr.bf16.mxu0 %v7855_v29  ;;  %v1431_v29 = vsel %vm12101_vm1, %v8365_v6, %v8375_v54 }
 0x3ad   : > { %v1458_v33 = vsel %vm12100_vm0, %v12092_v53, %v8369_v12  ;;  %8507 = vrot.lane.b32.xlu0 %v9937_v58, %s12094_s29  ;;  %1343 = vmatpush1.msra.mxu1 %v749_v35  ;;  %v8388_v15 = vpop.permute.xlu1 %8387  ;;  %v1456_v1 = vsel %vm12100_vm0, %v8370_v7, %v8380_v57 }
 0x3ae   : > { %v8383_v18 = vpop.permute.xlu0 %8382  ;;  %v7857_v3 = vpack.c.bf16 %v1458_v33, %v1433_v0  ;;  %v8389_v9 = vunpack.i.l.bf16 %v8388_v15  ;;  %7737 = vmatmul.mubr.msk.f32.vlgmr.msra.gmra.mrb[2].mxu1 %vm12138_vm11, %v10028_v42  ;;  %v7861_v7 = vpack.c.bf16 %v1456_v1, %v1431_v29  ;;  %v8390_v6 = vunpack.i.h.bf16 %v8388_v15 }
 0x3af   : > { %v8384_v10 = vunpack.i.l.bf16 %v8383_v18  ;;  %1624 = vmatprep.mubr.f32.mxu1 %v12277_v19 }
 0x3b0   : > { %2564 = vrot.lane.b32.xlu1 %v9646_v2, %s12096_s30  ;;  %7858 = vmatpush1.bf16.msra.mxu0 %v7857_v3  ;;  %v1455_v39 = vsel %vm12100_vm0, %v8380_v57, %v8389_v9  ;;  %v8385_v57 = vunpack.i.h.bf16 %v8383_v18  ;;  %v1454_v15 = vsel %vm12100_vm0, %v8389_v9, %v8390_v6  ;;  %v12280_v9 = vunpack.i.l.bf16 %v10071_v37  ;;  %s12115_s30 = smov 29  }
 0x3b1   : > { %8517 = vrot.lane.b32.xlu0 %v9956_v22, %s12094_s29  ;;  %v1430_v12 = vsel %vm12101_vm1, %v8375_v54, %v8384_v10  ;;  %v8398_v59 = vpop.permute.xlu1 %8397 }
 0x3b2   : > { %v8393_v42 = vpop.permute.xlu0 %8392  ;;  %v7859_v35 = vpack.c.bf16 %v1455_v39, %v1430_v12  ;;  %v8399_v33 = vunpack.i.l.bf16 %v8398_v59  ;;  %v1429_v18 = vsel %vm12101_vm1, %v8384_v10, %v8385_v57 }
 0x3b3   : > { %v8394_v0 = vunpack.i.l.bf16 %v8393_v42  ;;  %v8395_v29 = vunpack.i.h.bf16 %v8393_v42  ;;  %v10146_v42 = vld [vmem:[%s11998_s1 + $0x10] sm:$0xff]  ;;  %v7865_v10 = vpack.c.bf16 %v1454_v15, %v1429_v18 }
 0x3b4   : > { %8527 = vrot.lane.b32.xlu1 %v9996_v52, %s12094_s29  ;;  %7860 = vmatprep.subr.bf16.mxu1 %v7859_v35  ;;  %v1453_v39 = vsel %vm12100_vm0, %v8390_v6, %v8399_v33  ;;  %v8400_v35 = vunpack.i.h.bf16 %v8398_v59 }
 0x3b5   : > { %8522 = vrot.lane.b32.xlu0 %v9996_v52, %s12109_s17  ;;  %7862 = vmatpush1.bf16.msra.mxu1 %v7861_v7  ;;  %v1462_v3 = vpop.permute.xlu1 %1461  ;;  %v1428_v1 = vsel %vm12101_vm1, %v8385_v57, %v8394_v0  ;;  %v1426_v59 = vsel %vm12101_vm1, %v8395_v29, %v12280_v9  ;;  %v12281_v57 = vunpack.i.l.bf16 %v10086_v47 }
 0x3b6   : > { %v1460_v54 = vpop.permute.xlu0 %1459  ;;  %v7863_v4 = vpack.c.bf16 %v1453_v39, %v1428_v1  ;;  %v1452_v1 = vsel %vm12100_vm0, %v8399_v33, %v8400_v35 }
 0x3b7   : > { %v1482_v12 = vsel %vm12102_vm10, %v1460_v54, %v1462_v3  ;;  %v1451_v6 = vsel %vm12100_vm0, %v8400_v35, %v12281_v57  ;;  %vm12118_vm0 = vcmp.lt.s32.totalorder %v9084_v17, 11 }
 0x3b8   : > { %8537 = vrot.lane.b32.xlu1 %v10008_v30, %s12094_s29  ;;  %1493 = vmatprep.subr.mxu0 %v1482_v12  ;;  %v7867_v47 = vpack.c.bf16 %v1451_v6, %v1426_v59  ;;  %s12105_s29 = smov 28  }
 0x3b9   : > { %8532 = vrot.lane.b32.xlu0 %v10008_v30, %s12109_s17  ;;  %v1464_v53 = vpop.permute.xlu1 %1463  ;;  %s12113_s17 = smov 27  }
 0x3ba   : > { %v1474_v7 = vpop.permute.xlu0 %1473 }
 0x3bb   : > { %v1483_v12 = vsel %vm12102_vm10, %v1474_v7, %v1460_v54  ;;  %v1427_v54 = vsel %vm12101_vm1, %v8394_v0, %v8395_v29  ;;  %vm12111_vm1 = vcmp.lt.s32.totalorder %v9084_v17, 10 }
 0x3bc   : > { %2926 = vrot.lane.b32.xlu1 %v9650_v16, %s12107_s28  ;;  %1494 = vmatpush1.msra.mxu0 %v1483_v12  ;;  %v7869_v0 = vpack.c.bf16 %v1452_v1, %v1427_v54 }
 0x3bd   : > { %2924 = vrot.lane.b32.xlu0 %v9622_v46, %s12107_s28  ;;  %7864 = vmatprep.subr.bf16.mxu0 %v7863_v4  ;;  %v1468_v12 = vpop.permute.xlu1 %1467  ;;  %v1481_v4 = vsel %vm12102_vm10, %v1462_v3, %v1464_v53 }
 0x3be   : > { %v1466_v39 = vpop.permute.xlu0 %1465  ;;  %7739 = vmatmul.mubr.msk.f32.vlgmr.msra.gmra.mrb[0].mxu0 %vm12138_vm11, %v10146_v42 }
 0x3bf   : > { %7866 = vmatpush1.bf16.msra.mxu0 %v7865_v10  ;;  %v1480_v37 = vsel %vm12102_vm10, %v1464_v53, %v1466_v39  ;;  %1695 = vmatprep.mubr.f32.mxu0 %v12277_v19  ;;  %v1479_v53 = vsel %vm12102_vm10, %v1466_v39, %v1468_v12 }
 0x3c0   : > { %2928 = vrot.lane.b32.xlu1 %v9686_v43, %s12107_s28  ;;  %1564 = vmatprep.subr.mxu1 %v1480_v37 }
 0x3c1   : > { %2922 = vrot.lane.b32.xlu0 %v9618_v36, %s12107_s28  ;;  %1565 = vmatpush1.msra.mxu1 %v1481_v4  ;;  %v8403_v29 = vpop.permute.xlu1 %8402 }
 0x3c2   : > { %v1470_v33 = vpop.permute.xlu0 %1469  ;;  %7868 = vmatprep.subr.bf16.mxu1 %v7867_v47  ;;  %7740 = vmatmul.mubr.msk.f32.vlgmr.msra.gmra.mrb[0].mxu1 %vm12138_vm11, %v10146_v42  ;;  %v8405_v3 = vunpack.i.h.bf16 %v8403_v29  ;;  %v8404_v18 = vunpack.i.l.bf16 %v8403_v29 }
 0x3c3   : > { %7870 = vmatpush1.bf16.msra.mxu1 %v7869_v0  ;;  %v1478_v35 = vsel %vm12102_vm10, %v1468_v12, %v1470_v33  ;;  %1766 = vmatprep.mubr.f32.mxu1 %v12277_v19 }
 0x3c4   : > { %2932 = vrot.lane.b32.xlu1 %v9699_v8, %s12107_s28  ;;  %1635 = vmatprep.subr.mxu0 %v1478_v35  ;;  %v1804_v6 = vsel %vm12118_vm0, %v8404_v18, %v8405_v3 }
 0x3c5   : > { %2930 = vrot.lane.b32.xlu0 %v9690_v50, %s12107_s28  ;;  %1636 = vmatpush1.msra.mxu0 %v1479_v53  ;;  %v10187_v10 = vpop.permute.xlu1 %8412 }
 0x3c6   : > { %v8408_v15 = vpop.permute.xlu0 %8407  ;;  %7741 = vmatmul.mubr.msk.f32.vlgmr.msra.gmra.mrb[2].mxu0 %vm12138_vm11, %v10146_v42  ;;  %v12104_v57 = vunpack.i.l.bf16 %v10187_v10 }
 0x3c7   : > { %v8410_v9 = vunpack.i.h.bf16 %v8408_v15  ;;  %v8409_v59 = vunpack.i.l.bf16 %v8408_v15  ;;  %1925 = vmatprep.mubr.f32.mxu0 %v12277_v19 }
 0x3c8   : > { %8542 = vrot.lane.b32.xlu1 %v9937_v58, %s12115_s30  ;;  %v1805_v29 = vsel %vm12118_vm0, %v12104_v57, %v8404_v18 }
 0x3c9   : > { %2934 = vrot.lane.b32.xlu0 %v9704_v63, %s12107_s28  ;;  %v1829_v54 = vsel %vm12111_vm1, %v8409_v59, %v8410_v9  ;;  %v1472_v39 = vpop.permute.xlu1 %1471 }
 0x3ca   : > { %v10202_v1 = vpop.permute.xlu0 %8417  ;;  %v7871_v12 = vpack.c.bf16 %v1829_v54, %v1804_v6  ;;  %v1476_v4 = vsel %vm12102_vm10, %v1472_v39, %v1474_v7  ;;  %v1477_v47 = vsel %vm12102_vm10, %v1470_v33, %v1472_v39  ;;  %v8415_v7 = vunpack.i.h.bf16 %v10187_v10 }
 0x3cb   : > { %v12103_v37 = vunpack.i.l.bf16 %v10202_v1  ;;  %v8420_v0 = vunpack.i.h.bf16 %v10202_v1  ;;  %1706 = vmatprep.subr.mxu1 %v1476_v4  ;;  %vm12112_vm10 = vcmp.lt.s32.totalorder %v9084_v17, 9 }
 0x3cc   : > { %8552 = vrot.lane.b32.xlu1 %v9956_v22, %s12115_s30  ;;  %7872 = vmatprep.subr.bf16.mxu0 %v7871_v12  ;;  %v1803_v12 = vsel %vm12118_vm0, %v8405_v3, %v8415_v7 }
 0x3cd   : > { %v1830_v35 = vsel %vm12111_vm1, %v12103_v37, %v8409_v59  ;;  %8547 = vrot.lane.b32.xlu0 %v9937_v58, %s12105_s29  ;;  %1707 = vmatpush1.msra.mxu1 %v1477_v47  ;;  %v8428_v53 = vpop.permute.xlu1 %8427  ;;  %v1828_v18 = vsel %vm12111_vm1, %v8410_v9, %v8420_v0 }
 0x3ce   : > { %v8423_v33 = vpop.permute.xlu0 %8422  ;;  %v7873_v15 = vpack.c.bf16 %v1830_v35, %v1805_v29  ;;  %v8429_v54 = vunpack.i.l.bf16 %v8428_v53  ;;  %7742 = vmatmul.mubr.msk.f32.vlgmr.msra.gmra.mrb[2].mxu1 %vm12138_vm11, %v10146_v42  ;;  %v7877_v9 = vpack.c.bf16 %v1828_v18, %v1803_v12  ;;  %v8430_v3 = vunpack.i.h.bf16 %v8428_v53 }
 0x3cf   : > { %v8424_v6 = vunpack.i.l.bf16 %v8423_v33  ;;  %1996 = vmatprep.mubr.f32.mxu1 %v12277_v19 }
 0x3d0   : > { %2936 = vrot.lane.b32.xlu1 %v9646_v2, %s12107_s28  ;;  %7874 = vmatpush1.bf16.msra.mxu0 %v7873_v15  ;;  %v1827_v39 = vsel %vm12111_vm1, %v8420_v0, %v8429_v54  ;;  %v8425_v0 = vunpack.i.h.bf16 %v8423_v33  ;;  %v1826_v53 = vsel %vm12111_vm1, %v8429_v54, %v8430_v3  ;;  %v12282_v54 = vunpack.i.l.bf16 %v10187_v10  ;;  %s12133_s28 = smov 19  }
 0x3d1   : > { %8557 = vrot.lane.b32.xlu0 %v9956_v22, %s12105_s29  ;;  %v1802_v59 = vsel %vm12118_vm0, %v8415_v7, %v8424_v6  ;;  %v8438_v4 = vpop.permute.xlu1 %8437 }
 0x3d2   : > { %v8433_v42 = vpop.permute.xlu0 %8432  ;;  %v7875_v47 = vpack.c.bf16 %v1827_v39, %v1802_v59  ;;  %v8439_v35 = vunpack.i.l.bf16 %v8438_v4  ;;  %v1801_v33 = vsel %vm12118_vm0, %v8424_v6, %v8425_v0 }
 0x3d3   : > { %v8434_v29 = vunpack.i.l.bf16 %v8433_v42  ;;  %v8435_v12 = vunpack.i.h.bf16 %v8433_v42  ;;  %v7743_v42 = vld [vmem:[%s11998_s1 + $0x18] sm:$0xff]  ;;  %v7881_v6 = vpack.c.bf16 %v1826_v53, %v1801_v33 }
 0x3d4   : > { %8567 = vrot.lane.b32.xlu1 %v9996_v52, %s12105_s29  ;;  %7876 = vmatprep.subr.bf16.mxu1 %v7875_v47  ;;  %v1825_v39 = vsel %vm12111_vm1, %v8430_v3, %v8439_v35  ;;  %v8440_v47 = vunpack.i.h.bf16 %v8438_v4 }
 0x3d5   : > { %8562 = vrot.lane.b32.xlu0 %v9996_v52, %s12115_s30  ;;  %7878 = vmatpush1.bf16.msra.mxu1 %v7877_v9  ;;  %v1834_v15 = vpop.permute.xlu1 %1833  ;;  %v1800_v18 = vsel %vm12118_vm0, %v8425_v0, %v8434_v29  ;;  %v1798_v4 = vsel %vm12118_vm0, %v8435_v12, %v12282_v54  ;;  %v12283_v0 = vunpack.i.l.bf16 %v10202_v1 }
 0x3d6   : > { %v1832_v7 = vpop.permute.xlu0 %1831  ;;  %v7879_v57 = vpack.c.bf16 %v1825_v39, %v1800_v18  ;;  %v1824_v18 = vsel %vm12111_vm1, %v8439_v35, %v8440_v47 }
 0x3d7   : > { %v1854_v59 = vsel %vm12112_vm10, %v1832_v7, %v1834_v15  ;;  %v1823_v3 = vsel %vm12111_vm1, %v8440_v47, %v12283_v0  ;;  %vm12117_vm1 = vcmp.lt.s32.totalorder %v9084_v17, 1 }
 0x3d8   : > { %8577 = vrot.lane.b32.xlu1 %v10008_v30, %s12105_s29  ;;  %1865 = vmatprep.subr.mxu0 %v1854_v59  ;;  %v7883_v1 = vpack.c.bf16 %v1823_v3, %v1798_v4  ;;  %s12131_s29 = smov 18  }
 0x3d9   : > { %8572 = vrot.lane.b32.xlu0 %v10008_v30, %s12115_s30  ;;  %v1836_v37 = vpop.permute.xlu1 %1835  ;;  %s12542_s30 = smov 17  }
 0x3da   : > { %v1846_v9 = vpop.permute.xlu0 %1845 }
 0x3db   : > { %v1855_v59 = vsel %vm12112_vm10, %v1846_v9, %v1832_v7  ;;  %v1799_v7 = vsel %vm12118_vm0, %v8434_v29, %v8435_v12  ;;  %vm12122_vm0 = vcmp.lt.s32.totalorder %v9084_v17, 118 }
 0x3dc   : > { %3298 = vrot.lane.b32.xlu1 %v9650_v16, %s12113_s17  ;;  %1866 = vmatpush1.msra.mxu0 %v1855_v59  ;;  %v7885_v29 = vpack.c.bf16 %v1824_v18, %v1799_v7 }
 0x3dd   : > { %3296 = vrot.lane.b32.xlu0 %v9622_v46, %s12113_s17  ;;  %7880 = vmatprep.subr.bf16.mxu0 %v7879_v57  ;;  %v1840_v59 = vpop.permute.xlu1 %1839  ;;  %v1853_v57 = vsel %vm12112_vm10, %v1834_v15, %v1836_v37 }
 0x3de   : > { %v1838_v39 = vpop.permute.xlu0 %1837  ;;  %7744 = vmatmul.mubr.msk.f32.vlgmr.msra.gmra.mrb[0].mxu0 %vm12138_vm11, %v7743_v42 }
 0x3df   : > { %7882 = vmatpush1.bf16.msra.mxu0 %v7881_v6  ;;  %v1852_v10 = vsel %vm12112_vm10, %v1836_v37, %v1838_v39  ;;  %2067 = vmatprep.mubr.f32.mxu0 %v12277_v19  ;;  %v1851_v37 = vsel %vm12112_vm10, %v1838_v39, %v1840_v59 }
 0x3e0   : > { %3300 = vrot.lane.b32.xlu1 %v9686_v43, %s12113_s17  ;;  %1936 = vmatprep.subr.mxu1 %v1852_v10 }
 0x3e1   : > { %3294 = vrot.lane.b32.xlu0 %v9618_v36, %s12113_s17  ;;  %1937 = vmatpush1.msra.mxu1 %v1853_v57  ;;  %v8443_v12 = vpop.permute.xlu1 %8442 }
 0x3e2   : > { %v1842_v35 = vpop.permute.xlu0 %1841  ;;  %7884 = vmatprep.subr.bf16.mxu1 %v7883_v1  ;;  %7745 = vmatmul.mubr.msk.f32.vlgmr.msra.gmra.mrb[0].mxu1 %vm12138_vm11, %v7743_v42  ;;  %v8445_v47 = vunpack.i.h.bf16 %v8443_v12  ;;  %v8444_v33 = vunpack.i.l.bf16 %v8443_v12 }
 0x3e3   : > { %7886 = vmatpush1.bf16.msra.mxu1 %v7885_v29  ;;  %v1850_v53 = vsel %vm12112_vm10, %v1840_v59, %v1842_v35  ;;  %2138 = vmatprep.mubr.f32.mxu1 %v12277_v19 }
 0x3e4   : > { %3304 = vrot.lane.b32.xlu1 %v9699_v8, %s12113_s17  ;;  %2007 = vmatprep.subr.mxu0 %v1850_v53  ;;  %v2176_v15 = vsel %vm12117_vm1, %v8444_v33, %v8445_v47 }
 0x3e5   : > { %3302 = vrot.lane.b32.xlu0 %v9690_v50, %s12113_s17  ;;  %2008 = vmatpush1.msra.mxu0 %v1851_v37  ;;  %v1844_v54 = vpop.permute.xlu1 %1843  ;;  %v7887_v4 = vpack.c.bf16 %v9622_v46, %v2176_v15 }
 0x3e6   : > { %v8448_v6 = vpop.permute.xlu0 %8447  ;;  %7746 = vmatmul.mubr.msk.f32.vlgmr.msra.gmra.mrb[2].mxu0 %vm12138_vm11, %v7743_v42  ;;  %v1848_v3 = vsel %vm12112_vm10, %v1844_v54, %v1846_v9  ;;  %v1849_v7 = vsel %vm12112_vm10, %v1842_v35, %v1844_v54  ;;  %vm12119_vm10 = vcmp.lt.s32.totalorder %v9084_v17, 127 }
 0x3e7   : > { %v8449_v0 = vunpack.i.l.bf16 %v8448_v6  ;;  %2272 = vmatprep.mubr.f32.mxu0 %v12277_v19  ;;  %2078 = vmatprep.subr.mxu1 %v1848_v3  ;;  %v8450_v18 = vunpack.i.h.bf16 %v8448_v6 }
 0x3e8   : > { %8582 = vrot.lane.b32.xlu1 %v9937_v58, %s12133_s28  ;;  %7888 = vmatprep.subr.bf16.mxu0 %v7887_v4 }
 0x3e9   : > { %v2177_v39 = vsel %vm12117_vm1, %v8449_v0, %v8444_v33  ;;  %3306 = vrot.lane.b32.xlu0 %v9704_v63, %s12113_s17  ;;  %2079 = vmatpush1.msra.mxu1 %v1849_v7  ;;  %v8458_v59 = vpop.permute.xlu1 %8457  ;;  %v2175_v35 = vsel %vm12117_vm1, %v8445_v47, %v8450_v18 }
 0x3ea   : > { %v8453_v9 = vpop.permute.xlu0 %8452  ;;  %v7889_v10 = vpack.c.bf16 %v9618_v36, %v2177_v39  ;;  %7747 = vmatmul.mubr.msk.f32.vlgmr.msra.gmra.mrb[2].mxu1 %vm12138_vm11, %v7743_v42  ;;  %v8459_v29 = vunpack.i.l.bf16 %v8458_v59  ;;  %v7893_v47 = vpack.c.bf16 %v9650_v16, %v2175_v35  ;;  %v8460_v6 = vunpack.i.h.bf16 %v8458_v59 }
 0x3eb   : > { %v8454_v57 = vunpack.i.l.bf16 %v8453_v9  ;;  %v8455_v1 = vunpack.i.h.bf16 %v8453_v9  ;;  %2343 = vmatprep.mubr.f32.mxu1 %v12277_v19 }
 0x3ec   : > { %8592 = vrot.lane.b32.xlu1 %v9956_v22, %s12133_s28  ;;  %7890 = vmatpush1.bf16.msra.mxu0 %v7889_v10  ;;  %v2170_v9 = vsel %vm12117_vm1, %v8460_v6, %v8449_v0  ;;  %v2171_v59 = vsel %vm12117_vm1, %v8459_v29, %v8460_v6 }
 0x3ed   : > { %8587 = vrot.lane.b32.xlu0 %v9937_v58, %s12131_s29  ;;  %v2174_v12 = vsel %vm12117_vm1, %v8450_v18, %v8454_v57  ;;  %v2183_v42 = vpop.permute.xlu1 %2182  ;;  %v2172_v58 = vsel %vm12117_vm1, %v8455_v1, %v8459_v29  ;;  %v2173_v15 = vsel %vm12117_vm1, %v8454_v57, %v8455_v1  ;;  %v10344_v18 = vld [vmem:[%s11998_s1 + $0x20] sm:$0xff]  ;;  %v7899_v57 = vpack.c.bf16 %v9646_v2, %v2170_v9 }
 0x3ee   : > { %v2181_v33 = vpop.permute.xlu0 %2180  ;;  %v7891_v53 = vpack.c.bf16 %v9686_v43, %v2174_v12  ;;  %v7895_v7 = vpack.c.bf16 %v9699_v8, %v2172_v58  ;;  %v7901_v29 = vpack.c.bf16 %v9704_v63, %v2171_v59  ;;  %vm12123_vm1 = vcmp.lt.s32.totalorder %v9084_v17, 119 }
 0x3ef   : > { %v2200_v37 = vsel %vm12119_vm10, %v2181_v33, %v2183_v42 }
 0x3f0   : > { %3308 = vrot.lane.b32.xlu1 %v9646_v2, %s12113_s17  ;;  %2212 = vmatprep.subr.mxu0 %v2200_v37  ;;  %s12120_s17 = smov 17  }
 0x3f1   : > { %8597 = vrot.lane.b32.xlu0 %v9956_v22, %s12131_s29  ;;  %7892 = vmatprep.subr.bf16.mxu1 %v7891_v53  ;;  %v2185_v4 = vpop.permute.xlu1 %2184  ;;  %v7897_v22 = vpack.c.bf16 %v9690_v50, %v2173_v15 }
 0x3f2   : > { %7894 = vmatpush1.bf16.msra.mxu1 %v7893_v47  ;;  %v2179_v54 = vpop.permute.xlu0 %2178  ;;  %v2199_v0 = vsel %vm12119_vm10, %v2183_v42, %v2185_v4 }
 0x3f3   : > { %v2201_v3 = vsel %vm12119_vm10, %v2179_v54, %v2181_v33 }
 0x3f4   : > { %8607 = vrot.lane.b32.xlu1 %v9996_v52, %s12131_s29  ;;  %2213 = vmatpush1.msra.mxu0 %v2201_v3 }
 0x3f5   : > { %8602 = vrot.lane.b32.xlu0 %v9996_v52, %s12133_s28  ;;  %7896 = vmatprep.subr.bf16.mxu0 %v7895_v7  ;;  %v2189_v39 = vpop.permute.xlu1 %2188 }
 0x3f6   : > { %7749 = vmatmul.mubr.msk.f32.vlgmr.msra.gmra.mrb[0].mxu0 %vm12138_vm11, %v10344_v18  ;;  %v2187_v10 = vpop.permute.xlu0 %2186 }
 0x3f7   : > { %7898 = vmatpush1.bf16.msra.mxu0 %v7897_v22  ;;  %2414 = vmatprep.mubr.f32.mxu0 %v12277_v19  ;;  %v2198_v52 = vsel %vm12119_vm10, %v2185_v4, %v2187_v10 }
 0x3f8   : > { %3670 = vrot.lane.b32.xlu1 %v9650_v16, %s12120_s17  ;;  %2283 = vmatprep.subr.mxu1 %v2198_v52 }
 0x3f9   : > { %3668 = vrot.lane.b32.xlu0 %v9622_v46, %s12120_s17  ;;  %2284 = vmatpush1.msra.mxu1 %v2199_v0  ;;  %v8463_v1 = vpop.permute.xlu1 %8462  ;;  %v2197_v46 = vsel %vm12119_vm10, %v2187_v10, %v2189_v39 }
 0x3fa   : > { %v2191_v35 = vpop.permute.xlu0 %2190  ;;  %7900 = vmatprep.subr.bf16.mxu1 %v7899_v57  ;;  %7750 = vmatmul.mubr.msk.f32.vlgmr.msra.gmra.mrb[0].mxu1 %vm12138_vm11, %v10344_v18  ;;  %v8465_v12 = vunpack.i.h.bf16 %v8463_v1  ;;  %v8464_v33 = vunpack.i.l.bf16 %v8463_v1 }
 0x3fb   : > { %7902 = vmatpush1.bf16.msra.mxu1 %v7901_v29  ;;  %v2196_v16 = vsel %vm12119_vm10, %v2189_v39, %v2191_v35  ;;  %2485 = vmatprep.mubr.f32.mxu1 %v12277_v19 }
 0x3fc   : > { %3653 = vrot.lane.b32.xlu1 %v9704_v63, %s12131_s29  ;;  %2354 = vmatprep.subr.mxu0 %v2196_v16  ;;  %v2522_v15 = vsel %vm12123_vm1, %v8464_v33, %v8465_v12 }
 0x3fd   : > { %8612 = vrot.lane.b32.xlu0 %v10008_v30, %s12133_s28  ;;  %2355 = vmatpush1.msra.mxu0 %v2197_v46  ;;  %v10378_v42 = vpop.permute.xlu1 %8472  ;;  %s12533_s28 = smov 18  }
 0x3fe   : > { %v8468_v53 = vpop.permute.xlu0 %8467  ;;  %7751 = vmatmul.mubr.msk.f32.vlgmr.msra.gmra.mrb[2].mxu0 %vm12138_vm11, %v10344_v18  ;;  %v8474_v47 = vunpack.i.l.bf16 %v10378_v42  ;;  %v8475_v59 = vunpack.i.h.bf16 %v10378_v42 }
 0x3ff   : > { %v8470_v30 = vunpack.i.h.bf16 %v8468_v53  ;;  %v8469_v37 = vunpack.i.l.bf16 %v8468_v53  ;;  %2644 = vmatprep.mubr.f32.mxu0 %v12277_v19 }
 0x400   : > { %3672 = vrot.lane.b32.xlu1 %v9686_v43, %s12120_s17 }
 0x401   : > { %3666 = vrot.lane.b32.xlu0 %v9618_v36, %s12120_s17  ;;  %v2193_v58 = vpop.permute.xlu1 %2192  ;;  %v2547_v6 = vsel %vm12122_vm0, %v8469_v37, %v8470_v30 }
 0x402   : > { %v10395_v4 = vpop.permute.xlu0 %8477  ;;  %v2202_v3 = vsel %vm12119_vm10, %v2193_v58, %v2179_v54  ;;  %v7903_v43 = vpack.c.bf16 %v2547_v6, %v2522_v15  ;;  %v2195_v7 = vsel %vm12119_vm10, %v2191_v35, %v2193_v58  ;;  %v2523_v54 = vsel %vm12123_vm1, %v8474_v47, %v8464_v33 }
 0x403   : > { %v8479_v36 = vunpack.i.l.bf16 %v10395_v4  ;;  %2425 = vmatprep.subr.mxu1 %v2202_v3  ;;  %v8480_v22 = vunpack.i.h.bf16 %v10395_v4  ;;  %v2521_v35 = vsel %vm12123_vm1, %v8465_v12, %v8475_v59  ;;  %vm12124_vm10 = vcmp.lt.s32.totalorder %v9084_v17, 117 }
 0x404   : > { %3655 = vrot.lane.b32.xlu1 %v9646_v2, %s12131_s29  ;;  %7904 = vmatprep.subr.bf16.mxu0 %v7903_v43 }
 0x405   : > { %3674 = vrot.lane.b32.xlu0 %v9690_v50, %s12120_s17  ;;  %v2548_v39 = vsel %vm12122_vm0, %v8479_v36, %v8469_v37  ;;  %2426 = vmatpush1.msra.mxu1 %v2195_v7  ;;  %v8488_v9 = vpop.permute.xlu1 %8487  ;;  %v2546_v57 = vsel %vm12122_vm0, %v8470_v30, %v8480_v22 }
 0x406   : > { %v8483_v10 = vpop.permute.xlu0 %8482  ;;  %v8489_v52 = vunpack.i.l.bf16 %v8488_v9  ;;  %v7905_v0 = vpack.c.bf16 %v2548_v39, %v2523_v54  ;;  %7752 = vmatmul.mubr.msk.f32.vlgmr.msra.gmra.mrb[2].mxu1 %vm12138_vm11, %v10344_v18  ;;  %v7909_v46 = vpack.c.bf16 %v2546_v57, %v2521_v35  ;;  %v8490_v30 = vunpack.i.h.bf16 %v8488_v9  ;;  %v7753_v54 = vld [vmem:[%s11998_s1 + $0x28] sm:$0xff] }
 0x407   : > { %v8484_v50 = vunpack.i.l.bf16 %v8483_v10  ;;  %2715 = vmatprep.mubr.f32.mxu1 %v12277_v19 }
 0x408   : > { %3678 = vrot.lane.b32.xlu1 %v9704_v63, %s12120_s17  ;;  %7906 = vmatpush1.bf16.msra.mxu0 %v7905_v0  ;;  %v2545_v1 = vsel %vm12122_vm0, %v8480_v22, %v8489_v52  ;;  %v2544_v4 = vsel %vm12122_vm0, %v8489_v52, %v8490_v30 }
 0x409   : > { %3676 = vrot.lane.b32.xlu0 %v9699_v8, %s12120_s17  ;;  %v8498_v29 = vpop.permute.xlu1 %8497  ;;  %v2520_v18 = vsel %vm12123_vm1, %v8475_v59, %v8484_v50  ;;  %v8485_v8 = vunpack.i.h.bf16 %v8483_v10 }
 0x40a   : > { %v8493_v63 = vpop.permute.xlu0 %8492  ;;  %v7907_v16 = vpack.c.bf16 %v2545_v1, %v2520_v18  ;;  %v8499_v53 = vunpack.i.l.bf16 %v8498_v29  ;;  %v8500_v43 = vunpack.i.h.bf16 %v8498_v29 }
 0x40b   : > { %v8494_v33 = vunpack.i.l.bf16 %v8493_v63  ;;  %v8495_v3 = vunpack.i.h.bf16 %v8493_v63 }
 0x40c   : > { %7908 = vmatprep.subr.bf16.mxu1 %v7907_v16  ;;  %v2543_v6 = vsel %vm12122_vm0, %v8490_v30, %v8499_v53  ;;  %v2549_v0 = vsel %vm12122_vm0, %v8500_v43, %v8479_v36  ;;  %v2542_v57 = vsel %vm12122_vm0, %v8499_v53, %v8500_v43  ;;  %vm12126_vm0 = vcmp.lt.s32.totalorder %v9084_v17, 39 }
 0x40d   : > { %3680 = vrot.lane.b32.xlu0 %v9646_v2, %s12120_s17  ;;  %7910 = vmatpush1.bf16.msra.mxu1 %v7909_v46  ;;  %v2555_v37 = vpop.permute.xlu1 %2554  ;;  %v2518_v12 = vsel %vm12123_vm1, %v8485_v8, %v8494_v33  ;;  %v2519_v2 = vsel %vm12123_vm1, %v8484_v50, %v8485_v8  ;;  %v2524_v52 = vsel %vm12123_vm1, %v8495_v3, %v8474_v47 }
 0x40e   : > { %v2553_v58 = vpop.permute.xlu0 %2552  ;;  %v7911_v9 = vpack.c.bf16 %v2543_v6, %v2518_v12  ;;  %v7913_v59 = vpack.c.bf16 %v2544_v4, %v2519_v2  ;;  %v2517_v50 = vsel %vm12123_vm1, %v8494_v33, %v8495_v3  ;;  %v7915_v47 = vpack.c.bf16 %v2549_v0, %v2524_v52 }
 0x40f   : > { %v2572_v15 = vsel %vm12124_vm10, %v2553_v58, %v2555_v37  ;;  %v7917_v18 = vpack.c.bf16 %v2542_v57, %v2517_v50  ;;  %vm12125_vm1 = vcmp.lt.s32.totalorder %v9084_v17, 38 }
 0x410   : > { %2584 = vmatprep.subr.mxu0 %v2572_v15 }
 0x411   : > { %v2557_v7 = vpop.permute.xlu1 %2556 }
 0x412   : > { %v2551_v22 = vpop.permute.xlu0 %2550  ;;  %v2571_v42 = vsel %vm12124_vm10, %v2555_v37, %v2557_v7 }
 0x413   : > { %v2573_v39 = vsel %vm12124_vm10, %v2551_v22, %v2553_v58 }
 0x414   : > { %2585 = vmatpush1.msra.mxu0 %v2573_v39 }
 0x415   : > { %7912 = vmatprep.subr.bf16.mxu0 %v7911_v9  ;;  %7754 = vmatmul.mubr.msk.f32.vlgmr.msra.gmra.mrb[0].mxu0 %vm12138_vm11, %v7753_v54 }
 0x416   : > { %v2561_v10 = vpop.permute.xlu1 %2560  ;;  %7914 = vmatpush1.bf16.msra.mxu0 %v7913_v59  ;;  %2786 = vmatprep.mubr.f32.mxu0 %v12277_v19 }
 0x417   : > { %v2559_v1 = vpop.permute.xlu0 %2558 }
 0x418   : > { %v2570_v29 = vsel %vm12124_vm10, %v2557_v7, %v2559_v1  ;;  %v2569_v16 = vsel %vm12124_vm10, %v2559_v1, %v2561_v10 }
 0x419   : > { %2655 = vmatprep.subr.mxu1 %v2570_v29 }
 0x41a   : > { %2656 = vmatpush1.msra.mxu1 %v2571_v42  ;;  %v8503_v36 = vpop.permute.xlu1 %8502 }
 0x41b   : > { %v2563_v35 = vpop.permute.xlu0 %2562  ;;  %7916 = vmatprep.subr.bf16.mxu1 %v7915_v47  ;;  %7755 = vmatmul.mubr.msk.f32.vlgmr.msra.gmra.mrb[0].mxu1 %vm12138_vm11, %v7753_v54  ;;  %v8505_v46 = vunpack.i.h.bf16 %v8503_v36  ;;  %v8504_v33 = vunpack.i.l.bf16 %v8503_v36 }
 0x41c   : > { %7918 = vmatpush1.bf16.msra.mxu1 %v7917_v18  ;;  %v2568_v63 = vsel %vm12124_vm10, %v2561_v10, %v2563_v35  ;;  %2857 = vmatprep.mubr.f32.mxu1 %v12277_v19 }
 0x41d   : > { %2726 = vmatprep.subr.mxu0 %v2568_v63  ;;  %v2894_v12 = vsel %vm12126_vm0, %v8504_v33, %v8505_v46 }
 0x41e   : > { %2727 = vmatpush1.msra.mxu0 %v2569_v16  ;;  %v10469_v53 = vpop.permute.xlu1 %8512 }
 0x41f   : > { %v8508_v8 = vpop.permute.xlu0 %8507  ;;  %7756 = vmatmul.mubr.msk.f32.vlgmr.msra.gmra.mrb[2].mxu0 %vm12138_vm11, %v7753_v54  ;;  %v8514_v58 = vunpack.i.l.bf16 %v10469_v53 }
 0x420   : > { %v8510_v30 = vunpack.i.h.bf16 %v8508_v8  ;;  %v8509_v37 = vunpack.i.l.bf16 %v8508_v8  ;;  %3016 = vmatprep.mubr.f32.mxu0 %v12277_v19 }
 0x421   : > { %v2895_v9 = vsel %vm12126_vm0, %v8514_v58, %v8504_v33 }
 0x422   : > { %v2565_v15 = vpop.permute.xlu1 %2564  ;;  %v2919_v6 = vsel %vm12125_vm1, %v8509_v37, %v8510_v30 }
 0x423   : > { %v8518_v2 = vpop.permute.xlu0 %8517  ;;  %v2574_v4 = vsel %vm12124_vm10, %v2565_v15, %v2551_v22  ;;  %v7919_v3 = vpack.c.bf16 %v2919_v6, %v2894_v12  ;;  %v2567_v43 = vsel %vm12124_vm10, %v2563_v35, %v2565_v15  ;;  %v8515_v22 = vunpack.i.h.bf16 %v10469_v53 }
 0x424   : > { %v8519_v7 = vunpack.i.l.bf16 %v8518_v2  ;;  %2797 = vmatprep.subr.mxu1 %v2574_v4  ;;  %v8520_v39 = vunpack.i.h.bf16 %v8518_v2  ;;  %vm12127_vm10 = vcmp.lt.s32.totalorder %v9084_v17, 37 }
 0x425   : > { %7920 = vmatprep.subr.bf16.mxu0 %v7919_v3  ;;  %2798 = vmatpush1.msra.mxu1 %v2567_v43 }
 0x426   : > { %v2920_v59 = vsel %vm12125_vm1, %v8519_v7, %v8509_v37  ;;  %v8528_v10 = vpop.permute.xlu1 %8527  ;;  %7757 = vmatmul.mubr.msk.f32.vlgmr.msra.gmra.mrb[2].mxu1 %vm12138_vm11, %v7753_v54  ;;  %v2918_v1 = vsel %vm12125_vm1, %v8510_v30, %v8520_v39  ;;  %v2893_v54 = vsel %vm12126_vm0, %v8505_v46, %v8515_v22 }
 0x427   : > { %v8523_v52 = vpop.permute.xlu0 %8522  ;;  %v8529_v0 = vunpack.i.l.bf16 %v8528_v10  ;;  %v7921_v50 = vpack.c.bf16 %v2920_v59, %v2895_v9  ;;  %3087 = vmatprep.mubr.f32.mxu1 %v12277_v19  ;;  %v7925_v35 = vpack.c.bf16 %v2918_v1, %v2893_v54  ;;  %v8530_v53 = vunpack.i.h.bf16 %v8528_v10 }
 0x428   : > { %v8524_v57 = vunpack.i.l.bf16 %v8523_v52  ;;  %v8525_v33 = vunpack.i.h.bf16 %v8523_v52 }
 0x429   : > { %7922 = vmatpush1.bf16.msra.mxu0 %v7921_v50  ;;  %v2917_v29 = vsel %vm12125_vm1, %v8520_v39, %v8529_v0  ;;  %v2916_v6 = vsel %vm12125_vm1, %v8529_v0, %v8530_v53  ;;  %v7758_v39 = vld [vmem:[%s11998_s1 + $0x30] sm:$0xff] }
 0x42a   : > { %v8538_v42 = vpop.permute.xlu1 %8537  ;;  %v2892_v47 = vsel %vm12126_vm0, %v8515_v22, %v8524_v57  ;;  %v2891_v12 = vsel %vm12126_vm0, %v8524_v57, %v8525_v33 }
 0x42b   : > { %v8533_v36 = vpop.permute.xlu0 %8532  ;;  %v7923_v18 = vpack.c.bf16 %v2917_v29, %v2892_v47  ;;  %v8539_v16 = vunpack.i.l.bf16 %v8538_v42  ;;  %v8540_v4 = vunpack.i.h.bf16 %v8538_v42  ;;  %v7929_v10 = vpack.c.bf16 %v2916_v6, %v2891_v12 }
 0x42c   : > { %v8534_v63 = vunpack.i.l.bf16 %v8533_v36  ;;  %v8535_v2 = vunpack.i.h.bf16 %v8533_v36 }
 0x42d   : > { %7924 = vmatprep.subr.bf16.mxu1 %v7923_v18  ;;  %v2915_v15 = vsel %vm12125_vm1, %v8530_v53, %v8539_v16  ;;  %v2921_v0 = vsel %vm12125_vm1, %v8540_v4, %v8519_v7  ;;  %v2914_v57 = vsel %vm12125_vm1, %v8539_v16, %v8540_v4  ;;  %vm12129_vm1 = vcmp.lt.s32.totalorder %v9084_v17, 29 }
 0x42e   : > { %7926 = vmatpush1.bf16.msra.mxu1 %v7925_v35  ;;  %v2927_v8 = vpop.permute.xlu1 %2926  ;;  %v2890_v46 = vsel %vm12126_vm0, %v8525_v33, %v8534_v63  ;;  %v2896_v52 = vsel %vm12126_vm0, %v8535_v2, %v8514_v58  ;;  %v2889_v50 = vsel %vm12126_vm0, %v8534_v63, %v8535_v2  ;;  %vm12128_vm0 = vcmp.lt.s32.totalorder %v9084_v17, 28 }
 0x42f   : > { %v2925_v30 = vpop.permute.xlu0 %2924  ;;  %v7927_v59 = vpack.c.bf16 %v2915_v15, %v2890_v46  ;;  %v7931_v42 = vpack.c.bf16 %v2921_v0, %v2896_v52  ;;  %v7933_v47 = vpack.c.bf16 %v2914_v57, %v2889_v50 }
 0x430   : > { %v2944_v37 = vsel %vm12127_vm10, %v2925_v30, %v2927_v8 }
 0x431   : > { %2956 = vmatprep.subr.mxu0 %v2944_v37 }
 0x432   : > { %v2929_v3 = vpop.permute.xlu1 %2928 }
 0x433   : > { %v2923_v43 = vpop.permute.xlu0 %2922  ;;  %v2943_v58 = vsel %vm12127_vm10, %v2927_v8, %v2929_v3 }
 0x434   : > { %v2945_v9 = vsel %vm12127_vm10, %v2923_v43, %v2925_v30 }
 0x435   : > { %2957 = vmatpush1.msra.mxu0 %v2945_v9 }
 0x436   : > { %7928 = vmatprep.subr.bf16.mxu0 %v7927_v59  ;;  %v2933_v22 = vpop.permute.xlu1 %2932  ;;  %7759 = vmatmul.mubr.msk.f32.vlgmr.msra.gmra.mrb[0].mxu0 %vm12138_vm11, %v7758_v39 }
 0x437   : > { %v2931_v1 = vpop.permute.xlu0 %2930  ;;  %7930 = vmatpush1.bf16.msra.mxu0 %v7929_v10  ;;  %3158 = vmatprep.mubr.f32.mxu0 %v12277_v19 }
 0x438   : > { %v2942_v29 = vsel %vm12127_vm10, %v2929_v3, %v2931_v1  ;;  %v2941_v18 = vsel %vm12127_vm10, %v2931_v1, %v2933_v22 }
 0x439   : > { %3027 = vmatprep.subr.mxu1 %v2942_v29 }
 0x43a   : > { %3028 = vmatpush1.msra.mxu1 %v2943_v58  ;;  %v8543_v7 = vpop.permute.xlu1 %8542 }
 0x43b   : > { %v2935_v54 = vpop.permute.xlu0 %2934  ;;  %7932 = vmatprep.subr.bf16.mxu1 %v7931_v42  ;;  %7760 = vmatmul.mubr.msk.f32.vlgmr.msra.gmra.mrb[0].mxu1 %vm12138_vm11, %v7758_v39  ;;  %v8545_v35 = vunpack.i.h.bf16 %v8543_v7  ;;  %v8544_v63 = vunpack.i.l.bf16 %v8543_v7 }
 0x43c   : > { %7934 = vmatpush1.bf16.msra.mxu1 %v7933_v47  ;;  %v2940_v36 = vsel %vm12127_vm10, %v2933_v22, %v2935_v54  ;;  %3229 = vmatprep.mubr.f32.mxu1 %v12277_v19 }
 0x43d   : > { %3098 = vmatprep.subr.mxu0 %v2940_v36  ;;  %v3266_v46 = vsel %vm12129_vm1, %v8544_v63, %v8545_v35 }
 0x43e   : > { %3099 = vmatpush1.msra.mxu0 %v2941_v18  ;;  %v10535_v16 = vpop.permute.xlu1 %8552 }
 0x43f   : > { %v8548_v33 = vpop.permute.xlu0 %8547  ;;  %7761 = vmatmul.mubr.msk.f32.vlgmr.msra.gmra.mrb[2].mxu0 %vm12138_vm11, %v7758_v39  ;;  %v8554_v30 = vunpack.i.l.bf16 %v10535_v16 }
 0x440   : > { %v8550_v53 = vunpack.i.h.bf16 %v8548_v33  ;;  %v8549_v8 = vunpack.i.l.bf16 %v8548_v33  ;;  %3388 = vmatprep.mubr.f32.mxu0 %v12277_v19 }
 0x441   : > { %v3267_v59 = vsel %vm12129_vm1, %v8554_v30, %v8544_v63 }
 0x442   : > { %v2937_v37 = vpop.permute.xlu1 %2936  ;;  %v3291_v15 = vsel %vm12128_vm0, %v8549_v8, %v8550_v53 }
 0x443   : > { %v8558_v12 = vpop.permute.xlu0 %8557  ;;  %v2946_v6 = vsel %vm12127_vm10, %v2937_v37, %v2923_v43  ;;  %v7935_v2 = vpack.c.bf16 %v3291_v15, %v3266_v46  ;;  %v2939_v4 = vsel %vm12127_vm10, %v2935_v54, %v2937_v37  ;;  %v8555_v43 = vunpack.i.h.bf16 %v10535_v16 }
 0x444   : > { %v8559_v3 = vunpack.i.l.bf16 %v8558_v12  ;;  %3169 = vmatprep.subr.mxu1 %v2946_v6  ;;  %v8560_v9 = vunpack.i.h.bf16 %v8558_v12  ;;  %vm12130_vm10 = vcmp.lt.s32.totalorder %v9084_v17, 27 }
 0x445   : > { %7936 = vmatprep.subr.bf16.mxu0 %v7935_v2  ;;  %3170 = vmatpush1.msra.mxu1 %v2939_v4 }
 0x446   : > { %v3292_v10 = vsel %vm12128_vm0, %v8559_v3, %v8549_v8  ;;  %v8568_v22 = vpop.permute.xlu1 %8567  ;;  %7762 = vmatmul.mubr.msk.f32.vlgmr.msra.gmra.mrb[2].mxu1 %vm12138_vm11, %v7758_v39  ;;  %v3290_v1 = vsel %vm12128_vm0, %v8550_v53, %v8560_v9  ;;  %v3265_v39 = vsel %vm12129_vm1, %v8545_v35, %v8555_v43 }
 0x447   : > { %v8563_v52 = vpop.permute.xlu0 %8562  ;;  %v8569_v0 = vunpack.i.l.bf16 %v8568_v22  ;;  %v7937_v50 = vpack.c.bf16 %v3292_v10, %v3267_v59  ;;  %3459 = vmatprep.mubr.f32.mxu1 %v12277_v19  ;;  %v7941_v54 = vpack.c.bf16 %v3290_v1, %v3265_v39  ;;  %v8570_v16 = vunpack.i.h.bf16 %v8568_v22 }
 0x448   : > { %v8564_v57 = vunpack.i.l.bf16 %v8563_v52  ;;  %v8565_v63 = vunpack.i.h.bf16 %v8563_v52 }
 0x449   : > { %7938 = vmatpush1.bf16.msra.mxu0 %v7937_v50  ;;  %v3289_v29 = vsel %vm12128_vm0, %v8560_v9, %v8569_v0  ;;  %v3288_v15 = vsel %vm12128_vm0, %v8569_v0, %v8570_v16  ;;  %v7763_v9 = vld [vmem:[%s11998_s1 + $0x38] sm:$0xff] }
 0x44a   : > { %v8578_v58 = vpop.permute.xlu1 %8577  ;;  %v3264_v42 = vsel %vm12129_vm1, %v8555_v43, %v8564_v57  ;;  %v3263_v46 = vsel %vm12129_vm1, %v8564_v57, %v8565_v63 }
 0x44b   : > { %v8573_v7 = vpop.permute.xlu0 %8572  ;;  %v7939_v47 = vpack.c.bf16 %v3289_v29, %v3264_v42  ;;  %v8579_v18 = vunpack.i.l.bf16 %v8578_v58  ;;  %v8580_v6 = vunpack.i.h.bf16 %v8578_v58  ;;  %v7945_v22 = vpack.c.bf16 %v3288_v15, %v3263_v46 }
 0x44c   : > { %v8574_v36 = vunpack.i.l.bf16 %v8573_v7  ;;  %v8575_v12 = vunpack.i.h.bf16 %v8573_v7 }
 0x44d   : > { %7940 = vmatprep.subr.bf16.mxu1 %v7939_v47  ;;  %v3287_v37 = vsel %vm12128_vm0, %v8570_v16, %v8579_v18  ;;  %v3293_v0 = vsel %vm12128_vm0, %v8580_v6, %v8559_v3  ;;  %v3286_v57 = vsel %vm12128_vm0, %v8579_v18, %v8580_v6  ;;  %vm12137_vm0 = vcmp.lt.s32.totalorder %v9084_v17, 19 }
 0x44e   : > { %7942 = vmatpush1.bf16.msra.mxu1 %v7941_v54  ;;  %v3299_v33 = vpop.permute.xlu1 %3298  ;;  %v3262_v35 = vsel %vm12129_vm1, %v8565_v63, %v8574_v36  ;;  %v3268_v52 = vsel %vm12129_vm1, %v8575_v12, %v8554_v30  ;;  %v3261_v50 = vsel %vm12129_vm1, %v8574_v36, %v8575_v12  ;;  %vm12135_vm1 = vcmp.lt.s32.totalorder %v9084_v17, 18 }
 0x44f   : > { %v3297_v53 = vpop.permute.xlu0 %3296  ;;  %v7943_v10 = vpack.c.bf16 %v3287_v37, %v3262_v35  ;;  %v7947_v58 = vpack.c.bf16 %v3293_v0, %v3268_v52  ;;  %v7949_v42 = vpack.c.bf16 %v3286_v57, %v3261_v50 }
 0x450   : > { %v3316_v8 = vsel %vm12130_vm10, %v3297_v53, %v3299_v33 }
 0x451   : > { %3328 = vmatprep.subr.mxu0 %v3316_v8 }
 0x452   : > { %v3301_v2 = vpop.permute.xlu1 %3300 }
 0x453   : > { %v3295_v4 = vpop.permute.xlu0 %3294  ;;  %v3315_v30 = vsel %vm12130_vm10, %v3299_v33, %v3301_v2 }
 0x454   : > { %v3317_v59 = vsel %vm12130_vm10, %v3295_v4, %v3297_v53 }
 0x455   : > { %3329 = vmatpush1.msra.mxu0 %v3317_v59 }
 0x456   : > { %7944 = vmatprep.subr.bf16.mxu0 %v7943_v10  ;;  %v3305_v43 = vpop.permute.xlu1 %3304  ;;  %7764 = vmatmul.mubr.msk.f32.vlgmr.msra.gmra.mrb[0].mxu0 %vm12138_vm11, %v7763_v9 }
 0x457   : > { %v3303_v1 = vpop.permute.xlu0 %3302  ;;  %7946 = vmatpush1.bf16.msra.mxu0 %v7945_v22  ;;  %3530 = vmatprep.mubr.f32.mxu0 %v12277_v19 }
 0x458   : > { %v3314_v29 = vsel %vm12130_vm10, %v3301_v2, %v3303_v1  ;;  %v3313_v47 = vsel %vm12130_vm10, %v3303_v1, %v3305_v43 }
 0x459   : > { %3399 = vmatprep.subr.mxu1 %v3314_v29 }
 0x45a   : > { %3400 = vmatpush1.msra.mxu1 %v3315_v30  ;;  %v8583_v3 = vpop.permute.xlu1 %8582 }
 0x45b   : > { %v3307_v39 = vpop.permute.xlu0 %3306  ;;  %7948 = vmatprep.subr.bf16.mxu1 %v7947_v58  ;;  %7765 = vmatmul.mubr.msk.f32.vlgmr.msra.gmra.mrb[0].mxu1 %vm12138_vm11, %v7763_v9  ;;  %v8585_v54 = vunpack.i.h.bf16 %v8583_v3  ;;  %v8584_v36 = vunpack.i.l.bf16 %v8583_v3 }
 0x45c   : > { %7950 = vmatpush1.bf16.msra.mxu1 %v7949_v42  ;;  %v3312_v7 = vsel %vm12130_vm10, %v3305_v43, %v3307_v39  ;;  %3601 = vmatprep.mubr.f32.mxu1 %v12277_v19 }
 0x45d   : > { %3470 = vmatprep.subr.mxu0 %v3312_v7  ;;  %v3638_v35 = vsel %vm12137_vm0, %v8584_v36, %v8585_v54 }
 0x45e   : > { %3471 = vmatpush1.msra.mxu0 %v3313_v47  ;;  %v10601_v18 = vpop.permute.xlu1 %8592 }
 0x45f   : > { %v8588_v63 = vpop.permute.xlu0 %8587  ;;  %7766 = vmatmul.mubr.msk.f32.vlgmr.msra.gmra.mrb[2].mxu0 %vm12138_vm11, %v7763_v9  ;;  %v8594_v53 = vunpack.i.l.bf16 %v10601_v18 }
 0x460   : > { %v8590_v16 = vunpack.i.h.bf16 %v8588_v63  ;;  %v8589_v33 = vunpack.i.l.bf16 %v8588_v63  ;;  %3760 = vmatprep.mubr.f32.mxu0 %v12277_v19 }
 0x461   : > { %v3639_v10 = vsel %vm12137_vm0, %v8594_v53, %v8584_v36 }
 0x462   : > { %v3309_v8 = vpop.permute.xlu1 %3308  ;;  %v3663_v37 = vsel %vm12135_vm1, %v8589_v33, %v8590_v16 }
 0x463   : > { %v8598_v46 = vpop.permute.xlu0 %8597  ;;  %v3318_v15 = vsel %vm12130_vm10, %v3309_v8, %v3295_v4  ;;  %v7951_v12 = vpack.c.bf16 %v3663_v37, %v3638_v35  ;;  %v3311_v6 = vsel %vm12130_vm10, %v3307_v39, %v3309_v8  ;;  %v8595_v4 = vunpack.i.h.bf16 %v10601_v18 }
 0x464   : > { %v8599_v2 = vunpack.i.l.bf16 %v8598_v46  ;;  %3541 = vmatprep.subr.mxu1 %v3318_v15  ;;  %v8600_v59 = vunpack.i.h.bf16 %v8598_v46  ;;  %vm12136_vm10 = vcmp.lt.s32.totalorder %v9084_v17, 17 }
 0x465   : > { %7952 = vmatprep.subr.bf16.mxu0 %v7951_v12  ;;  %3542 = vmatpush1.msra.mxu1 %v3311_v6  ;;  %v3637_v58 = vsel %vm12137_vm0, %v8585_v54, %v8595_v4  ;;  %v7768_v6 = vld [vmem:[%s11998_s1 + $0x40] sm:$0xff] }
 0x466   : > { %v3664_v22 = vsel %vm12135_vm1, %v8599_v2, %v8589_v33  ;;  %v8608_v43 = vpop.permute.xlu1 %8607  ;;  %7767 = vmatmul.mubr.msk.f32.vlgmr.msra.gmra.mrb[2].mxu1 %vm12138_vm11, %v7763_v9  ;;  %v3662_v1 = vsel %vm12135_vm1, %v8590_v16, %v8600_v59 }
 0x467   : > { %v8603_v52 = vpop.permute.xlu0 %8602  ;;  %v8609_v0 = vunpack.i.l.bf16 %v8608_v43  ;;  %v7953_v50 = vpack.c.bf16 %v3664_v22, %v3639_v10  ;;  %3831 = vmatprep.mubr.f32.mxu1 %v12277_v19  ;;  %v7957_v7 = vpack.c.bf16 %v3662_v1, %v3637_v58  ;;  %v8610_v47 = vunpack.i.h.bf16 %v8608_v43 }
 0x468   : > { %v8604_v57 = vunpack.i.l.bf16 %v8603_v52  ;;  %v8605_v36 = vunpack.i.h.bf16 %v8603_v52 }
 0x469   : > { %7954 = vmatpush1.bf16.msra.mxu0 %v7953_v50  ;;  %v3661_v29 = vsel %vm12135_vm1, %v8600_v59, %v8609_v0  ;;  %v3660_v8 = vsel %vm12135_vm1, %v8609_v0, %v8610_v47 }
 0x46a   : > { %v3671_v30 = vpop.permute.xlu1 %3670  ;;  %v3636_v9 = vsel %vm12137_vm0, %v8595_v4, %v8604_v57  ;;  %v3635_v54 = vsel %vm12137_vm0, %v8604_v57, %v8605_v36 }
 0x46b   : > { %v3669_v3 = vpop.permute.xlu0 %3668  ;;  %v7955_v42 = vpack.c.bf16 %v3661_v29, %v3636_v9  ;;  %v7961_v22 = vpack.c.bf16 %v3660_v8, %v3635_v54 }
 0x46c   : > { %v3688_v39 = vsel %vm12136_vm10, %v3669_v3, %v3671_v30 }
 0x46d   : > { %3700 = vmatprep.subr.mxu0 %v3688_v39  ;;  %7956 = vmatprep.subr.bf16.mxu1 %v7955_v42 }
 0x46e   : > { %7958 = vmatpush1.bf16.msra.mxu1 %v7957_v7  ;;  %v3654_v63 = vpop.permute.xlu1 %3653  ;;  %v7773_v7 = vld [vmem:[%s12000_s3 + $0x6] ss:$8 sm:$0xf] }
 0x46f   : > { %v8613_v16 = vpop.permute.xlu0 %8612  ;;  %v3659_v37 = vsel %vm12135_vm1, %v8610_v47, %v3654_v63  ;;  %v7774_v47 = vld [vmem:[%s12000_s3 + $0x6] ss:$8 sm:$0xf0] }
 0x470   : > { %v8614_v33 = vunpack.i.l.bf16 %v8613_v16  ;;  %v8615_v35 = vunpack.i.h.bf16 %v8613_v16 }
 0x472   : > { %v3673_v46 = vpop.permute.xlu1 %3672  ;;  %v3634_v15 = vsel %vm12137_vm0, %v8605_v36, %v8614_v33  ;;  %v3633_v43 = vsel %vm12137_vm0, %v8614_v33, %v8615_v35  ;;  %v3640_v57 = vsel %vm12137_vm0, %v8615_v35, %v8594_v53  ;;  %v3991_v36 = vor.u32 %v7774_v47, %v7773_v7 }
 0x473   : > { %v3667_v12 = vpop.permute.xlu0 %3666  ;;  %v7959_v59 = vpack.c.bf16 %v3659_v37, %v3634_v15  ;;  %v3687_v58 = vsel %vm12136_vm10, %v3671_v30, %v3673_v46 }
 0x474   : > { %v3689_v10 = vsel %vm12136_vm10, %v3667_v12, %v3669_v3 }
 0x475   : > { %3701 = vmatpush1.msra.mxu0 %v3689_v10 }
 0x476   : > { %7769 = vmatmul.mubr.msk.f32.vlgmr.msra.gmra.mrb[0].mxu0 %vm12138_vm11, %v7768_v6  ;;  %7960 = vmatprep.subr.bf16.mxu0 %v7959_v59  ;;  %v3656_v4 = vpop.permute.xlu1 %3655 }
 0x477   : > { %v3675_v52 = vpop.permute.xlu0 %3674  ;;  %v3658_v0 = vsel %vm12135_vm1, %v3654_v63, %v3656_v4  ;;  %v3665_v50 = vsel %vm12135_vm1, %v3656_v4, %v8599_v2  ;;  %7962 = vmatpush1.bf16.msra.mxu0 %v7961_v22  ;;  %3902 = vmatprep.mubr.f32.mxu0 %v12277_v19  ;;  %vm3992_vm1 = vcmp.gt.f32.partialorder %v3991_v36, 0.5 }
 0x478   : > { %v7965_v1 = vpack.c.bf16 %v3658_v0, %v3633_v43  ;;  %v3686_v29 = vsel %vm12136_vm10, %v3673_v46, %v3675_v52  ;;  %v7963_v9 = vpack.c.bf16 %v3665_v50, %v3640_v57  ;;  %v3993_v63 = vsel %vm3992_vm1, 1, %v12250_v44 }
 0x479   : > { %3771 = vmatprep.subr.mxu1 %v3686_v29  ;;  %v3997_v16 = vrot.slane %v3993_v63, %v9079_v13  ;;  %v4001_v33 = vrot.slane %v3993_v63, %v9081_v14  ;;  %v4005_v35 = vrot.slane %v3993_v63, %v9088_v20  ;;  %v4009_v46 = vrot.slane %v3993_v63, %v9090_v21 }
 0x47a   : > { %3772 = vmatpush1.msra.mxu1 %v3687_v58  ;;  %v3679_v3 = vpop.permute.xlu1 %3678  ;;  %v4017_v20 = vrot.slane %v3993_v63, %v9093_v24  ;;  %v12294_v0 = vmov 0  ;;  %v4025_v24 = vrot.slane %v3993_v63, %v9111_v34 }
 0x47b   : > { %v3677_v2 = vpop.permute.xlu0 %3676  ;;  %7770 = vmatmul.mubr.msk.f32.vlgmr.msra.gmra.mrb[0].mxu1 %vm12138_vm11, %v7768_v6  ;;  %7964 = vmatprep.subr.bf16.mxu1 %v7963_v9  ;;  %vm10692_vm0 = vcmp.eq.s32.totalorder %v4001_v33, 1  ;;  %vm10702_vm1 = vcmp.eq.s32.totalorder %v4005_v35, 1 }
 0x47c   : > { %7966 = vmatpush1.bf16.msra.mxu1 %v7965_v1  ;;  %v3684_v18 = vsel %vm12136_vm10, %v3677_v2, %v3679_v3  ;;  %v3685_v53 = vsel %vm12136_vm10, %v3675_v52, %v3677_v2  ;;  %3973 = vmatprep.mubr.f32.mxu1 %v12277_v19  ;;  %vm10721_vm14 = vcmp.eq.s32.totalorder %v4017_v20, 1  ;;  %vm10734_vm12 = vcmp.eq.s32.totalorder %v4025_v24, 1 }
 0x47d   : > { %3842 = vmatprep.subr.mxu0 %v3684_v18  ;;  %v12295_v0 = vsel %vm10721_vm14, 4294967295, %v12294_v0 }
 0x47e   : > { %3843 = vmatpush1.msra.mxu0 %v3685_v53 }
 0x47f   : > { %v3681_v42 = vpop.permute.xlu0 %3680  ;;  %7771 = vmatmul.mubr.msk.f32.vlgmr.msra.gmra.mrb[2].mxu0 %vm12138_vm11, %v7768_v6 }
 0x480   : > { %v3690_v30 = vsel %vm12136_vm10, %v3681_v42, %v3667_v12  ;;  %v3683_v39 = vsel %vm12136_vm10, %v3679_v3, %v3681_v42  ;;  %4511 = vmatprep.mubr.f32.mxu0 %v12277_v19  ;;  %vm10688_vm10 = vcmp.eq.s32.totalorder %v3997_v16, 1  ;;  %v12296_v3 = vmov 0 }
 0x481   : > { %3913 = vmatprep.subr.mxu1 %v3690_v30 }
 0x482   : > { %3914 = vmatpush1.msra.mxu1 %v3683_v39 }
 0x483   : > { %7772 = vmatmul.mubr.msk.f32.vlgmr.msra.gmra.mrb[2].mxu1 %vm12138_vm11, %v7768_v6  ;;  %v4013_v6 = vrot.slane %v3993_v63, %v9120_v38  ;;  %vm10707_vm11 = vcmp.eq.s32.totalorder %v4009_v46, 1  ;;  %v4021_v38 = vrot.slane %v3993_v63, %v9095_v25  ;;  %v12298_v25 = vmov 0 }
 0x484   : > { %4582 = vmatprep.mubr.f32.mxu1 %v12277_v19  ;;  %v12299_v25 = vsel %vm10734_vm12, 4294967295, %v12298_v25 }
 0x485   : > { %vm10716_vm15 = vcmp.eq.s32.totalorder %v4013_v6, 1  ;;  %vm10730_vm13 = vcmp.eq.s32.totalorder %v4021_v38, 1 }
 0x486   : > { %v12297_v3 = vsel %vm10730_vm13, 4294967295, %v12296_v3 }
 0x549   : > { %v3762_v37 = vpop.f32.mrb[0].mxu0 }
 0x54a   : > { %v4034_v44 = vsel %vm10688_vm10, %v3762_v37, 0.0  ;;  %v3764_v15 = vpop.f32.mrb[1].mxu0 }
 0x54b   : > { %v4035_v13 = vsel %vm10692_vm0, %v3764_v15, 0.0 }
 0x54c   : > { %v4042_v14 = vadd.f32 %v4035_v13, %v4034_v44 }
 0x54e   : > { %v3833_v21 = vpop.f32.mrb[0].mxu1 }
 0x54f   : > { %v4036_v10 = vsel %vm10702_vm1, %v3833_v21, 0.0  ;;  %v3835_v22 = vpop.f32.mrb[1].mxu1 }
 0x550   : > { %v4043_v43 = vadd.f32 %v4042_v14, %v4036_v10  ;;  %v4037_v4 = vsel %vm10707_vm11, %v3835_v22, 0.0 }
 0x552   : > { %v4044_v50 = vadd.f32 %v4043_v43, %v4037_v4  ;;  %v3904_v57 = vpop.f32.mrb[2].mxu0 }
 0x553   : > { %v4038_v1 = vsel %vm10716_vm15, %v3904_v57, 0.0  ;;  %v3906_v29 = vpop.f32.mrb[3].mxu0 }
 0x554   : > { %v4045_v9 = vadd.f32 %v4044_v50, %v4038_v1  ;;  %v4039_v58 = vsel %vm10721_vm14, %v3906_v29, 0.0 }
 0x556   : > { %v4046_v2 = vadd.f32 %v4045_v9, %v4039_v58  ;;  %v3975_v34 = vpop.f32.mrb[2].mxu1 }
 0x557   : > { %v4040_v18 = vsel %vm10730_vm13, %v3975_v34, 0.0  ;;  %v3977_v53 = vpop.f32.mrb[3].mxu1 }
 0x558   : > { %v4047_v42 = vadd.f32 %v4046_v2, %v4040_v18  ;;  %v4041_v30 = vsel %vm10734_vm12, %v3977_v53, 0.0 }
 0x55a   : > { %v4048_v39 = vadd.f32 %v4047_v42, %v4041_v30 }
 0x55c   : > { %4049 = vadd.xlane.f32.xlu1 %v4048_v39 }
 0x5e9   : > { %v4050_v7 = vpop.xlane.xlu1 %4049 }
 0x5ea   : > { %v4052_v47 = vmul.f32 0.001953125, %v4050_v7 }
 0x5ec   : > { %v4053_v36 = vsub.f32 %v3762_v37, %v4052_v47  ;;  %v4054_v63 = vsub.f32 %v3764_v15, %v4052_v47  ;;  %v4055_v16 = vsub.f32 %v3833_v21, %v4052_v47  ;;  %v4056_v33 = vsub.f32 %v3835_v22, %v4052_v47 }
 0x5ed   : > { %v4057_v44 = vsub.f32 %v3904_v57, %v4052_v47  ;;  %v4058_v20 = vsub.f32 %v3906_v29, %v4052_v47  ;;  %v4059_v21 = vsub.f32 %v3975_v34, %v4052_v47  ;;  %v4060_v38 = vsub.f32 %v3977_v53, %v4052_v47 }
 0x5ee   : > { %v4061_v35 = vsel %vm10688_vm10, %v4053_v36, 0.0  ;;  %v4062_v46 = vsel %vm10692_vm0, %v4054_v63, 0.0  ;;  %v4063_v13 = vsel %vm10702_vm1, %v4055_v16, 0.0  ;;  %v4064_v10 = vsel %vm10707_vm11, %v4056_v33, 0.0 }
 0x5ef   : > { %v4069_v14 = vmul.f32 %v4061_v35, %v4061_v35  ;;  %v4070_v6 = vmul.f32 %v4062_v46, %v4062_v46  ;;  %v4071_v37 = vmul.f32 %v4063_v13, %v4063_v13  ;;  %v4065_v22 = vsel %vm10716_vm15, %v4057_v44, 0.0 }
 0x5f0   : > { %v4072_v43 = vmul.f32 %v4064_v10, %v4064_v10  ;;  %v4066_v24 = vsel %vm10721_vm14, %v4058_v20, 0.0  ;;  %v4073_v50 = vmul.f32 %v4065_v22, %v4065_v22  ;;  %v4067_v1 = vsel %vm10730_vm13, %v4059_v21, 0.0 }
 0x5f1   : > { %v4077_v15 = vadd.f32 %v4070_v6, %v4069_v14  ;;  %v4074_v29 = vmul.f32 %v4066_v24, %v4066_v24  ;;  %v4068_v58 = vsel %vm10734_vm12, %v4060_v38, 0.0  ;;  %v4075_v2 = vmul.f32 %v4067_v1, %v4067_v1 }
 0x5f2   : > { %v4076_v18 = vmul.f32 %v4068_v58, %v4068_v58  ;;  %vm12300_vm12 = vcmp.lt.s32.totalorder %v9084_v17, 126 }
 0x5f3   : > { %v4078_v4 = vadd.f32 %v4077_v15, %v4071_v37  ;;  %vm12301_vm13 = vmmov %vm12300_vm12 }
 0x5f4   : > { %vm12302_vm14 = vmmov %vm12300_vm12 }
 0x5f5   : > { %v4079_v57 = vadd.f32 %v4078_v4, %v4072_v43 }
 0x5f7   : > { %v4080_v9 = vadd.f32 %v4079_v57, %v4073_v50 }
 0x5f9   : > { %v4081_v34 = vadd.f32 %v4080_v9, %v4074_v29 }
 0x5fb   : > { %v4082_v42 = vadd.f32 %v4081_v34, %v4075_v2 }
 0x5fd   : > { %v4083_v30 = vadd.f32 %v4082_v42, %v4076_v18 }
 0x5ff   : > { %4084 = vadd.xlane.f32.xlu0 %v4083_v30 }
 0x68c   : > { %v4085_v53 = vpop.xlane.xlu0 %4084 }
 0x68d   : > { %v4086_v39 = vmul.f32 0.001953125, %v4085_v53 }
 0x68f   : > { %v4087_v7 = vadd.f32 1e-05, %v4086_v39 }
 0x691   : > { %8951 = vrsqrt.f32 %v4087_v7 }
 0x69b   : > { %v8952_v47 = vpop.eup %8951 }
 0x69c   : > { %v4090_v35 = vmul.f32 %v8952_v47, %v4054_v63  ;;  %v4089_v46 = vmul.f32 %v8952_v47, %v4053_v36  ;;  %v4091_v6 = vmul.f32 %v8952_v47, %v4055_v16  ;;  %v4092_v10 = vmul.f32 %v8952_v47, %v4056_v33 }
 0x69d   : > { %v4093_v22 = vmul.f32 %v8952_v47, %v4057_v44  ;;  %v4094_v43 = vmul.f32 %v8952_v47, %v4058_v20  ;;  %v4095_v63 = vmul.f32 %v8952_v47, %v4059_v21  ;;  %v4096_v36 = vmul.f32 %v8952_v47, %v4060_v38 }
 0x69e   : > { %v4098_v13 = vmax.f32 %v4090_v35, 0.0  ;;  %v4097_v14 = vmax.f32 %v4089_v46, 0.0  ;;  %v4099_v37 = vmax.f32 %v4091_v6, 0.0  ;;  %v4100_v15 = vmax.f32 %v4092_v10, 0.0 }
 0x69f   : > { %v4101_v4 = vmax.f32 %v4093_v22, 0.0  ;;  %v4102_v24 = vmax.f32 %v4094_v43, 0.0  ;;  %v4103_v16 = vmax.f32 %v4095_v63, 0.0  ;;  %v4104_v33 = vmax.f32 %v4096_v36, 0.0 }
 0x6a0   : > { %4107 = vrot.lane.b32.xlu1 %v4098_v13, %s8971_s21  ;;  %4105 = vrot.lane.b32.xlu0 %v4097_v14, %s8971_s21 }
 0x6a4   : > { %4109 = vrot.lane.b32.xlu1 %v4099_v37, %s8971_s21  ;;  %4111 = vrot.lane.b32.xlu0 %v4100_v15, %s8971_s21 }
 0x6a8   : > { %4113 = vrot.lane.b32.xlu1 %v4101_v4, %s8971_s21  ;;  %4115 = vrot.lane.b32.xlu0 %v4102_v24, %s8971_s21 }
 0x6ac   : > { %4117 = vrot.lane.b32.xlu1 %v4103_v16, %s8971_s21  ;;  %4119 = vrot.lane.b32.xlu0 %v4104_v33, %s8971_s21 }
 0x712   : > { %v4108_v44 = vpop.permute.xlu1 %4107  ;;  %v4106_v20 = vpop.permute.xlu0 %4105 }
 0x713   : > { %v4127_v50 = vsel %vm12300_vm12, %v4106_v20, %v4108_v44 }
 0x714   : > { %v4129_v57 = vsel %vm9097_vm2, %v4127_v50, %v4097_v14  ;;  %vm12303_vm2 = vmmov %vm12300_vm12 }
 0x715   : > { %4137 = vrot.lane.b32.xlu1 %v4129_v57, %s8973_s26  ;;  %vm12306_vm12 = vmmov %vm12303_vm2 }
 0x716   : > { %v4110_v21 = vpop.permute.xlu1 %4109  ;;  %v4112_v38 = vpop.permute.xlu0 %4111 }
 0x717   : > { %v4126_v1 = vsel %vm12301_vm13, %v4108_v44, %v4110_v21  ;;  %v4125_v29 = vsel %vm12302_vm14, %v4110_v21, %v4112_v38 }
 0x718   : > { %v4130_v9 = vsel %vm9101_vm3, %v4126_v1, %v4098_v13  ;;  %v4131_v58 = vsel %vm9127_vm4, %v4125_v29, %v4099_v37  ;;  %vm12304_vm3 = vmmov %vm12303_vm2 }
 0x719   : > { %4139 = vrot.lane.b32.xlu0 %v4130_v9, %s8973_s26  ;;  %4141 = vrot.lane.b32.xlu1 %v4131_v58, %s8973_s26  ;;  %vm12305_vm4 = vmmov %vm12303_vm2 }
 0x71a   : > { %v4114_v26 = vpop.permute.xlu1 %4113  ;;  %v4116_v2 = vpop.permute.xlu0 %4115 }
 0x71b   : > { %v4124_v34 = vsel %vm12303_vm2, %v4112_v38, %v4114_v26  ;;  %v4123_v41 = vsel %vm12306_vm12, %v4114_v26, %v4116_v2 }
 0x71c   : > { %v4132_v18 = vsel %vm9131_vm5, %v4124_v34, %v4100_v15  ;;  %vm12307_vm5 = vmmov %vm12303_vm2  ;;  %v4133_v48 = vsel %vm9179_vm9, %v4123_v41, %v4101_v4  ;;  %vm12311_vm9 = vnez %v12168_v11  ;;  %vm12314_vm2 = vnez %v12170_v31 }
 0x71d   : > { %4143 = vrot.lane.b32.xlu0 %v4132_v18, %s8973_s26 }
 0x71e   : > { %v4118_v42 = vpop.permute.xlu1 %4117  ;;  %v4120_v27 = vpop.permute.xlu0 %4119 }
 0x71f   : > { %v4122_v40 = vsel %vm12304_vm3, %v4116_v2, %v4118_v42  ;;  %v4121_v30 = vsel %vm12305_vm4, %v4118_v42, %v4120_v27  ;;  %v4128_v7 = vsel %vm12307_vm5, %v4120_v27, %v4106_v20  ;;  %vm12315_vm3 = vnez %v12172_v32  ;;  %v12332_v2 = vld [vmem:[#allocation2_spill] sm:$0xff] }
 0x720   : > { %v4134_v53 = vsel %vm9147_vm6, %v4122_v40, %v4102_v24  ;;  %v4135_v39 = vsel %vm9151_vm7, %v4121_v30, %v4103_v16  ;;  %v4136_v47 = vsel %vm9175_vm8, %v4128_v7, %v4104_v33  ;;  %vm12308_vm6 = vcmp.lt.s32.totalorder %v9084_v17, 2  ;;  %v12338_v40 = vld [vmem:[#allocation4_spill] sm:$0xff]  ;;  %v12342_v7 = vld [vmem:[#allocation6_spill] sm:$0xff] }
 0x721   : > { %4147 = vrot.lane.b32.xlu1 %v4134_v53, %s8973_s26  ;;  %4149 = vrot.lane.b32.xlu0 %v4135_v39, %s8973_s26  ;;  %vm12309_vm7 = vnez %v12166_v5  ;;  %vm12310_vm8 = vmmov %vm12308_vm6  ;;  %vm12318_vm5 = vnez %v12174_v45 }
 0x722   : > { %vm12312_vm13 = vmmov %vm12308_vm6 }
 0x723   : > { %vm12313_vm14 = vmmov %vm12308_vm6 }
 0x724   : > { %vm12316_vm4 = vmmov %vm12308_vm6 }
 0x725   : > { %4151 = vrot.lane.b32.xlu1 %v4136_v47, %s8973_s26  ;;  %4145 = vrot.lane.b32.xlu0 %v4133_v48, %s8973_s26  ;;  %vm12317_vm12 = vmmov %vm12316_vm4 }
 0x787   : > { %v4138_v49 = vpop.permute.xlu1 %4137 }
 0x78b   : > { %v4140_v35 = vpop.permute.xlu0 %4139  ;;  %v4142_v14 = vpop.permute.xlu1 %4141 }
 0x78c   : > { %v4159_v46 = vsel %vm12308_vm6, %v4138_v49, %v4140_v35  ;;  %v4158_v11 = vsel %vm12316_vm4, %v4140_v35, %v4142_v14  ;;  %vm12319_vm6 = vnez %v12176_v51 }
 0x78d   : > { %v4162_v13 = vsel %vm12309_vm7, %v4159_v46, %v4130_v9  ;;  %v4163_v36 = vsel %vm12318_vm5, %v4158_v11, %v4131_v58  ;;  %vm12320_vm7 = vmmov %vm12316_vm4  ;;  %vm12329_vm5 = vnez %v12184_v23 }
 0x78e   : > { %4171 = vrot.lane.b32.xlu0 %v4162_v13, %s8974_s5 }
 0x78f   : > { %v4144_v60 = vpop.permute.xlu0 %4143 }
 0x790   : > { %v4157_v61 = vsel %vm12310_vm8, %v4142_v14, %v4144_v60  ;;  %vm12321_vm8 = vnez %v12178_v55 }
 0x791   : > { %v4164_v6 = vsel %vm12311_vm9, %v4157_v61, %v4132_v18  ;;  %vm12322_vm9 = vmmov %vm12316_vm4 }
 0x792   : > { %4175 = vrot.lane.b32.xlu0 %v4164_v6, %s8974_s5 }
 0x793   : > { %v4148_v10 = vpop.permute.xlu1 %4147  ;;  %v4150_v37 = vpop.permute.xlu0 %4149 }
 0x794   : > { %v4154_v32 = vsel %vm12320_vm7, %v4148_v10, %v4150_v37 }
 0x795   : > { %v4167_v16 = vsel %vm12321_vm8, %v4154_v32, %v4135_v39  ;;  %vm12333_vm8 = vnez %v12332_v2 }
 0x797   : > { %v4152_v15 = vpop.permute.xlu1 %4151  ;;  %v4146_v22 = vpop.permute.xlu0 %4145 }
 0x798   : > { %v4153_v5 = vsel %vm12312_vm13, %v4150_v37, %v4152_v15  ;;  %v4160_v43 = vsel %vm12313_vm14, %v4152_v15, %v4138_v49  ;;  %v4156_v63 = vsel %vm12317_vm12, %v4144_v60, %v4146_v22  ;;  %v4155_v33 = vsel %vm12322_vm9, %v4146_v22, %v4148_v10  ;;  %v12349_v37 = vld [vmem:[#allocation8_spill] sm:$0xff]  ;;  %v12351_v22 = vld [vmem:[#allocation9_spill] sm:$0xff] }
 0x799   : > { %v4161_v4 = vsel %vm12314_vm2, %v4160_v43, %v4129_v57  ;;  %v4168_v24 = vsel %vm12315_vm3, %v4153_v5, %v4136_v47  ;;  %v4165_v31 = vsel %vm12319_vm6, %v4156_v63, %v4133_v48  ;;  %vm12323_vm13 = vnez %v12180_v62  ;;  %v12355_v63 = vld [vmem:[#allocation10_spill] sm:$0xff] }
 0x79a   : > { %4169 = vrot.lane.b32.xlu1 %v4161_v4, %s8974_s5  ;;  %4183 = vrot.lane.b32.xlu0 %v4168_v24, %s8974_s5  ;;  %v4166_v45 = vsel %vm12323_vm13, %v4155_v33, %v4134_v53  ;;  %vm12324_vm14 = vcmp.lt.s32.totalorder %v9084_v17, 108  ;;  %vm12325_vm2 = vnez %v12182_v56  ;;  %vm12328_vm12 = vnez %v12186_v28  ;;  %v12334_v28 = vld [vmem:[#allocation3_spill] sm:$0xff]  ;;  %v12340_v53 = vld [vmem:[#allocation5_spill] sm:$0xff] }
 0x79b   : > { %vm12326_vm3 = vmmov %vm12324_vm14  ;;  %vm12335_vm9 = vnez %v12334_v28 }
 0x79c   : > { %vm12327_vm4 = vmmov %vm12326_vm3 }
 0x79d   : > { %vm12330_vm6 = vmmov %vm12326_vm3 }
 0x79e   : > { %4173 = vrot.lane.b32.xlu1 %v4163_v36, %s8974_s5  ;;  %4177 = vrot.lane.b32.xlu0 %v4165_v31, %s8974_s5  ;;  %vm12331_vm7 = vmmov %vm12326_vm3 }
 0x79f   : > { %vm12336_vm13 = vmmov %vm12326_vm3 }
 0x7a2   : > { %4181 = vrot.lane.b32.xlu1 %v4167_v16, %s8974_s5 }
 0x7a6   : > { %4179 = vrot.lane.b32.xlu1 %v4166_v45, %s8974_s5  ;;  %s12429_s5 = smov 127  }
 0x800   : > { %v4172_v51 = vpop.permute.xlu0 %4171 }
 0x804   : > { %v4176_v44 = vpop.permute.xlu0 %4175 }
 0x80c   : > { %v4170_v20 = vpop.permute.xlu1 %4169  ;;  %v4184_v57 = vpop.permute.xlu0 %4183 }
 0x80d   : > { %v4191_v50 = vsel %vm12324_vm14, %v4170_v20, %v4172_v51  ;;  %v4192_v9 = vsel %vm12330_vm6, %v4184_v57, %v4170_v20  ;;  %vm12337_vm14 = vmmov %vm12326_vm3  ;;  %v12363_v20 = vld [vmem:[#allocation13_spill] sm:$0xff] }
 0x80e   : > { %v4193_v55 = vsel %vm12325_vm2, %v4191_v50, %v4161_v4  ;;  %v4200_v34 = vsel %vm12333_vm8, %v4192_v9, %v4168_v24  ;;  %vm12339_vm2 = vnez %v12338_v40  ;;  %v12369_v9 = vld [vmem:[#allocation15_spill] sm:$0xff] }
 0x80f   : > { %4201 = vrot.lane.b32.xlu1 %v4193_v55, %s8975_s10 }
 0x810   : > { %v4174_v21 = vpop.permute.xlu1 %4173  ;;  %v4178_v56 = vpop.permute.xlu0 %4177 }
 0x811   : > { %v4189_v38 = vsel %vm12326_vm3, %v4174_v21, %v4176_v44  ;;  %v4190_v62 = vsel %vm12327_vm4, %v4172_v51, %v4174_v21  ;;  %v4188_v23 = vsel %vm12336_vm13, %v4176_v44, %v4178_v56  ;;  %vm12341_vm3 = vnez %v12340_v53  ;;  %v12361_v51 = vld [vmem:[#allocation12_spill] sm:$0xff] }
 0x812   : > { %v4194_v1 = vsel %vm12328_vm12, %v4190_v62, %v4162_v13  ;;  %v4195_v29 = vsel %vm12329_vm5, %v4189_v38, %v4163_v36  ;;  %v4196_v39 = vsel %vm12341_vm3, %v4188_v23, %v4164_v6  ;;  %vm12343_vm12 = vnez %v12342_v7  ;;  %v12345_v13 = vld [vmem:[#allocation7_spill] sm:$0xff] }
 0x813   : > { %4203 = vrot.lane.b32.xlu0 %v4194_v1, %s8975_s10  ;;  %4205 = vrot.lane.b32.xlu1 %v4195_v29, %s8975_s10  ;;  %vm12344_vm5 = vcmp.lt.s32.totalorder %v9084_v17, 20  ;;  %vm12346_vm6 = vnez %v12345_v13  ;;  %vm12352_vm13 = vnez %v12351_v22  ;;  %vm12356_vm3 = vnez %v12355_v63  ;;  %v12395_v63 = vld [vmem:[#allocation24_spill] sm:$0xff] }
 0x814   : > { %v4182_v58 = vpop.permute.xlu1 %4181  ;;  %vm12348_vm8 = vmmov %vm12344_vm5 }
 0x815   : > { %v4185_v26 = vsel %vm12331_vm7, %v4182_v58, %v4184_v57  ;;  %vm12347_vm7 = vmmov %vm12344_vm5 }
 0x816   : > { %v4199_v18 = vsel %vm12335_vm9, %v4185_v26, %v4167_v16  ;;  %vm12350_vm9 = vnez %v12349_v37 }
 0x817   : > { %4215 = vrot.lane.b32.xlu1 %v4200_v34, %s8975_s10  ;;  %4213 = vrot.lane.b32.xlu0 %v4199_v18, %s8975_s10 }
 0x818   : > { %v4180_v42 = vpop.permute.xlu1 %4179 }
 0x819   : > { %v4186_v27 = vsel %vm12337_vm14, %v4180_v42, %v4182_v58  ;;  %v4187_v41 = vsel %vm12327_vm4, %v4178_v56, %v4180_v42  ;;  %vm12353_vm14 = vmmov %vm12344_vm5 }
 0x81a   : > { %v4198_v30 = vsel %vm12339_vm2, %v4186_v27, %v4166_v45  ;;  %v4197_v47 = vsel %vm12343_vm12, %v4187_v41, %v4165_v31  ;;  %vm12354_vm2 = vmmov %vm12344_vm5  ;;  %v12357_v31 = vld [vmem:[#allocation11_spill] sm:$0xff]  ;;  %v12376_v27 = vld [vmem:[#allocation17_spill] sm:$0xff] }
 0x81b   : > { %4211 = vrot.lane.b32.xlu0 %v4198_v30, %s8975_s10  ;;  %4207 = vrot.lane.b32.xlu1 %v4196_v39, %s8975_s10  ;;  %vm12358_vm4 = vnez %v12357_v31  ;;  %vm12359_vm12 = vmmov %vm12354_vm2 }
 0x81f   : > { %4209 = vrot.lane.b32.xlu0 %v4197_v47, %s8975_s10  ;;  %s12438_s10 = smov 119  }
 0x881   : > { %v4202_v48 = vpop.permute.xlu1 %4201 }
 0x885   : > { %v4206_v49 = vpop.permute.xlu1 %4205  ;;  %v4204_v35 = vpop.permute.xlu0 %4203 }
 0x886   : > { %v4223_v46 = vsel %vm12344_vm5, %v4202_v48, %v4204_v35  ;;  %v4222_v43 = vsel %vm12353_vm14, %v4204_v35, %v4206_v49  ;;  %vm12360_vm5 = vmmov %vm12354_vm2  ;;  %vm12370_vm14 = vnez %v12369_v9  ;;  %v12384_v35 = vld [vmem:[#allocation20_spill] sm:$0xff]  ;;  %v12407_v9 = vld [vmem:[#allocation27_spill] sm:$0xff] }
 0x887   : > { %v4226_v14 = vsel %vm12346_vm6, %v4223_v46, %v4194_v1  ;;  %v4227_v36 = vsel %vm12356_vm3, %v4222_v43, %v4195_v29  ;;  %vm12362_vm6 = vnez %v12361_v51  ;;  %v12399_v51 = vld [vmem:[#allocation25_spill] sm:$0xff] }
 0x888   : > { %4235 = vrot.lane.b32.xlu0 %v4226_v14, %s8976_s18 }
 0x889   : > { %v4216_v60 = vpop.permute.xlu1 %4215  ;;  %v4214_v61 = vpop.permute.xlu0 %4213 }
 0x88a   : > { %v4224_v6 = vsel %vm12347_vm7, %v4216_v60, %v4202_v48  ;;  %v4217_v10 = vsel %vm12348_vm8, %v4214_v61, %v4216_v60  ;;  %vm12364_vm7 = vnez %v12363_v20  ;;  %vm12365_vm8 = vmmov %vm12354_vm2  ;;  %v12382_v48 = vld [vmem:[#allocation19_spill] sm:$0xff]  ;;  %v12401_v20 = vld [vmem:[#allocation26_spill] sm:$0xff] }
 0x88b   : > { %v4225_v15 = vsel %vm12350_vm9, %v4224_v6, %v4193_v55  ;;  %v4232_v5 = vsel %vm12352_vm13, %v4217_v10, %v4200_v34  ;;  %v12366_v55 = vld [vmem:[#allocation14_spill] sm:$0xff]  ;;  %vm12368_vm13 = vcmp.lt.s32.totalorder %v9084_v17, 56  ;;  %v12372_v34 = vld [vmem:[#allocation16_spill] sm:$0xff] }
 0x88c   : > { %4233 = vrot.lane.b32.xlu1 %v4225_v15, %s8976_s18  ;;  %4247 = vrot.lane.b32.xlu0 %v4232_v5, %s8976_s18  ;;  %vm12367_vm9 = vnez %v12366_v55  ;;  %vm12373_vm3 = vnez %v12372_v34  ;;  %v12389_v10 = vld [vmem:[#allocation22_spill] sm:$0xff] }
 0x88d   : > { %v4208_v4 = vpop.permute.xlu1 %4207  ;;  %v4212_v24 = vpop.permute.xlu0 %4211 }
 0x88e   : > { %v4221_v11 = vsel %vm12354_vm2, %v4206_v49, %v4208_v4  ;;  %v4218_v16 = vsel %vm12359_vm12, %v4212_v24, %v4214_v61  ;;  %vm12371_vm2 = vmmov %vm12368_vm13  ;;  %v12387_v61 = vld [vmem:[#allocation21_spill] sm:$0xff] }
 0x88f   : > { %v4228_v32 = vsel %vm12358_vm4, %v4221_v11, %v4196_v39  ;;  %v4231_v44 = vsel %vm12362_vm6, %v4218_v16, %v4199_v18  ;;  %vm12374_vm4 = vmmov %vm12371_vm2 }
 0x890   : > { %4237 = vrot.lane.b32.xlu1 %v4227_v36, %s8976_s18  ;;  %4239 = vrot.lane.b32.xlu0 %v4228_v32, %s8976_s18  ;;  %vm12375_vm12 = vmmov %vm12371_vm2 }
 0x891   : > { %v4210_v33 = vpop.permute.xlu0 %4209 }
 0x892   : > { %v4219_v45 = vsel %vm12360_vm5, %v4210_v33, %v4212_v24  ;;  %v4220_v57 = vsel %vm12365_vm8, %v4208_v4, %v4210_v33  ;;  %vm12377_vm5 = vnez %v12376_v27  ;;  %vm12381_vm8 = vmmov %vm12371_vm2  ;;  %v12393_v24 = vld [vmem:[#allocation23_spill] sm:$0xff] }
 0x893   : > { %v4230_v50 = vsel %vm12364_vm7, %v4219_v45, %v4198_v30  ;;  %v4229_v21 = vsel %vm12367_vm9, %v4220_v57, %v4197_v47  ;;  %v12378_v30 = vld [vmem:[#allocation18_spill] sm:$0xff]  ;;  %vm12380_vm7 = vmmov %vm12371_vm2  ;;  %vm12383_vm9 = vnez %v12382_v48 }
 0x894   : > { %4245 = vrot.lane.b32.xlu1 %v4231_v44, %s8976_s18  ;;  %4243 = vrot.lane.b32.xlu0 %v4230_v50, %s8976_s18  ;;  %vm12379_vm6 = vnez %v12378_v30 }
 0x898   : > { %4241 = vrot.lane.b32.xlu1 %v4229_v21, %s8976_s18  ;;  %s12443_s18 = smov 118  }
 0x8fa   : > { %v4236_v38 = vpop.permute.xlu0 %4235 }
 0x8fe   : > { %v4234_v62 = vpop.permute.xlu1 %4233  ;;  %v4248_v1 = vpop.permute.xlu0 %4247 }
 0x8ff   : > { %v4256_v29 = vsel %vm12368_vm13, %v4248_v1, %v4234_v62  ;;  %v4255_v18 = vsel %vm12374_vm4, %v4234_v62, %v4236_v38  ;;  %vm12385_vm13 = vnez %v12384_v35  ;;  %vm12390_vm4 = vnez %v12389_v10 }
 0x900   : > { %v4263_v56 = vsel %vm12370_vm14, %v4256_v29, %v4231_v44  ;;  %v4264_v40 = vsel %vm12377_vm5, %v4255_v18, %v4232_v5  ;;  %vm12386_vm14 = vmmov %vm12371_vm2 }
 0x901   : > { %4277 = vrot.lane.b32.xlu0 %v4263_v56, %s8977_s25 }
 0x902   : > { %v4238_v58 = vpop.permute.xlu1 %4237  ;;  %v4240_v2 = vpop.permute.xlu0 %4239 }
 0x903   : > { %v4254_v26 = vsel %vm12371_vm2, %v4236_v38, %v4238_v58  ;;  %v4253_v39 = vsel %vm12380_vm7, %v4238_v58, %v4240_v2  ;;  %vm12396_vm7 = vnez %v12395_v63 }
 0x904   : > { %v4257_v28 = vsel %vm12373_vm3, %v4254_v26, %v4225_v15  ;;  %v4258_v49 = vsel %vm12383_vm9, %v4253_v39, %v4226_v14  ;;  %vm12388_vm3 = vnez %v12387_v61  ;;  %v12409_v26 = vld [vmem:[#allocation28_spill] sm:$0xff] }
 0x905   : > { %4265 = vrot.lane.b32.xlu1 %v4257_v28, %s8977_s25 }
 0x906   : > { %v4246_v23 = vpop.permute.xlu1 %4245  ;;  %v4244_v41 = vpop.permute.xlu0 %4243 }
 0x907   : > { %v4249_v42 = vsel %vm12375_vm12, %v4246_v23, %v4248_v1  ;;  %v4250_v13 = vsel %vm12386_vm14, %v4244_v41, %v4246_v23  ;;  %vm12391_vm12 = vcmp.lt.s32.totalorder %v9084_v17, 72  ;;  %vm12402_vm14 = vnez %v12401_v20  ;;  %v12413_v23 = vld [vmem:[#allocation30_spill] sm:$0xff] }
 0x908   : > { %v4262_v53 = vsel %vm12379_vm6, %v4249_v42, %v4230_v50  ;;  %v4261_v37 = vsel %vm12390_vm4, %v4250_v13, %v4229_v21  ;;  %vm12392_vm5 = vmmov %vm12391_vm12  ;;  %vm12394_vm6 = vnez %v12393_v24 }
 0x909   : > { %4279 = vrot.lane.b32.xlu1 %v4264_v40, %s8977_s25  ;;  %4275 = vrot.lane.b32.xlu0 %v4262_v53, %s8977_s25  ;;  %vm12398_vm9 = vmmov %vm12392_vm5 }
 0x90a   : > { %v4242_v7 = vpop.permute.xlu1 %4241 }
 0x90b   : > { %v4252_v47 = vsel %vm12381_vm8, %v4240_v2, %v4242_v7  ;;  %v4251_v60 = vsel %vm12371_vm2, %v4242_v7, %v4244_v41  ;;  %vm12397_vm8 = vmmov %vm12392_vm5 }
 0x90c   : > { %v4259_v46 = vsel %vm12385_vm13, %v4252_v47, %v4227_v36  ;;  %v4260_v6 = vsel %vm12388_vm3, %v4251_v60, %v4228_v32  ;;  %vm12400_vm13 = vnez %v12399_v51  ;;  %vm12403_vm2 = vmmov %vm12392_vm5 }
 0x90d   : > { %4267 = vrot.lane.b32.xlu1 %v4258_v49, %s8977_s25  ;;  %4269 = vrot.lane.b32.xlu0 %v4259_v46, %s8977_s25  ;;  %vm12404_vm3 = vmmov %vm12403_vm2 }
 0x90e   : > { %vm12405_vm4 = vmmov %vm12403_vm2 }
 0x911   : > { %4271 = vrot.lane.b32.xlu1 %v4260_v6, %s8977_s25  ;;  %4273 = vrot.lane.b32.xlu0 %v4261_v37, %s8977_s25 }
 0x973   : > { %v4278_v14 = vpop.permute.xlu0 %4277 }
 0x977   : > { %v4266_v15 = vpop.permute.xlu1 %4265 }
 0x97b   : > { %v4280_v22 = vpop.permute.xlu1 %4279  ;;  %v4276_v5 = vpop.permute.xlu0 %4275 }
 0x97c   : > { %v4281_v43 = vsel %vm12391_vm12, %v4278_v14, %v4280_v22  ;;  %v4288_v4 = vsel %vm12392_vm5, %v4280_v22, %v4266_v15  ;;  %v4282_v31 = vsel %vm12397_vm8, %v4276_v5, %v4278_v14  ;;  %vm12406_vm12 = vmmov %vm12403_vm2  ;;  %vm12408_vm5 = vnez %v12407_v9 }
 0x97d   : > { %v10972_v11 = vsel %vm12394_vm6, %v4281_v43, %v4257_v28  ;;  %v10976_v36 = vsel %vm12396_vm7, %v4288_v4, %v4258_v49  ;;  %v10992_v44 = vsel %vm12400_vm13, %v4282_v31, %v4264_v40  ;;  %vm12410_vm6 = vnez %v12409_v26  ;;  %v12411_v28 = vld [vmem:[#allocation29_spill] sm:$0xff] }
 0x97e   : > { %v10982_v32 = vpack.i.bf16 %v10976_v36, %v10972_v11  ;;  %vm12412_vm7 = vnez %v12411_v28  ;;  %vm12414_vm8 = vnez %v12413_v23  ;;  %vm12416_vm13 = vcmp.lt.s32.totalorder %v9084_v17, 100 }
 0x97f   : > { %v4268_v16 = vpop.permute.xlu1 %4267  ;;  %v4270_v33 = vpop.permute.xlu0 %4269 }
 0x980   : > { %v4287_v45 = vsel %vm12398_vm9, %v4266_v15, %v4268_v16  ;;  %8622 = vrot.lane.b32.xlu0 %v10982_v32, %s8978_s6  ;;  %8617 = vrot.lane.b32.xlu1 %v10982_v32, %s8979_s7  ;;  %v4286_v57 = vsel %vm12403_vm2, %v4268_v16, %v4270_v33  ;;  %vm12415_vm9 = vcmp.lt.s32.totalorder %v9084_v17, 101  ;;  %vm12418_vm2 = vmmov %vm12416_vm13 }
 0x981   : > { %v10996_v50 = vsel %vm12402_vm14, %v4287_v45, %v4259_v46  ;;  %v11016_v58 = vsel %vm12408_vm5, %v4286_v57, %v4260_v6  ;;  %vm12417_vm14 = vmmov %vm12415_vm9 }
 0x982   : > { %v11002_v55 = vpack.i.bf16 %v10996_v50, %v10992_v44  ;;  %vm12422_vm5 = vmmov %vm12418_vm2 }
 0x983   : > { %v4272_v21 = vpop.permute.xlu1 %4271  ;;  %v4274_v38 = vpop.permute.xlu0 %4273 }
 0x984   : > { %v4285_v62 = vsel %vm12404_vm3, %v4270_v33, %v4272_v21  ;;  %v4283_v1 = vsel %vm12405_vm4, %v4274_v38, %v4276_v5  ;;  %v4284_v29 = vsel %vm12406_vm12, %v4272_v21, %v4274_v38  ;;  %8632 = vrot.lane.b32.xlu0 %v11002_v55, %s8978_s6  ;;  %8627 = vrot.lane.b32.xlu1 %v11002_v55, %s8979_s7  ;;  %vm12419_vm3 = vmmov %vm12415_vm9 }
 0x985   : > { %v11020_v2 = vsel %vm12410_vm6, %v4285_v62, %v4261_v37  ;;  %v11028_v18 = vsel %vm12412_vm7, %v4284_v29, %v4262_v53  ;;  %v11032_v42 = vsel %vm12414_vm8, %v4283_v1, %v4263_v56  ;;  %vm12420_vm4 = vmmov %vm12418_vm2  ;;  %vm12423_vm6 = vcmp.lt.s32.totalorder %v9084_v17, 99 }
 0x986   : > { %v11024_v34 = vpack.i.bf16 %v11020_v2, %v11016_v58  ;;  %v11040_v27 = vpack.i.bf16 %v11032_v42, %v11028_v18  ;;  %vm12421_vm12 = vmmov %vm12419_vm3 }
 0x987   : > { %vm12424_vm7 = vmmov %vm12419_vm3 }
 0x988   : > { %8642 = vrot.lane.b32.xlu0 %v11024_v34, %s8978_s6  ;;  %8637 = vrot.lane.b32.xlu1 %v11024_v34, %s8979_s7  ;;  %vm12425_vm8 = vmmov %vm12418_vm2 }
 0x98c   : > { %8652 = vrot.lane.b32.xlu0 %v11040_v27, %s8978_s6  ;;  %8647 = vrot.lane.b32.xlu1 %v11040_v27, %s8979_s7  ;;  %s12457_s7 = smov 117  }
 0x990   : > { %4420 = vrot.lane.b32.xlu0 %v10976_v36, %s8981_s8  ;;  %4418 = vrot.lane.b32.xlu1 %v10972_v11, %s8981_s8 }
 0x994   : > { %4422 = vrot.lane.b32.xlu0 %v10996_v50, %s8981_s8  ;;  %4432 = vrot.lane.b32.xlu1 %v10992_v44, %s8981_s8 }
 0x998   : > { %8657 = vrot.lane.b32.xlu0 %v10982_v32, %s8982_s9  ;;  %4424 = vrot.lane.b32.xlu1 %v11016_v58, %s8981_s8 }
 0x99c   : > { %4426 = vrot.lane.b32.xlu0 %v11020_v2, %s8981_s8  ;;  %8662 = vrot.lane.b32.xlu1 %v10982_v32, %s8983_s11 }
 0x9a0   : > { %8667 = vrot.lane.b32.xlu0 %v11002_v55, %s8982_s9  ;;  %4428 = vrot.lane.b32.xlu1 %v11028_v18, %s8981_s8 }
 0x9a4   : > { %8677 = vrot.lane.b32.xlu0 %v11024_v34, %s8982_s9  ;;  %8672 = vrot.lane.b32.xlu1 %v11002_v55, %s8983_s11 }
 0x9a8   : > { %4430 = vrot.lane.b32.xlu0 %v11032_v42, %s8981_s8  ;;  %8682 = vrot.lane.b32.xlu1 %v11024_v34, %s8983_s11  ;;  %s12467_s8 = smov 39  }
 0x9ac   : > { %8692 = vrot.lane.b32.xlu0 %v11040_v27, %s8983_s11  ;;  %8687 = vrot.lane.b32.xlu1 %v11040_v27, %s8982_s9  ;;  %s12474_s9 = smov 38  }
 0x9b0   : > { %4347 = vrot.lane.b32.xlu0 %v10976_v36, %s8984_s12  ;;  %4345 = vrot.lane.b32.xlu1 %v10972_v11, %s8984_s12 }
 0x9b4   : > { %4349 = vrot.lane.b32.xlu0 %v10996_v50, %s8984_s12  ;;  %4359 = vrot.lane.b32.xlu1 %v10992_v44, %s8984_s12 }
 0x9b8   : > { %4353 = vrot.lane.b32.xlu0 %v11020_v2, %s8984_s12  ;;  %4351 = vrot.lane.b32.xlu1 %v11016_v58, %s8984_s12 }
 0x9bc   : > { %8697 = vrot.lane.b32.xlu0 %v10982_v32, %s8985_s13  ;;  %4355 = vrot.lane.b32.xlu1 %v11028_v18, %s8984_s12 }
 0x9c0   : > { %8707 = vrot.lane.b32.xlu0 %v11002_v55, %s8985_s13  ;;  %8702 = vrot.lane.b32.xlu1 %v10982_v32, %s8986_s14 }
 0x9c4   : > { %4357 = vrot.lane.b32.xlu0 %v11032_v42, %s8984_s12  ;;  %8712 = vrot.lane.b32.xlu1 %v11002_v55, %s8986_s14 }
 0x9c8   : > { %8722 = vrot.lane.b32.xlu0 %v11024_v34, %s8986_s14  ;;  %8717 = vrot.lane.b32.xlu1 %v11024_v34, %s8985_s13 }
 0x9cc   : > { %8732 = vrot.lane.b32.xlu0 %v11040_v27, %s8986_s14  ;;  %8727 = vrot.lane.b32.xlu1 %v11040_v27, %s8985_s13  ;;  %s12486_s13 = smov 37   ;;  %s12497_s14 = smov 29  }
 0x9d0   : > { %5068 = vrot.lane.b32.xlu0 %v10976_v36, %s8987_s19  ;;  %5066 = vrot.lane.b32.xlu1 %v10972_v11, %s8987_s19 }
 0x9d4   : > { %5070 = vrot.lane.b32.xlu0 %v10996_v50, %s8987_s19  ;;  %5080 = vrot.lane.b32.xlu1 %v10992_v44, %s8987_s19 }
 0x9d8   : > { %5074 = vrot.lane.b32.xlu0 %v11020_v2, %s8987_s19  ;;  %5072 = vrot.lane.b32.xlu1 %v11016_v58, %s8987_s19 }
 0x9dc   : > { %8737 = vrot.lane.b32.xlu0 %v10982_v32, %s8988_s22  ;;  %5076 = vrot.lane.b32.xlu1 %v11028_v18, %s8987_s19 }
 0x9e0   : > { %8747 = vrot.lane.b32.xlu0 %v11002_v55, %s8988_s22  ;;  %8742 = vrot.lane.b32.xlu1 %v10982_v32, %s8989_s23 }
 0x9e4   : > { %5078 = vrot.lane.b32.xlu0 %v11032_v42, %s8987_s19  ;;  %8752 = vrot.lane.b32.xlu1 %v11002_v55, %s8989_s23  ;;  %s12504_s19 = smov 28  }
 0x9e8   : > { %8762 = vrot.lane.b32.xlu0 %v11024_v34, %s8989_s23  ;;  %8757 = vrot.lane.b32.xlu1 %v11024_v34, %s8988_s22 }
 0x9ec   : > { %8772 = vrot.lane.b32.xlu0 %v11040_v27, %s8989_s23  ;;  %8767 = vrot.lane.b32.xlu1 %v11040_v27, %s8988_s22 }
 0x9f0   : > { %5437 = vrot.lane.b32.xlu0 %v10976_v36, %s8990_s24  ;;  %5435 = vrot.lane.b32.xlu1 %v10972_v11, %s8990_s24 }
 0x9f2   : > { %v8618_v56 = vpop.permute.xlu1 %8617  ;;  %v8623_v40 = vpop.permute.xlu0 %8622 }
 0x9f3   : > { %v8620_v30 = vunpack.i.h.bf16 %v8618_v56  ;;  %v8619_v53 = vunpack.i.l.bf16 %v8618_v56  ;;  %v8625_v39 = vunpack.i.h.bf16 %v8623_v40  ;;  %v8624_v41 = vunpack.i.l.bf16 %v8623_v40  ;;  %v11208_v56 = vld [vmem:[%s11999_s2 + $0x8] sm:$0xff] }
 0x9f4   : > { %5439 = vrot.lane.b32.xlu0 %v10996_v50, %s8990_s24  ;;  %5449 = vrot.lane.b32.xlu1 %v10992_v44, %s8990_s24 }
 0x9f5   : > { %v4392_v7 = vsel %vm12415_vm9, %v8619_v53, %v8620_v30  ;;  %v4416_v47 = vsel %vm12416_vm13, %v8624_v41, %v8625_v39  ;;  %vm12426_vm9 = vmmov %vm12419_vm3 }
 0x9f6   : > { %v11154_v48 = vpop.permute.xlu1 %8627  ;;  %v11156_v49 = vpop.permute.xlu0 %8632  ;;  %v7967_v35 = vpack.c.bf16 %v4416_v47, %v4392_v7  ;;  %vm12427_vm13 = vmmov %vm12418_vm2 }
 0x9f7   : > { %v8629_v46 = vunpack.i.l.bf16 %v11154_v48  ;;  %v8634_v13 = vunpack.i.l.bf16 %v11156_v49  ;;  %v8630_v60 = vunpack.i.h.bf16 %v11154_v48  ;;  %v8635_v6 = vunpack.i.h.bf16 %v11156_v49 }
 0x9f8   : > { %5443 = vrot.lane.b32.xlu0 %v11020_v2, %s8990_s24  ;;  %5441 = vrot.lane.b32.xlu1 %v11016_v58, %s8990_s24 }
 0x9f9   : > { %v4393_v61 = vsel %vm12417_vm14, %v8629_v46, %v8619_v53  ;;  %v4417_v10 = vsel %vm12418_vm2, %v8634_v13, %v8624_v41  ;;  %7968 = vmatprep.subr.bf16.mxu0 %v7967_v35  ;;  %v4391_v43 = vsel %vm12419_vm3, %v8620_v30, %v8630_v60  ;;  %v4415_v4 = vsel %vm12420_vm4, %v8625_v39, %v8635_v6  ;;  %vm12428_vm14 = vmmov %vm12423_vm6 }
 0x9fa   : > { %v8638_v37 = vpop.permute.xlu1 %8637  ;;  %v8643_v14 = vpop.permute.xlu0 %8642  ;;  %v7969_v15 = vpack.c.bf16 %v4417_v10, %v4393_v61  ;;  %vm12430_vm2 = vcmask 195584  }
 0x9fb   : > { %v8639_v22 = vunpack.i.l.bf16 %v8638_v37  ;;  %v8644_v5 = vunpack.i.l.bf16 %v8643_v14  ;;  %v8640_v20 = vunpack.i.h.bf16 %v8638_v37  ;;  %v8645_v57 = vunpack.i.h.bf16 %v8643_v14 }
 0x9fc   : > { %8777 = vrot.lane.b32.xlu0 %v10982_v32, %s8991_s27  ;;  %5445 = vrot.lane.b32.xlu1 %v11028_v18, %s8990_s24  ;;  %v7973_v32 = vpack.c.bf16 %v4415_v4, %v4391_v43  ;;  %v11250_v43 = vpack.i.bf16 %v10996_v50, %v10976_v36 }
 0x9fd   : > { %7970 = vmatpush1.bf16.msra.mxu0 %v7969_v15  ;;  %v4390_v24 = vsel %vm12421_vm12, %v8630_v60, %v8639_v22  ;;  %v4414_v63 = vsel %vm12422_vm5, %v8635_v6, %v8644_v5  ;;  %v4389_v29 = vsel %vm12426_vm9, %v8639_v22, %v8640_v20  ;;  %v4413_v9 = vsel %vm12427_vm13, %v8644_v5, %v8645_v57  ;;  %vm12431_vm12 = vmmov %vm12419_vm3 }
 0x9fe   : > { %v8648_v31 = vpop.permute.xlu1 %8647  ;;  %v8653_v16 = vpop.permute.xlu0 %8652  ;;  %v7971_v33 = vpack.c.bf16 %v4414_v63, %v4390_v24  ;;  %v7977_v30 = vpack.c.bf16 %v4413_v9, %v4389_v29  ;;  %vm12432_vm5 = vmmov %vm12420_vm4  ;;  %vm12435_vm9 = vcmp.lt.s32.totalorder %v9084_v17, 110 }
 0x9ff   : > { %v8649_v45 = vunpack.i.l.bf16 %v8648_v31  ;;  %v8654_v51 = vunpack.i.l.bf16 %v8653_v16  ;;  %v8650_v26 = vunpack.i.h.bf16 %v8648_v31  ;;  %v8655_v28 = vunpack.i.h.bf16 %v8653_v16  ;;  %vm12436_vm13 = vmmov %vm12423_vm6 }
 0xa00   : > { %5447 = vrot.lane.b32.xlu0 %v11032_v42, %s8990_s24  ;;  %8782 = vrot.lane.b32.xlu1 %v11002_v55, %s8991_s27  ;;  %s12516_s24 = smov 27  }
 0xa01   : > { %7972 = vmatprep.subr.bf16.mxu1 %v7971_v33  ;;  %v4388_v55 = vsel %vm12424_vm7, %v8640_v20, %v8649_v45  ;;  %v4412_v1 = vsel %vm12425_vm8, %v8645_v57, %v8654_v51  ;;  %v4386_v41 = vsel %vm12419_vm3, %v8650_v26, %v8629_v46  ;;  %v4410_v7 = vsel %vm12420_vm4, %v8655_v28, %v8634_v13  ;;  %vm12433_vm7 = vmmov %vm12423_vm6 }
 0xa02   : > { %7974 = vmatpush1.bf16.msra.mxu1 %v7973_v32  ;;  %v4419_v21 = vpop.permute.xlu1 %4418  ;;  %v4421_v38 = vpop.permute.xlu0 %4420  ;;  %v7975_v40 = vpack.c.bf16 %v4412_v1, %v4388_v55  ;;  %v4387_v47 = vsel %vm12431_vm12, %v8649_v45, %v8650_v26  ;;  %v4411_v48 = vsel %vm12432_vm5, %v8654_v51, %v8655_v28  ;;  %v7979_v46 = vpack.c.bf16 %v4410_v7, %v4386_v41  ;;  %vm12434_vm8 = vmmov %vm12430_vm2 }
 0xa03   : > { %v4440_v62 = vsel %vm12423_vm6, %v4419_v21, %v4421_v38  ;;  %v7981_v61 = vpack.c.bf16 %v4411_v48, %v4387_v47  ;;  %v11267_v45 = vpack.i.bf16 %v11016_v58, %v10972_v11  ;;  %vm12440_vm3 = vmmov %vm12434_vm8 }
 0xa04   : > { %8792 = vrot.lane.b32.xlu0 %v11040_v27, %s8991_s27  ;;  %8787 = vrot.lane.b32.xlu1 %v11024_v34, %s8991_s27  ;;  %vm12442_vm12 = vmmov %vm12435_vm9  ;;  %s12530_s27 = smov 19  }
 0xa05   : > { %4451 = vmatprep.subr.mxu0 %v4440_v62 }
 0xa06   : > { %v11200_v23 = vpop.permute.xlu1 %4432  ;;  %v4423_v27 = vpop.permute.xlu0 %4422 }
 0xa07   : > { %v4441_v34 = vsel %vm12428_vm14, %v11200_v23, %v4419_v21  ;;  %v4439_v35 = vsel %vm12433_vm7, %v4421_v38, %v4423_v27  ;;  %vm12437_vm14 = vcmp.lt.s32.totalorder %v9084_v17, 111  ;;  %vm12446_vm7 = vmmov %vm12435_vm9 }
 0xa08   : > { %5784 = vrot.lane.b32.xlu0 %v10996_v50, %s12429_s5  ;;  %5782 = vrot.lane.b32.xlu1 %v10976_v36, %s12429_s5  ;;  %vm12441_vm4 = vmmov %vm12437_vm14 }
 0xa09   : > { %4452 = vmatpush1.msra.mxu0 %v4441_v34 }
 0xa0a   : > { %7976 = vmatprep.subr.bf16.mxu0 %v7975_v40  ;;  %v4425_v53 = vpop.permute.xlu1 %4424  ;;  %v11214_v39 = vpop.permute.xlu0 %8657  ;;  %7776 = vmatmul.mubr.msk.f32.vlgmr.msra.gmra.mrb[4].mxu0 %vm12430_vm2, %v11208_v56  ;;  %vm12439_vm2 = vmmov %vm12423_vm6 }
 0xa0b   : > { %7978 = vmatpush1.bf16.msra.mxu0 %v7977_v30  ;;  %v4438_v49 = vsel %vm12423_vm6, %v4423_v27, %v4425_v53  ;;  %4653 = vmatprep.mubr.f32.mxu0 %v12277_v19  ;;  %v8660_v6 = vunpack.i.h.bf16 %v11214_v39  ;;  %v8659_v10 = vunpack.i.l.bf16 %v11214_v39  ;;  %vm12444_vm5 = vmmov %vm12439_vm2  ;;  %v11306_v39 = vpack.i.bf16 %v11028_v18, %v11020_v2 }
 0xa0c   : > { %5786 = vrot.lane.b32.xlu0 %v11016_v58, %s12429_s5  ;;  %5780 = vrot.lane.b32.xlu1 %v10972_v11, %s12429_s5  ;;  %vm12445_vm6 = vmmov %vm12439_vm2 }
 0xa0d   : > { %4522 = vmatprep.subr.mxu1 %v4438_v49  ;;  %v4319_v24 = vsel %vm12437_vm14, %v8659_v10, %v8660_v6  ;;  %vm12450_vm14 = vmmov %vm12440_vm3 }
 0xa0e   : > { %4523 = vmatpush1.msra.mxu1 %v4439_v35  ;;  %v8663_v13 = vpop.permute.xlu1 %8662  ;;  %v4427_v60 = vpop.permute.xlu0 %4426 }
 0xa0f   : > { %v8665_v37 = vunpack.i.h.bf16 %v8663_v13  ;;  %v8664_v14 = vunpack.i.l.bf16 %v8663_v13  ;;  %7980 = vmatprep.subr.bf16.mxu1 %v7979_v46  ;;  %7777 = vmatmul.mubr.msk.f32.vlgmr.msra.gmra.mrb[4].mxu1 %vm12434_vm8, %v11208_v56  ;;  %v4437_v63 = vsel %vm12439_vm2, %v4425_v53, %v4427_v60  ;;  %vm12447_vm8 = vmmov %vm12441_vm4  ;;  %vm12451_vm2 = vcmp.lt.s32.totalorder %v9084_v17, 109 }
 0xa10   : > { %7982 = vmatpush1.bf16.msra.mxu1 %v7981_v61  ;;  %5790 = vrot.lane.b32.xlu0 %v11028_v18, %s12429_s5 }
 0xa11   : > { %5788 = vrot.lane.b32.xlu1 %v11020_v2, %s12429_s5  ;;  %v4343_v15 = vsel %vm12435_vm9, %v8664_v14, %v8665_v37  ;;  %4724 = vmatprep.mubr.f32.mxu1 %v12277_v19  ;;  %vm12448_vm9 = vmmov %vm12446_vm7 }
 0xa12   : > { %v4429_v22 = vpop.permute.xlu1 %4428  ;;  %v11246_v5 = vpop.permute.xlu0 %8667  ;;  %v7983_v31 = vpack.c.bf16 %v4343_v15, %v4319_v24 }
 0xa13   : > { %v4436_v4 = vsel %vm12436_vm13, %v4427_v60, %v4429_v22  ;;  %v8669_v16 = vunpack.i.l.bf16 %v11246_v5  ;;  %v8670_v62 = vunpack.i.h.bf16 %v11246_v5  ;;  %vm12449_vm13 = vmmov %vm12441_vm4  ;;  %v11316_v60 = vpack.i.bf16 %v10992_v44, %v11032_v42 }
 0xa14   : > { %8797 = vrot.lane.b32.xlu0 %v11250_v43, %s12438_s10  ;;  %4593 = vmatprep.subr.mxu0 %v4436_v4 }
 0xa15   : > { %5792 = vrot.lane.b32.xlu1 %v11032_v42, %s12429_s5  ;;  %4594 = vmatpush1.msra.mxu0 %v4437_v63  ;;  %v4320_v57 = vsel %vm12441_vm4, %v8669_v16, %v8659_v10  ;;  %v4318_v40 = vsel %vm12449_vm13, %v8660_v6, %v8670_v62  ;;  %v11336_v63 = vld [vmem:[%s11999_s2] sm:$0xff] }
 0xa16   : > { %v11263_v33 = vpop.permute.xlu1 %8672  ;;  %v8678_v32 = vpop.permute.xlu0 %8677  ;;  %7984 = vmatprep.subr.bf16.mxu0 %v7983_v31  ;;  %7778 = vmatmul.mubr.msk.f32.vlgmr.msra.gmra.mrb[6].mxu0 %vm12440_vm3, %v11208_v56  ;;  %vm12452_vm3 = vmmov %vm12441_vm4 }
 0xa17   : > { %v8674_v51 = vunpack.i.l.bf16 %v11263_v33  ;;  %4798 = vmatprep.mubr.f32.mxu0 %v12277_v19  ;;  %v8675_v20 = vunpack.i.h.bf16 %v11263_v33  ;;  %v8679_v38 = vunpack.i.l.bf16 %v8678_v32  ;;  %v8680_v49 = vunpack.i.h.bf16 %v8678_v32  ;;  %vm12453_vm4 = vmmov %vm12446_vm7 }
 0xa18   : > { %8807 = vrot.lane.b32.xlu0 %v11267_v45, %s12438_s10  ;;  %vm12461_vm13 = vmmov %vm12453_vm4 }
 0xa19   : > { %v4344_v21 = vsel %vm12442_vm12, %v8674_v51, %v8664_v14  ;;  %8802 = vrot.lane.b32.xlu1 %v11250_v43, %s12443_s18  ;;  %v4342_v27 = vsel %vm12446_vm7, %v8665_v37, %v8675_v20  ;;  %v4317_v34 = vsel %vm12447_vm8, %v8670_v62, %v8679_v38  ;;  %vm12454_vm12 = vmmov %vm12453_vm4 }
 0xa1a   : > { %v8683_v55 = vpop.permute.xlu1 %8682  ;;  %v4431_v1 = vpop.permute.xlu0 %4430  ;;  %v7985_v29 = vpack.c.bf16 %v4344_v21, %v4320_v57  ;;  %v7989_v7 = vpack.c.bf16 %v4342_v27, %v4318_v40  ;;  %vm12458_vm7 = vmmov %vm12452_vm3 }
 0xa1b   : > { %v8684_v9 = vunpack.i.l.bf16 %v8683_v55  ;;  %v4434_v26 = vsel %vm12444_vm5, %v4431_v1, %v11200_v23  ;;  %v4435_v28 = vsel %vm12445_vm6, %v4429_v22, %v4431_v1  ;;  %v8685_v35 = vunpack.i.h.bf16 %v8683_v55  ;;  %vm12455_vm5 = vmmov %vm12451_vm2 }
 0xa1c   : > { %5794 = vrot.lane.b32.xlu0 %v10992_v44, %s12429_s5  ;;  %4664 = vmatprep.subr.mxu1 %v4434_v26  ;;  %vm12456_vm6 = vmmov %vm12452_vm3 }
 0xa1d   : > { %8812 = vrot.lane.b32.xlu1 %v11267_v45, %s12443_s18  ;;  %7986 = vmatpush1.bf16.msra.mxu0 %v7985_v29  ;;  %v4341_v23 = vsel %vm12448_vm9, %v8675_v20, %v8684_v9  ;;  %v4340_v14 = vsel %vm12454_vm12, %v8684_v9, %v8685_v35  ;;  %v4316_v31 = vsel %vm12456_vm6, %v8679_v38, %v8680_v49  ;;  %vm12459_vm8 = vmmov %vm12453_vm4 }
 0xa1e   : > { %4665 = vmatpush1.msra.mxu1 %v4435_v28  ;;  %v8688_v30 = vpop.permute.xlu1 %8687  ;;  %v8693_v53 = vpop.permute.xlu0 %8692  ;;  %v7987_v41 = vpack.c.bf16 %v4341_v23, %v4317_v34  ;;  %v7993_v32 = vpack.c.bf16 %v4340_v14, %v4316_v31  ;;  %vm12460_vm9 = vmmov %vm12452_vm3 }
 0xa1f   : > { %7779 = vmatmul.mubr.msk.f32.vlgmr.msra.gmra.mrb[6].mxu1 %vm12450_vm14, %v11208_v56  ;;  %v8689_v47 = vunpack.i.l.bf16 %v8688_v30  ;;  %v8694_v48 = vunpack.i.l.bf16 %v8693_v53  ;;  %v8690_v10 = vunpack.i.h.bf16 %v8688_v30  ;;  %v8695_v37 = vunpack.i.h.bf16 %v8693_v53  ;;  %vm12464_vm12 = vmmov %vm12451_vm2 }
 0xa20   : > { %8822 = vrot.lane.b32.xlu0 %v11306_v39, %s12443_s18  ;;  %7988 = vmatprep.subr.bf16.mxu1 %v7987_v41 }
 0xa21   : > { %8817 = vrot.lane.b32.xlu1 %v11306_v39, %s12438_s10  ;;  %7990 = vmatpush1.bf16.msra.mxu1 %v7989_v7  ;;  %v4315_v61 = vsel %vm12452_vm3, %v8680_v49, %v8689_v47  ;;  %v4339_v6 = vsel %vm12453_vm4, %v8685_v35, %v8694_v48  ;;  %v4313_v20 = vsel %vm12458_vm7, %v8690_v10, %v8669_v16  ;;  %vm12462_vm3 = vmmov %vm12451_vm2  ;;  %vm12468_vm7 = vcmp.lt.s32.totalorder %v9084_v17, 91 }
 0xa22   : > { %v4346_v46 = vpop.permute.xlu1 %4345  ;;  %v4348_v13 = vpop.permute.xlu0 %4347  ;;  %4869 = vmatprep.mubr.f32.mxu1 %v12277_v19  ;;  %v7991_v24 = vpack.c.bf16 %v4339_v6, %v4315_v61  ;;  %v4337_v57 = vsel %vm12459_vm8, %v8695_v37, %v8674_v51  ;;  %v4314_v21 = vsel %vm12460_vm9, %v8689_v47, %v8690_v10  ;;  %v4338_v38 = vsel %vm12461_vm13, %v8694_v48, %v8695_v37  ;;  %vm12463_vm4 = vmmov %vm12450_vm14 }
 0xa23   : > { %v4367_v56 = vsel %vm12451_vm2, %v4346_v46, %v4348_v13  ;;  %v7995_v33 = vpack.c.bf16 %v4337_v57, %v4313_v20  ;;  %v7997_v51 = vpack.c.bf16 %v4338_v38, %v4314_v21  ;;  %vm12466_vm6 = vmmov %vm12463_vm4  ;;  %vm12469_vm8 = vcmp.lt.s32.totalorder %v9084_v17, 90 }
 0xa24   : > { %8832 = vrot.lane.b32.xlu0 %v11316_v60, %s12443_s18  ;;  %4738 = vmatprep.subr.mxu0 %v4367_v56  ;;  %vm12470_vm9 = vmmov %vm12451_vm2 }
 0xa25   : > { %8827 = vrot.lane.b32.xlu1 %v11316_v60, %s12438_s10  ;;  %vm12471_vm13 = vmmov %vm12451_vm2 }
 0xa26   : > { %v4360_v15 = vpop.permute.xlu1 %4359  ;;  %v4350_v22 = vpop.permute.xlu0 %4349 }
 0xa27   : > { %v4368_v4 = vsel %vm12455_vm5, %v4360_v15, %v4346_v46  ;;  %v4366_v16 = vsel %vm12462_vm3, %v4348_v13, %v4350_v22  ;;  %vm12465_vm5 = vmmov %vm12451_vm2 }
 0xa28   : > { %6153 = vrot.lane.b32.xlu0 %v10996_v50, %s12457_s7  ;;  %4739 = vmatpush1.msra.mxu0 %v4368_v4  ;;  %vm12475_vm3 = vmmov %vm12463_vm4 }
 0xa29   : > { %6151 = vrot.lane.b32.xlu1 %v10976_v36, %s12457_s7  ;;  %7992 = vmatprep.subr.bf16.mxu0 %v7991_v24 }
 0xa2a   : > { %v4352_v62 = vpop.permute.xlu1 %4351  ;;  %v4354_v55 = vpop.permute.xlu0 %4353  ;;  %7780 = vmatmul.mubr.msk.f32.vlgmr.msra.gmra.mrb[4].mxu0 %vm12450_vm14, %v11336_v63  ;;  %vm12472_vm14 = vmmov %vm12468_vm7 }
 0xa2b   : > { %7994 = vmatpush1.bf16.msra.mxu0 %v7993_v32  ;;  %v4365_v5 = vsel %vm12451_vm2, %v4350_v22, %v4352_v62  ;;  %4940 = vmatprep.mubr.f32.mxu0 %v12277_v19  ;;  %v4364_v26 = vsel %vm12465_vm5, %v4352_v62, %v4354_v55  ;;  %vm12473_vm2 = vmmov %vm12469_vm8 }
 0xa2c   : > { %6155 = vrot.lane.b32.xlu0 %v11016_v58, %s12457_s7  ;;  %4809 = vmatprep.subr.mxu1 %v4365_v5  ;;  %vm12478_vm5 = vmmov %vm12473_vm2 }
 0xa2d   : > { %6149 = vrot.lane.b32.xlu1 %v10972_v11, %s12457_s7  ;;  %4810 = vmatpush1.msra.mxu1 %v4366_v16 }
 0xa2e   : > { %v4356_v1 = vpop.permute.xlu1 %4355  ;;  %v8698_v29 = vpop.permute.xlu0 %8697  ;;  %7996 = vmatprep.subr.bf16.mxu1 %v7995_v33  ;;  %7781 = vmatmul.mubr.msk.f32.vlgmr.msra.gmra.mrb[4].mxu1 %vm12463_vm4, %v11336_v63  ;;  %vm12476_vm4 = vmmov %vm12473_vm2 }
 0xa2f   : > { %7998 = vmatpush1.bf16.msra.mxu1 %v7997_v51  ;;  %v4363_v9 = vsel %vm12464_vm12, %v4354_v55, %v4356_v1  ;;  %5011 = vmatprep.mubr.f32.mxu1 %v12277_v19  ;;  %v8700_v28 = vunpack.i.h.bf16 %v8698_v29  ;;  %v8699_v27 = vunpack.i.l.bf16 %v8698_v29  ;;  %vm12477_vm12 = vmmov %vm12468_vm7 }
 0xa30   : > { %6159 = vrot.lane.b32.xlu0 %v11028_v18, %s12457_s7  ;;  %4880 = vmatprep.subr.mxu0 %v4363_v9 }
 0xa31   : > { %6157 = vrot.lane.b32.xlu1 %v11020_v2, %s12457_s7  ;;  %4881 = vmatpush1.msra.mxu0 %v4364_v26  ;;  %v5040_v41 = vsel %vm12468_vm7, %v8699_v27, %v8700_v28 }
 0xa32   : > { %v8703_v34 = vpop.permute.xlu1 %8702  ;;  %v11378_v23 = vpop.permute.xlu0 %8707  ;;  %7782 = vmatmul.mubr.msk.f32.vlgmr.msra.gmra.mrb[6].mxu0 %vm12466_vm6, %v11336_v63  ;;  %vm12479_vm6 = vmmov %vm12468_vm7  ;;  %vm12480_vm7 = vcmp.lt.s32.totalorder %v9084_v17, 89 }
 0xa33   : > { %v8705_v40 = vunpack.i.h.bf16 %v8703_v34  ;;  %v8704_v30 = vunpack.i.l.bf16 %v8703_v34  ;;  %5159 = vmatprep.mubr.f32.mxu0 %v12277_v19  ;;  %v8709_v53 = vunpack.i.l.bf16 %v11378_v23  ;;  %v8710_v10 = vunpack.i.h.bf16 %v11378_v23 }
 0xa34   : > { %8837 = vrot.lane.b32.xlu0 %v11250_v43, %s12467_s8 }
 0xa35   : > { %6161 = vrot.lane.b32.xlu1 %v11032_v42, %s12457_s7  ;;  %v5064_v7 = vsel %vm12469_vm8, %v8704_v30, %v8705_v40  ;;  %v5041_v61 = vsel %vm12472_vm14, %v8709_v53, %v8699_v27  ;;  %v5039_v20 = vsel %vm12479_vm6, %v8700_v28, %v8710_v10  ;;  %vm12481_vm8 = vmmov %vm12479_vm6 }
 0xa36   : > { %v11392_v47 = vpop.permute.xlu1 %8712  ;;  %v4358_v48 = vpop.permute.xlu0 %4357  ;;  %v7999_v49 = vpack.c.bf16 %v5064_v7, %v5040_v41  ;;  %vm12484_vm14 = vmmov %vm12473_vm2 }
 0xa37   : > { %v8714_v35 = vunpack.i.l.bf16 %v11392_v47  ;;  %v4361_v46 = vsel %vm12470_vm9, %v4358_v48, %v4360_v15  ;;  %v4362_v13 = vsel %vm12471_vm13, %v4356_v1, %v4358_v48  ;;  %v8715_v56 = vunpack.i.h.bf16 %v11392_v47  ;;  %vm12482_vm9 = vmmov %vm12473_vm2  ;;  %v11449_v47 = vld [vmem:[%s11999_s2 + $0x10] sm:$0xff] }
 0xa38   : > { %8847 = vrot.lane.b32.xlu0 %v11267_v45, %s12467_s8  ;;  %4951 = vmatprep.subr.mxu1 %v4361_v46  ;;  %vm12483_vm13 = vmmov %vm12479_vm6 }
 0xa39   : > { %v5065_v6 = vsel %vm12473_vm2, %v8714_v35, %v8704_v30  ;;  %8842 = vrot.lane.b32.xlu1 %v11250_v43, %s12474_s9  ;;  %8000 = vmatprep.subr.bf16.mxu0 %v7999_v49  ;;  %v5063_v24 = vsel %vm12476_vm4, %v8705_v40, %v8715_v56  ;;  %vm12485_vm2 = vmmov %vm12480_vm7 }
 0xa3a   : > { %4952 = vmatpush1.msra.mxu1 %v4362_v13  ;;  %v8718_v37 = vpop.permute.xlu1 %8717  ;;  %v8723_v14 = vpop.permute.xlu0 %8722  ;;  %v8001_v15 = vpack.c.bf16 %v5065_v6, %v5041_v61  ;;  %v8005_v38 = vpack.c.bf16 %v5063_v24, %v5039_v20 }
 0xa3b   : > { %v8719_v22 = vunpack.i.l.bf16 %v8718_v37  ;;  %v8724_v4 = vunpack.i.l.bf16 %v8723_v14  ;;  %7783 = vmatmul.mubr.msk.f32.vlgmr.msra.gmra.mrb[6].mxu1 %vm12475_vm3, %v11336_v63  ;;  %v8720_v5 = vunpack.i.h.bf16 %v8718_v37  ;;  %v8725_v16 = vunpack.i.h.bf16 %v8723_v14  ;;  %vm12487_vm3 = vmmov %vm12479_vm6 }
 0xa3c   : > { %6163 = vrot.lane.b32.xlu0 %v10992_v44, %s12457_s7  ;;  %8002 = vmatpush1.bf16.msra.mxu0 %v8001_v15  ;;  %vm12490_vm6 = vcmask 195584  }
 0xa3d   : > { %8852 = vrot.lane.b32.xlu1 %v11267_v45, %s12474_s9  ;;  %v5038_v31 = vsel %vm12477_vm12, %v8710_v10, %v8719_v22  ;;  %v5062_v32 = vsel %vm12478_vm5, %v8715_v56, %v8724_v4  ;;  %5230 = vmatprep.mubr.f32.mxu1 %v12277_v19  ;;  %v5037_v27 = vsel %vm12483_vm13, %v8719_v22, %v8720_v5  ;;  %vm12488_vm12 = vmmov %vm12487_vm3 }
 0xa3e   : > { %v8728_v63 = vpop.permute.xlu1 %8727  ;;  %v8733_v57 = vpop.permute.xlu0 %8732  ;;  %v8003_v21 = vpack.c.bf16 %v5062_v32, %v5038_v31  ;;  %v5061_v34 = vsel %vm12484_vm14, %v8724_v4, %v8725_v16  ;;  %vm12489_vm5 = vmmov %vm12476_vm4 }
 0xa3f   : > { %v8729_v62 = vunpack.i.l.bf16 %v8728_v63  ;;  %v8734_v55 = vunpack.i.l.bf16 %v8733_v57  ;;  %v8730_v26 = vunpack.i.h.bf16 %v8728_v63  ;;  %v8735_v28 = vunpack.i.h.bf16 %v8733_v57  ;;  %vm12494_vm13 = vmmov %vm12485_vm2 }
 0xa40   : > { %8862 = vrot.lane.b32.xlu0 %v11306_v39, %s12474_s9  ;;  %8004 = vmatprep.subr.bf16.mxu1 %v8003_v21  ;;  %v8009_v48 = vpack.c.bf16 %v5061_v34, %v5037_v27  ;;  %vm12495_vm14 = vmmov %vm12485_vm2 }
 0xa41   : > { %8857 = vrot.lane.b32.xlu1 %v11306_v39, %s12467_s8  ;;  %8006 = vmatpush1.bf16.msra.mxu1 %v8005_v38  ;;  %v5036_v29 = vsel %vm12481_vm8, %v8720_v5, %v8729_v62  ;;  %v5060_v9 = vsel %vm12482_vm9, %v8725_v16, %v8734_v55  ;;  %v5034_v49 = vsel %vm12487_vm3, %v8730_v26, %v8709_v53  ;;  %vm12492_vm8 = vmmov %vm12485_vm2  ;;  %vm12498_vm3 = vcmp.lt.s32.totalorder %v9084_v17, 11 }
 0xa42   : > { %v5067_v33 = vpop.permute.xlu1 %5066  ;;  %v5069_v51 = vpop.permute.xlu0 %5068  ;;  %v8007_v7 = vpack.c.bf16 %v5060_v9, %v5036_v29  ;;  %v5058_v46 = vsel %vm12476_vm4, %v8735_v28, %v8714_v35  ;;  %v5035_v13 = vsel %vm12488_vm12, %v8729_v62, %v8730_v26  ;;  %v5059_v56 = vsel %vm12489_vm5, %v8734_v55, %v8735_v28  ;;  %vm12493_vm9 = vmmov %vm12490_vm6 }
 0xa43   : > { %v5088_v1 = vsel %vm12480_vm7, %v5067_v33, %v5069_v51  ;;  %vm12491_vm7 = vmmov %vm12485_vm2  ;;  %v8011_v35 = vpack.c.bf16 %v5058_v46, %v5034_v49  ;;  %v8013_v10 = vpack.c.bf16 %v5059_v56, %v5035_v13  ;;  %vm12499_vm4 = vcmp.lt.s32.totalorder %v9084_v17, 10 }
 0xa44   : > { %8872 = vrot.lane.b32.xlu0 %v11316_v60, %s12474_s9  ;;  %5099 = vmatprep.subr.mxu0 %v5088_v1  ;;  %vm12500_vm12 = vmmov %vm12491_vm7 }
 0xa45   : > { %8867 = vrot.lane.b32.xlu1 %v11316_v60, %s12467_s8  ;;  %vm12501_vm5 = vmmov %vm12491_vm7  ;;  %s12658_s8 = sshll.u32 %s12660_s16, 6 }
 0xa46   : > { %v5081_v40 = vpop.permute.xlu1 %5080  ;;  %v5071_v30 = vpop.permute.xlu0 %5070  ;;  %s197_s12 = scalar_lea.vmem %s12001_s4, %s12658_s8 }
 0xa47   : > { %v5089_v41 = vsel %vm12485_vm2, %v5081_v40, %v5067_v33  ;;  %v5087_v53 = vsel %vm12492_vm8, %v5069_v51, %v5071_v30  ;;  %vm12496_vm2 = vmmov %vm12490_vm6 }
 0xa48   : > { %6522 = vrot.lane.b32.xlu0 %v10996_v50, %s12486_s13  ;;  %5100 = vmatpush1.msra.mxu0 %v5089_v41  ;;  %vm12505_vm8 = vmmov %vm12496_vm2 }
 0xa49   : > { %6520 = vrot.lane.b32.xlu1 %v10976_v36, %s12486_s13  ;;  %8008 = vmatprep.subr.bf16.mxu0 %v8007_v7 }
 0xa4a   : > { %v5073_v61 = vpop.permute.xlu1 %5072  ;;  %v5075_v6 = vpop.permute.xlu0 %5074  ;;  %7785 = vmatmul.mubr.msk.f32.vlgmr.msra.gmra.mrb[4].mxu0 %vm12490_vm6, %v11449_v47  ;;  %vm12502_vm6 = vmmov %vm12498_vm3 }
 0xa4b   : > { %8010 = vmatpush1.bf16.msra.mxu0 %v8009_v48  ;;  %v5086_v23 = vsel %vm12491_vm7, %v5071_v30, %v5073_v61  ;;  %5301 = vmatprep.mubr.f32.mxu0 %v12277_v19  ;;  %v5085_v22 = vsel %vm12495_vm14, %v5073_v61, %v5075_v6  ;;  %vm12503_vm7 = vmmov %vm12499_vm4 }
 0xa4c   : > { %6524 = vrot.lane.b32.xlu0 %v11016_v58, %s12486_s13  ;;  %5170 = vmatprep.subr.mxu1 %v5086_v23  ;;  %vm12508_vm14 = vmmov %vm12499_vm4 }
 0xa4d   : > { %6518 = vrot.lane.b32.xlu1 %v10972_v11, %s12486_s13  ;;  %5171 = vmatpush1.msra.mxu1 %v5087_v53 }
 0xa4e   : > { %v5077_v37 = vpop.permute.xlu1 %5076  ;;  %v8738_v14 = vpop.permute.xlu0 %8737  ;;  %8012 = vmatprep.subr.bf16.mxu1 %v8011_v35  ;;  %7786 = vmatmul.mubr.msk.f32.vlgmr.msra.gmra.mrb[4].mxu1 %vm12493_vm9, %v11449_v47  ;;  %vm12506_vm9 = vmmov %vm12499_vm4 }
 0xa4f   : > { %8014 = vmatpush1.bf16.msra.mxu1 %v8013_v10  ;;  %v5084_v15 = vsel %vm12494_vm13, %v5075_v6, %v5077_v37  ;;  %5372 = vmatprep.mubr.f32.mxu1 %v12277_v19  ;;  %v8740_v4 = vunpack.i.h.bf16 %v8738_v14  ;;  %v8739_v24 = vunpack.i.l.bf16 %v8738_v14  ;;  %vm12507_vm13 = vmmov %vm12498_vm3 }
 0xa50   : > { %6528 = vrot.lane.b32.xlu0 %v11028_v18, %s12486_s13  ;;  %5241 = vmatprep.subr.mxu0 %v5084_v15 }
 0xa51   : > { %6526 = vrot.lane.b32.xlu1 %v11020_v2, %s12486_s13  ;;  %5242 = vmatpush1.msra.mxu0 %v5085_v22  ;;  %v5409_v21 = vsel %vm12498_vm3, %v8739_v24, %v8740_v4 }
 0xa52   : > { %v8743_v31 = vpop.permute.xlu1 %8742  ;;  %v11487_v32 = vpop.permute.xlu0 %8747  ;;  %7787 = vmatmul.mubr.msk.f32.vlgmr.msra.gmra.mrb[6].mxu0 %vm12496_vm2, %v11449_v47  ;;  %vm12509_vm2 = vmmov %vm12498_vm3  ;;  %vm12510_vm3 = vcmp.lt.s32.totalorder %v9084_v17, 9 }
 0xa53   : > { %v8745_v20 = vunpack.i.h.bf16 %v8743_v31  ;;  %v8744_v63 = vunpack.i.l.bf16 %v8743_v31  ;;  %5528 = vmatprep.mubr.f32.mxu0 %v12277_v19  ;;  %v8749_v57 = vunpack.i.l.bf16 %v11487_v32  ;;  %v8750_v26 = vunpack.i.h.bf16 %v11487_v32 }
 0xa54   : > { %8877 = vrot.lane.b32.xlu0 %v11250_v43, %s12497_s14 }
 0xa55   : > { %6530 = vrot.lane.b32.xlu1 %v11032_v42, %s12486_s13  ;;  %v5433_v38 = vsel %vm12499_vm4, %v8744_v63, %v8745_v20  ;;  %v5410_v29 = vsel %vm12502_vm6, %v8749_v57, %v8739_v24  ;;  %v5408_v49 = vsel %vm12509_vm2, %v8740_v4, %v8750_v26  ;;  %vm12511_vm4 = vmmov %vm12509_vm2 }
 0xa56   : > { %v11501_v62 = vpop.permute.xlu1 %8752  ;;  %v5079_v55 = vpop.permute.xlu0 %5078  ;;  %v8015_v5 = vpack.c.bf16 %v5433_v38, %v5409_v21  ;;  %vm12514_vm6 = vmmov %vm12503_vm7 }
 0xa57   : > { %v8754_v16 = vunpack.i.l.bf16 %v11501_v62  ;;  %v5083_v33 = vsel %vm12500_vm12, %v5077_v37, %v5079_v55  ;;  %v5082_v51 = vsel %vm12501_vm5, %v5079_v55, %v5081_v40  ;;  %v8755_v1 = vunpack.i.h.bf16 %v11501_v62  ;;  %vm12512_vm12 = vmmov %vm12503_vm7  ;;  %v7789_v62 = vld [vmem:[%s11999_s2 + $0x18] sm:$0xff] }
 0xa58   : > { %8887 = vrot.lane.b32.xlu0 %v11267_v45, %s12497_s14  ;;  %5312 = vmatprep.subr.mxu1 %v5082_v51  ;;  %vm12513_vm5 = vmmov %vm12509_vm2 }
 0xa59   : > { %v5434_v9 = vsel %vm12503_vm7, %v8754_v16, %v8744_v63  ;;  %8882 = vrot.lane.b32.xlu1 %v11250_v43, %s12504_s19  ;;  %8016 = vmatprep.subr.bf16.mxu0 %v8015_v5  ;;  %v5432_v41 = vsel %vm12506_vm9, %v8745_v20, %v8755_v1  ;;  %vm12515_vm7 = vmmov %vm12510_vm3 }
 0xa5a   : > { %v8017_v28 = vpack.c.bf16 %v5434_v9, %v5410_v29  ;;  %5313 = vmatpush1.msra.mxu1 %v5083_v33  ;;  %v8758_v27 = vpop.permute.xlu1 %8757  ;;  %v8763_v34 = vpop.permute.xlu0 %8762  ;;  %v8021_v56 = vpack.c.bf16 %v5432_v41, %v5408_v49  ;;  %vm12518_vm9 = vmmov %vm12514_vm6 }
 0xa5b   : > { %v8759_v40 = vunpack.i.l.bf16 %v8758_v27  ;;  %v8764_v30 = vunpack.i.l.bf16 %v8763_v34  ;;  %7788 = vmatmul.mubr.msk.f32.vlgmr.msra.gmra.mrb[6].mxu1 %vm12505_vm8, %v11449_v47  ;;  %v8760_v23 = vunpack.i.h.bf16 %v8758_v27  ;;  %v8765_v53 = vunpack.i.h.bf16 %v8763_v34  ;;  %vm12517_vm8 = vmmov %vm12509_vm2 }
 0xa5c   : > { %6532 = vrot.lane.b32.xlu0 %v10992_v44, %s12486_s13  ;;  %8018 = vmatpush1.bf16.msra.mxu0 %v8017_v28 }
 0xa5d   : > { %8892 = vrot.lane.b32.xlu1 %v11267_v45, %s12504_s19  ;;  %v5407_v7 = vsel %vm12507_vm13, %v8750_v26, %v8759_v40  ;;  %v5431_v48 = vsel %vm12508_vm14, %v8755_v1, %v8764_v30  ;;  %5599 = vmatprep.mubr.f32.mxu1 %v12277_v19  ;;  %v5406_v24 = vsel %vm12513_vm5, %v8759_v40, %v8760_v23  ;;  %vm12519_vm13 = vmmov %vm12509_vm2  ;;  %vm12521_vm2 = vcmask 195584  }
 0xa5e   : > { %v8768_v47 = vpop.permute.xlu1 %8767  ;;  %v8773_v46 = vpop.permute.xlu0 %8772  ;;  %v8019_v13 = vpack.c.bf16 %v5431_v48, %v5407_v7  ;;  %v5430_v31 = vsel %vm12514_vm6, %v8764_v30, %v8765_v53  ;;  %vm12520_vm14 = vmmov %vm12514_vm6 }
 0xa5f   : > { %v8769_v61 = vunpack.i.l.bf16 %v8768_v47  ;;  %v8774_v6 = vunpack.i.l.bf16 %v8773_v46  ;;  %v8770_v22 = vunpack.i.h.bf16 %v8768_v47  ;;  %v8775_v4 = vunpack.i.h.bf16 %v8773_v46  ;;  %vm12524_vm5 = vmmov %vm12510_vm3 }
 0xa60   : > { %8902 = vrot.lane.b32.xlu0 %v11306_v39, %s12504_s19  ;;  %8020 = vmatprep.subr.bf16.mxu1 %v8019_v13  ;;  %v8025_v55 = vpack.c.bf16 %v5430_v31, %v5406_v24  ;;  %vm12525_vm6 = vmmov %vm12510_vm3 }
 0xa61   : > { %8897 = vrot.lane.b32.xlu1 %v11306_v39, %s12497_s14  ;;  %8022 = vmatpush1.bf16.msra.mxu1 %v8021_v56  ;;  %v5405_v14 = vsel %vm12511_vm4, %v8760_v23, %v8769_v61  ;;  %v5429_v15 = vsel %vm12512_vm12, %v8765_v53, %v8774_v6  ;;  %v5403_v5 = vsel %vm12517_vm8, %v8770_v22, %v8749_v57  ;;  %vm12522_vm4 = vmmov %vm12510_vm3 }
 0xa62   : > { %v5436_v35 = vpop.permute.xlu1 %5435  ;;  %v5438_v10 = vpop.permute.xlu0 %5437  ;;  %v8023_v38 = vpack.c.bf16 %v5429_v15, %v5405_v14  ;;  %v5427_v33 = vsel %vm12518_vm9, %v8775_v4, %v8754_v16  ;;  %v5404_v51 = vsel %vm12519_vm13, %v8769_v61, %v8770_v22  ;;  %v5428_v1 = vsel %vm12520_vm14, %v8774_v6, %v8775_v4  ;;  %vm12523_vm12 = vmmov %vm12521_vm2 }
 0xa63   : > { %v5457_v37 = vsel %vm12510_vm3, %v5436_v35, %v5438_v10  ;;  %v8027_v16 = vpack.c.bf16 %v5427_v33, %v5403_v5  ;;  %v8029_v26 = vpack.c.bf16 %v5428_v1, %v5404_v51  ;;  %vm12527_vm8 = vmmov %vm12521_vm2  ;;  %v11636_v51 = vld [vmem:[%s11999_s2 + $0x20] sm:$0xff] }
 0xa64   : > { %8912 = vrot.lane.b32.xlu0 %v11316_v60, %s12504_s19  ;;  %5468 = vmatprep.subr.mxu0 %v5457_v37  ;;  %vm12528_vm9 = vmmov %vm12510_vm3 }
 0xa65   : > { %8907 = vrot.lane.b32.xlu1 %v11316_v60, %s12497_s14  ;;  %vm12529_vm13 = vmmov %vm12510_vm3 }
 0xa66   : > { %v5450_v20 = vpop.permute.xlu1 %5449  ;;  %v5440_v63 = vpop.permute.xlu0 %5439 }
 0xa67   : > { %v5458_v21 = vsel %vm12515_vm7, %v5450_v20, %v5436_v35  ;;  %v5456_v57 = vsel %vm12522_vm4, %v5438_v10, %v5440_v63  ;;  %vm12526_vm7 = vcmp.lt.s32.totalorder %v9084_v17, 1 }
 0xa68   : > { %6891 = vrot.lane.b32.xlu0 %v10996_v50, %s12516_s24  ;;  %5469 = vmatpush1.msra.mxu0 %v5458_v21  ;;  %vm12531_vm14 = vmmov %vm12526_vm7 }
 0xa69   : > { %6889 = vrot.lane.b32.xlu1 %v10976_v36, %s12516_s24  ;;  %8024 = vmatprep.subr.bf16.mxu0 %v8023_v38 }
 0xa6a   : > { %v5442_v29 = vpop.permute.xlu1 %5441  ;;  %v5444_v9 = vpop.permute.xlu0 %5443  ;;  %7790 = vmatmul.mubr.msk.f32.vlgmr.msra.gmra.mrb[4].mxu0 %vm12521_vm2, %v7789_v62 }
 0xa6b   : > { %8026 = vmatpush1.bf16.msra.mxu0 %v8025_v55  ;;  %v5455_v32 = vsel %vm12510_vm3, %v5440_v63, %v5442_v29  ;;  %5670 = vmatprep.mubr.f32.mxu0 %v12277_v19  ;;  %v5454_v41 = vsel %vm12525_vm6, %v5442_v29, %v5444_v9  ;;  %vm12532_vm3 = vmmov %vm12526_vm7 }
 0xa6c   : > { %6893 = vrot.lane.b32.xlu0 %v11016_v58, %s12516_s24  ;;  %5539 = vmatprep.subr.mxu1 %v5455_v32  ;;  %vm12534_vm4 = vmmov %vm12532_vm3 }
 0xa6d   : > { %6887 = vrot.lane.b32.xlu1 %v10972_v11, %s12516_s24  ;;  %5540 = vmatpush1.msra.mxu1 %v5456_v57  ;;  %vm12537_vm6 = vmmov %vm12532_vm3 }
 0xa6e   : > { %v5446_v28 = vpop.permute.xlu1 %5445  ;;  %v8778_v27 = vpop.permute.xlu0 %8777  ;;  %8028 = vmatprep.subr.bf16.mxu1 %v8027_v16  ;;  %7791 = vmatmul.mubr.msk.f32.vlgmr.msra.gmra.mrb[4].mxu1 %vm12523_vm12, %v7789_v62  ;;  %vm12535_vm12 = vcmp.lt.s32.totalorder %v9084_v17, 127 }
 0xa6f   : > { %v8780_v34 = vunpack.i.h.bf16 %v8778_v27  ;;  %v8779_v40 = vunpack.i.l.bf16 %v8778_v27  ;;  %8030 = vmatpush1.bf16.msra.mxu1 %v8029_v26  ;;  %v5453_v30 = vsel %vm12524_vm5, %v5444_v9, %v5446_v28  ;;  %5741 = vmatprep.mubr.f32.mxu1 %v12277_v19  ;;  %vm12536_vm5 = vmmov %vm12532_vm3 }
 0xa70   : > { %6897 = vrot.lane.b32.xlu0 %v11028_v18, %s12516_s24  ;;  %5610 = vmatprep.subr.mxu0 %v5453_v30 }
 0xa71   : > { %6895 = vrot.lane.b32.xlu1 %v11020_v2, %s12516_s24  ;;  %5611 = vmatpush1.msra.mxu0 %v5454_v41  ;;  %v5778_v7 = vsel %vm12526_vm7, %v8779_v40, %v8780_v34  ;;  %vm12538_vm7 = vmmov %vm12535_vm12 }
 0xa72   : > { %v8783_v48 = vpop.permute.xlu1 %8782  ;;  %v5448_v49 = vpop.permute.xlu0 %5447  ;;  %v8031_v47 = vpack.c.bf16 %v10976_v36, %v5778_v7  ;;  %7792 = vmatmul.mubr.msk.f32.vlgmr.msra.gmra.mrb[6].mxu0 %vm12527_vm8, %v7789_v62  ;;  %vm12539_vm8 = vmmov %vm12521_vm2 }
 0xa73   : > { %v8784_v46 = vunpack.i.l.bf16 %v8783_v48  ;;  %v5452_v13 = vsel %vm12528_vm9, %v5446_v28, %v5448_v49  ;;  %v5451_v56 = vsel %vm12529_vm13, %v5448_v49, %v5450_v20  ;;  %5873 = vmatprep.mubr.f32.mxu0 %v12277_v19  ;;  %v8785_v61 = vunpack.i.h.bf16 %v8783_v48  ;;  %vm12540_vm9 = vmmov %vm12532_vm3 }
 0xa74   : > { %8917 = vrot.lane.b32.xlu0 %v11250_v43, %s12530_s27  ;;  %5681 = vmatprep.subr.mxu1 %v5451_v56  ;;  %vm12541_vm13 = vmmov %vm12532_vm3 }
 0xa75   : > { %v5779_v6 = vsel %vm12531_vm14, %v8784_v46, %v8779_v40  ;;  %6899 = vrot.lane.b32.xlu1 %v11032_v42, %s12516_s24  ;;  %8032 = vmatprep.subr.bf16.mxu0 %v8031_v47  ;;  %v5777_v15 = vsel %vm12532_vm3, %v8780_v34, %v8785_v61  ;;  %vm12543_vm14 = vmmov %vm12538_vm7 }
 0xa76   : > { %v8033_v23 = vpack.c.bf16 %v10972_v11, %v5779_v6  ;;  %5682 = vmatpush1.msra.mxu1 %v5452_v13  ;;  %v8788_v53 = vpop.permute.xlu1 %8787  ;;  %v8793_v35 = vpop.permute.xlu0 %8792  ;;  %v8037_v63 = vpack.c.bf16 %v10996_v50, %v5777_v15  ;;  %vm12545_vm3 = vmmov %vm12539_vm8 }
 0xa77   : > { %v8789_v10 = vunpack.i.l.bf16 %v8788_v53  ;;  %7793 = vmatmul.mubr.msk.f32.vlgmr.msra.gmra.mrb[6].mxu1 %vm12521_vm2, %v7789_v62  ;;  %v8790_v37 = vunpack.i.h.bf16 %v8788_v53  ;;  %v8794_v14 = vunpack.i.l.bf16 %v8793_v35  ;;  %v8795_v38 = vunpack.i.h.bf16 %v8793_v35  ;;  %vm12544_vm2 = vmmov %vm12538_vm7 }
 0xa78   : > { %8927 = vrot.lane.b32.xlu0 %v11267_v45, %s12530_s27  ;;  %8034 = vmatpush1.bf16.msra.mxu0 %v8033_v23 }
 0xa79   : > { %8922 = vrot.lane.b32.xlu1 %v11250_v43, %s12533_s28  ;;  %v5776_v22 = vsel %vm12534_vm4, %v8785_v61, %v8789_v10  ;;  %5944 = vmatprep.mubr.f32.mxu1 %v12277_v19  ;;  %v5774_v43 = vsel %vm12536_vm5, %v8790_v37, %v8794_v14  ;;  %v5775_v21 = vsel %vm12537_vm6, %v8789_v10, %v8790_v37  ;;  %vm12546_vm4 = vmmov %vm12544_vm2  ;;  %vm12549_vm6 = vcmp.lt.s32.totalorder %v9084_v17, 119 }
 0xa7a   : > { %v5783_v4 = vpop.permute.xlu1 %5782  ;;  %v5785_v24 = vpop.permute.xlu0 %5784  ;;  %v8035_v31 = vpack.c.bf16 %v11016_v58, %v5776_v22  ;;  %v8039_v33 = vpack.c.bf16 %v11028_v18, %v5774_v43  ;;  %v5772_v29 = vsel %vm12540_vm9, %v8795_v38, %v8784_v46  ;;  %v5773_v9 = vsel %vm12541_vm13, %v8794_v14, %v8795_v38  ;;  %vm12548_vm5 = vmmov %vm12545_vm3 }
 0xa7b   : > { %v5801_v20 = vsel %vm12535_vm12, %v5783_v4, %v5785_v24  ;;  %v8043_v16 = vpack.c.bf16 %v10992_v44, %v5772_v29  ;;  %v8045_v26 = vpack.c.bf16 %v11032_v42, %v5773_v9  ;;  %vm12547_vm12 = vmmov %vm12544_vm2 }
 0xa7c   : > { %6901 = vrot.lane.b32.xlu0 %v10992_v44, %s12516_s24  ;;  %5813 = vmatprep.subr.mxu0 %v5801_v20  ;;  %vm12552_vm9 = vmmov %vm12544_vm2 }
 0xa7d   : > { %8932 = vrot.lane.b32.xlu1 %v11267_v45, %s12533_s28  ;;  %8036 = vmatprep.subr.bf16.mxu1 %v8035_v31  ;;  %v8041_v45 = vpack.c.bf16 %v11020_v2, %v5775_v21  ;;  %vm12553_vm13 = vmmov %vm12549_vm6 }
 0xa7e   : > { %8038 = vmatpush1.bf16.msra.mxu1 %v8037_v63  ;;  %v5781_v62 = vpop.permute.xlu1 %5780  ;;  %v5787_v55 = vpop.permute.xlu0 %5786 }
 0xa7f   : > { %v5802_v5 = vsel %vm12538_vm7, %v5781_v62, %v5783_v4  ;;  %v5800_v57 = vsel %vm12544_vm2, %v5785_v24, %v5787_v55  ;;  %vm12550_vm7 = vcmp.lt.s32.totalorder %v9084_v17, 118 }
 0xa80   : > { %8942 = vrot.lane.b32.xlu0 %v11306_v39, %s12533_s28  ;;  %5814 = vmatpush1.msra.mxu0 %v5802_v5 }
 0xa81   : > { %8937 = vrot.lane.b32.xlu1 %v11306_v39, %s12530_s27  ;;  %8040 = vmatprep.subr.bf16.mxu0 %v8039_v33 }
 0xa82   : > { %v5791_v1 = vpop.permute.xlu0 %5790  ;;  %7795 = vmatmul.mubr.msk.f32.vlgmr.msra.gmra.mrb[4].mxu0 %vm12539_vm8, %v11636_v51  ;;  %vm12551_vm8 = vmmov %vm12544_vm2 }
 0xa83   : > { %v5789_v32 = vpop.permute.xlu1 %5788  ;;  %8042 = vmatpush1.bf16.msra.mxu0 %v8041_v45  ;;  %6015 = vmatprep.mubr.f32.mxu0 %v12277_v19  ;;  %vm12555_vm2 = vmmov %vm12545_vm3 }
 0xa84   : > { %7260 = vrot.lane.b32.xlu0 %v10996_v50, %s12542_s30  ;;  %v5799_v39 = vsel %vm12543_vm14, %v5787_v55, %v5789_v32  ;;  %vm12554_vm14 = vmmov %vm12550_vm7 }
 0xa85   : > { %7258 = vrot.lane.b32.xlu1 %v10976_v36, %s12542_s30  ;;  %5884 = vmatprep.subr.mxu1 %v5799_v39  ;;  %v5798_v36 = vsel %vm12547_vm12, %v5789_v32, %v5791_v1  ;;  %vm12558_vm12 = vmmov %vm12549_vm6 }
 0xa86   : > { %5885 = vmatpush1.msra.mxu1 %v5800_v57  ;;  %v8798_v28 = vpop.permute.xlu0 %8797  ;;  %v7799_v57 = vld [vmem:[%s11999_s2 + $0x28] sm:$0xff] }
 0xa87   : > { %v5793_v27 = vpop.permute.xlu1 %5792  ;;  %8044 = vmatprep.subr.bf16.mxu1 %v8043_v16  ;;  %7796 = vmatmul.mubr.msk.f32.vlgmr.msra.gmra.mrb[4].mxu1 %vm12545_vm3, %v11636_v51  ;;  %v8800_v34 = vunpack.i.h.bf16 %v8798_v28  ;;  %v8799_v40 = vunpack.i.l.bf16 %v8798_v28  ;;  %vm12556_vm3 = vmmov %vm12550_vm7 }
 0xa88   : > { %8046 = vmatpush1.bf16.msra.mxu1 %v8045_v26  ;;  %7244 = vrot.lane.b32.xlu0 %v11032_v42, %s12533_s28  ;;  %v5797_v50 = vsel %vm12546_vm4, %v5791_v1, %v5793_v27  ;;  %vm12557_vm4 = vmmov %vm12556_vm3 }
 0xa89   : > { %8947 = vrot.lane.b32.xlu1 %v11316_v60, %s12530_s27  ;;  %5955 = vmatprep.subr.mxu0 %v5797_v50  ;;  %v6122_v47 = vsel %vm12549_vm6, %v8799_v40, %v8800_v34 }
 0xa8a   : > { %5956 = vmatpush1.msra.mxu0 %v5798_v36  ;;  %v11670_v30 = vpop.permute.xlu0 %8807  ;;  %6086 = vmatprep.mubr.f32.mxu1 %v12277_v19 }
 0xa8b   : > { %v8803_v41 = vpop.permute.xlu1 %8802  ;;  %7797 = vmatmul.mubr.msk.f32.vlgmr.msra.gmra.mrb[6].mxu0 %vm12548_vm5, %v11636_v51  ;;  %v8809_v60 = vunpack.i.l.bf16 %v11670_v30  ;;  %v8810_v10 = vunpack.i.h.bf16 %v11670_v30  ;;  %vm12559_vm5 = vmmov %vm12549_vm6  ;;  %vm12560_vm6 = vcmp.lt.s32.totalorder %v9084_v17, 117 }
 0xa8c   : > { %v8805_v7 = vunpack.i.h.bf16 %v8803_v41  ;;  %v8804_v48 = vunpack.i.l.bf16 %v8803_v41  ;;  %7262 = vrot.lane.b32.xlu0 %v11016_v58, %s12542_s30  ;;  %6242 = vmatprep.mubr.f32.mxu0 %v12277_v19 }
 0xa8d   : > { %7256 = vrot.lane.b32.xlu1 %v10972_v11, %s12542_s30  ;;  %v6123_v23 = vsel %vm12553_vm13, %v8809_v60, %v8799_v40  ;;  %v6121_v20 = vsel %vm12559_vm5, %v8800_v34, %v8810_v10  ;;  %vm12564_vm13 = vmmov %vm12556_vm3 }
 0xa8e   : > { %v5795_v49 = vpop.permute.xlu0 %5794  ;;  %v6146_v46 = vsel %vm12550_vm7, %v8804_v48, %v8805_v7  ;;  %vm12561_vm7 = vmmov %vm12559_vm5 }
 0xa8f   : > { %v8813_v13 = vpop.permute.xlu1 %8812  ;;  %v5796_v56 = vsel %vm12551_vm8, %v5793_v27, %v5795_v49  ;;  %v5803_v58 = vsel %vm12552_vm9, %v5795_v49, %v5781_v62  ;;  %v8047_v61 = vpack.c.bf16 %v6146_v46, %v6122_v47  ;;  %vm12562_vm8 = vmmov %vm12556_vm3 }
 0xa90   : > { %v8814_v6 = vunpack.i.l.bf16 %v8813_v13  ;;  %7246 = vrot.lane.b32.xlu0 %v10992_v44, %s12533_s28  ;;  %6026 = vmatprep.subr.mxu1 %v5803_v58  ;;  %v8815_v11 = vunpack.i.h.bf16 %v8813_v13  ;;  %vm12563_vm9 = vmmov %vm12559_vm5 }
 0xa91   : > { %7264 = vrot.lane.b32.xlu1 %v11020_v2, %s12542_s30  ;;  %8048 = vmatprep.subr.bf16.mxu0 %v8047_v61 }
 0xa92   : > { %v6147_v53 = vsel %vm12554_vm14, %v8814_v6, %v8804_v48  ;;  %6027 = vmatpush1.msra.mxu1 %v5796_v56  ;;  %v8823_v35 = vpop.permute.xlu0 %8822  ;;  %v6145_v22 = vsel %vm12556_vm3, %v8805_v7, %v8815_v11  ;;  %vm12565_vm14 = vmmov %vm12560_vm6 }
 0xa93   : > { %v8049_v37 = vpack.c.bf16 %v6147_v53, %v6123_v23  ;;  %v8818_v14 = vpop.permute.xlu1 %8817  ;;  %v8824_v15 = vunpack.i.l.bf16 %v8823_v35  ;;  %7798 = vmatmul.mubr.msk.f32.vlgmr.msra.gmra.mrb[6].mxu1 %vm12555_vm2, %v11636_v51  ;;  %v8053_v43 = vpack.c.bf16 %v6145_v22, %v6121_v20  ;;  %v8825_v62 = vunpack.i.h.bf16 %v8823_v35  ;;  %vm12566_vm3 = vmmov %vm12559_vm5 }
 0xa94   : > { %v8819_v2 = vunpack.i.l.bf16 %v8818_v14  ;;  %7268 = vrot.lane.b32.xlu0 %v11032_v42, %s12542_s30  ;;  %6313 = vmatprep.mubr.f32.mxu1 %v12277_v19  ;;  %vm12568_vm5 = vmmov %vm12557_vm4 }
 0xa95   : > { %7266 = vrot.lane.b32.xlu1 %v11028_v18, %s12542_s30  ;;  %8050 = vmatpush1.bf16.msra.mxu0 %v8049_v37  ;;  %v6144_v4 = vsel %vm12557_vm4, %v8815_v11, %v8824_v15  ;;  %v8820_v18 = vunpack.i.h.bf16 %v8818_v14 }
 0xa96   : > { %v8833_v24 = vpop.permute.xlu0 %8832  ;;  %v6120_v31 = vsel %vm12558_vm12, %v8810_v10, %v8819_v2  ;;  %vm12567_vm12 = vmmov %vm12566_vm3 }
 0xa97   : > { %v8828_v42 = vpop.permute.xlu1 %8827  ;;  %v8051_v63 = vpack.c.bf16 %v6144_v4, %v6120_v31  ;;  %v8834_v38 = vunpack.i.l.bf16 %v8833_v24  ;;  %v6119_v1 = vsel %vm12563_vm9, %v8819_v2, %v8820_v18  ;;  %v8835_v9 = vunpack.i.h.bf16 %v8833_v24  ;;  %vm12571_vm9 = vmmov %vm12560_vm6 }
 0xa98   : > { %v8829_v21 = vunpack.i.l.bf16 %v8828_v42  ;;  %v8830_v29 = vunpack.i.h.bf16 %v8828_v42 }
 0xa99   : > { %7270 = vrot.lane.b32.xlu1 %v10992_v44, %s12542_s30  ;;  %8052 = vmatprep.subr.bf16.mxu1 %v8051_v63  ;;  %v6142_v45 = vsel %vm12562_vm8, %v8825_v62, %v8834_v38  ;;  %v6143_v44 = vsel %vm12564_vm13, %v8824_v15, %v8825_v62  ;;  %v6148_v36 = vsel %vm12557_vm4, %v8835_v9, %v8814_v6  ;;  %vm12570_vm8 = vmmov %vm12555_vm2 }
 0xa9a   : > { %8054 = vmatpush1.bf16.msra.mxu1 %v8053_v43  ;;  %v6154_v55 = vpop.permute.xlu0 %6153  ;;  %v6118_v51 = vsel %vm12561_vm7, %v8820_v18, %v8829_v21  ;;  %v8057_v28 = vpack.c.bf16 %v6143_v44, %v6119_v1  ;;  %v6124_v50 = vsel %vm12566_vm3, %v8830_v29, %v8809_v60  ;;  %v6117_v34 = vsel %vm12567_vm12, %v8829_v21, %v8830_v29  ;;  %vm12569_vm7 = vmmov %vm12560_vm6 }
 0xa9b   : > { %v6152_v5 = vpop.permute.xlu1 %6151  ;;  %v8055_v26 = vpack.c.bf16 %v6142_v45, %v6118_v51  ;;  %v6141_v40 = vsel %vm12568_vm5, %v8834_v38, %v8835_v9  ;;  %v8059_v48 = vpack.c.bf16 %v6148_v36, %v6124_v50  ;;  %vm12572_vm13 = vmmov %vm12560_vm6  ;;  %vm12575_vm3 = vcmp.lt.s32.totalorder %v9084_v17, 38 }
 0xa9c   : > { %v6170_v33 = vsel %vm12560_vm6, %v6152_v5, %v6154_v55  ;;  %v8061_v60 = vpack.c.bf16 %v6141_v40, %v6117_v34  ;;  %vm12576_vm4 = vmmov %vm12560_vm6 }
 0xa9d   : > { %6182 = vmatprep.subr.mxu0 %v6170_v33  ;;  %vm12577_vm12 = vmmov %vm12576_vm4 }
 0xa9e   : > { %v6156_v32 = vpop.permute.xlu0 %6155 }
 0xa9f   : > { %v6150_v39 = vpop.permute.xlu1 %6149  ;;  %v6169_v30 = vsel %vm12569_vm7, %v6154_v55, %v6156_v32  ;;  %vm12580_vm7 = vmmov %vm12570_vm8 }
 0xaa0   : > { %v6171_v16 = vsel %vm12565_vm14, %v6150_v39, %v6152_v5  ;;  %vm12573_vm14 = vmmov %vm12555_vm2 }
 0xaa1   : > { %6183 = vmatpush1.msra.mxu0 %v6171_v16 }
 0xaa2   : > { %8056 = vmatprep.subr.bf16.mxu0 %v8055_v26  ;;  %v6160_v27 = vpop.permute.xlu0 %6159  ;;  %7800 = vmatmul.mubr.msk.f32.vlgmr.msra.gmra.mrb[4].mxu0 %vm12555_vm2, %v7799_v57  ;;  %vm12574_vm2 = vcmp.lt.s32.totalorder %v9084_v17, 39 }
 0xaa3   : > { %v6158_v41 = vpop.permute.xlu1 %6157  ;;  %8058 = vmatpush1.bf16.msra.mxu0 %v8057_v28  ;;  %6384 = vmatprep.mubr.f32.mxu0 %v12277_v19  ;;  %vm12578_vm5 = vmmov %vm12574_vm2 }
 0xaa4   : > { %v6168_v7 = vsel %vm12560_vm6, %v6156_v32, %v6158_v41  ;;  %v6167_v13 = vsel %vm12572_vm13, %v6158_v41, %v6160_v27  ;;  %vm12579_vm6 = vmmov %vm12575_vm3 }
 0xaa5   : > { %6253 = vmatprep.subr.mxu1 %v6168_v7  ;;  %vm12583_vm13 = vmmov %vm12574_vm2 }
 0xaa6   : > { %6254 = vmatpush1.msra.mxu1 %v6169_v30  ;;  %v8838_v49 = vpop.permute.xlu0 %8837  ;;  %v7804_v30 = vld [vmem:[%s11999_s2 + $0x30] sm:$0xff] }
 0xaa7   : > { %v6162_v47 = vpop.permute.xlu1 %6161  ;;  %8060 = vmatprep.subr.bf16.mxu1 %v8059_v48  ;;  %7801 = vmatmul.mubr.msk.f32.vlgmr.msra.gmra.mrb[4].mxu1 %vm12570_vm8, %v7799_v57  ;;  %v8840_v56 = vunpack.i.h.bf16 %v8838_v49  ;;  %v8839_v58 = vunpack.i.l.bf16 %v8838_v49  ;;  %vm12581_vm8 = vmmov %vm12575_vm3 }
 0xaa8   : > { %8062 = vmatpush1.bf16.msra.mxu1 %v8061_v60  ;;  %v6166_v46 = vsel %vm12571_vm9, %v6160_v27, %v6162_v47  ;;  %6455 = vmatprep.mubr.f32.mxu1 %v12277_v19  ;;  %vm12582_vm9 = vmmov %vm12575_vm3 }
 0xaa9   : > { %6324 = vmatprep.subr.mxu0 %v6166_v46  ;;  %v6491_v10 = vsel %vm12574_vm2, %v8839_v58, %v8840_v56 }
 0xaaa   : > { %6325 = vmatpush1.msra.mxu0 %v6167_v13  ;;  %v11754_v61 = vpop.permute.xlu0 %8847 }
 0xaab   : > { %v8843_v6 = vpop.permute.xlu1 %8842  ;;  %7802 = vmatmul.mubr.msk.f32.vlgmr.msra.gmra.mrb[6].mxu0 %vm12573_vm14, %v7799_v57  ;;  %v8849_v53 = vunpack.i.l.bf16 %v11754_v61  ;;  %v8850_v63 = vunpack.i.h.bf16 %v11754_v61  ;;  %vm12584_vm14 = vmmov %vm12574_vm2  ;;  %vm12585_vm2 = vcmp.lt.s32.totalorder %v9084_v17, 37 }
 0xaac   : > { %v8845_v11 = vunpack.i.h.bf16 %v8843_v6  ;;  %v8844_v23 = vunpack.i.l.bf16 %v8843_v6  ;;  %6611 = vmatprep.mubr.f32.mxu0 %v12277_v19 }
 0xaad   : > { %v6492_v31 = vsel %vm12578_vm5, %v8849_v53, %v8839_v58  ;;  %v6490_v51 = vsel %vm12584_vm14, %v8840_v56, %v8850_v63 }
 0xaae   : > { %v6164_v35 = vpop.permute.xlu0 %6163  ;;  %v6515_v37 = vsel %vm12575_vm3, %v8844_v23, %v8845_v11  ;;  %vm12586_vm3 = vmmov %vm12578_vm5 }
 0xaaf   : > { %v8853_v14 = vpop.permute.xlu1 %8852  ;;  %v6165_v15 = vsel %vm12576_vm4, %v6162_v47, %v6164_v35  ;;  %v6172_v2 = vsel %vm12577_vm12, %v6164_v35, %v6150_v39  ;;  %v8063_v22 = vpack.c.bf16 %v6515_v37, %v6491_v10  ;;  %vm12587_vm4 = vmmov %vm12579_vm6 }
 0xab0   : > { %v8854_v4 = vunpack.i.l.bf16 %v8853_v14  ;;  %6395 = vmatprep.subr.mxu1 %v6172_v2  ;;  %v8855_v24 = vunpack.i.h.bf16 %v8853_v14  ;;  %vm12588_vm12 = vmmov %vm12586_vm3 }
 0xab1   : > { %8064 = vmatprep.subr.bf16.mxu0 %v8063_v22  ;;  %6396 = vmatpush1.msra.mxu1 %v6165_v15  ;;  %vm12589_vm5 = vmmov %vm12587_vm4 }
 0xab2   : > { %v6516_v20 = vsel %vm12579_vm6, %v8854_v4, %v8844_v23  ;;  %v8863_v42 = vpop.permute.xlu0 %8862  ;;  %7803 = vmatmul.mubr.msk.f32.vlgmr.msra.gmra.mrb[6].mxu1 %vm12580_vm7, %v7799_v57  ;;  %v6514_v62 = vsel %vm12581_vm8, %v8845_v11, %v8855_v24  ;;  %vm12590_vm6 = vmmov %vm12585_vm2 }
 0xab3   : > { %v8065_v43 = vpack.c.bf16 %v6516_v20, %v6492_v31  ;;  %v8858_v21 = vpop.permute.xlu1 %8857  ;;  %v8864_v38 = vunpack.i.l.bf16 %v8863_v42  ;;  %6682 = vmatprep.mubr.f32.mxu1 %v12277_v19  ;;  %v8069_v44 = vpack.c.bf16 %v6514_v62, %v6490_v51  ;;  %v8865_v39 = vunpack.i.h.bf16 %v8863_v42  ;;  %vm12591_vm8 = vmmov %vm12586_vm3 }
 0xab4   : > { %v8859_v18 = vunpack.i.l.bf16 %v8858_v21  ;;  %v8860_v32 = vunpack.i.h.bf16 %v8858_v21  ;;  %vm12594_vm14 = vmmov %vm12587_vm4 }
 0xab5   : > { %8066 = vmatpush1.bf16.msra.mxu0 %v8065_v43  ;;  %v6513_v55 = vsel %vm12582_vm9, %v8855_v24, %v8864_v38  ;;  %v6512_v36 = vsel %vm12589_vm5, %v8864_v38, %v8865_v39  ;;  %vm12592_vm9 = vmmov %vm12587_vm4 }
 0xab6   : > { %v8873_v5 = vpop.permute.xlu0 %8872  ;;  %v6489_v33 = vsel %vm12583_vm13, %v8850_v63, %v8859_v18  ;;  %v6488_v50 = vsel %vm12588_vm12, %v8859_v18, %v8860_v32  ;;  %vm12593_vm13 = vmmov %vm12586_vm3 }
 0xab7   : > { %v8868_v45 = vpop.permute.xlu1 %8867  ;;  %v8067_v1 = vpack.c.bf16 %v6513_v55, %v6489_v33  ;;  %v8874_v9 = vunpack.i.l.bf16 %v8873_v5  ;;  %v8875_v40 = vunpack.i.h.bf16 %v8873_v5  ;;  %v8073_v49 = vpack.c.bf16 %v6512_v36, %v6488_v50  ;;  %vm12597_vm12 = vmmov %vm12585_vm2 }
 0xab8   : > { %v8869_v29 = vunpack.i.l.bf16 %v8868_v45  ;;  %v8870_v34 = vunpack.i.h.bf16 %v8868_v45  ;;  %vm12598_vm5 = vmmov %vm12585_vm2 }
 0xab9   : > { %8068 = vmatprep.subr.bf16.mxu1 %v8067_v1  ;;  %v6511_v27 = vsel %vm12587_vm4, %v8865_v39, %v8874_v9  ;;  %v6517_v13 = vsel %vm12592_vm9, %v8875_v40, %v8854_v4  ;;  %v6510_v58 = vsel %vm12594_vm14, %v8874_v9, %v8875_v40  ;;  %vm12596_vm4 = vmmov %vm12580_vm7 }
 0xaba   : > { %8070 = vmatpush1.bf16.msra.mxu1 %v8069_v44  ;;  %v6523_v57 = vpop.permute.xlu0 %6522  ;;  %v6487_v28 = vsel %vm12586_vm3, %v8860_v32, %v8869_v29  ;;  %v6493_v46 = vsel %vm12591_vm8, %v8870_v34, %v8849_v53  ;;  %v6486_v56 = vsel %vm12593_vm13, %v8869_v29, %v8870_v34  ;;  %vm12595_vm3 = vmmov %vm12585_vm2  ;;  %vm12601_vm8 = vcmp.lt.s32.totalorder %v9084_v17, 28 }
 0xabb   : > { %v6521_v16 = vpop.permute.xlu1 %6520  ;;  %v8071_v60 = vpack.c.bf16 %v6511_v27, %v6487_v28  ;;  %v8075_v23 = vpack.c.bf16 %v6517_v13, %v6493_v46  ;;  %v8077_v53 = vpack.c.bf16 %v6510_v58, %v6486_v56  ;;  %vm12602_vm9 = vmmov %vm12585_vm2 }
 0xabc   : > { %v6539_v26 = vsel %vm12585_vm2, %v6521_v16, %v6523_v57  ;;  %vm12603_vm13 = vmmov %vm12585_vm2 }
 0xabd   : > { %6551 = vmatprep.subr.mxu0 %v6539_v26 }
 0xabe   : > { %v6525_v41 = vpop.permute.xlu0 %6524 }
 0xabf   : > { %v6519_v7 = vpop.permute.xlu1 %6518  ;;  %v6538_v11 = vsel %vm12595_vm3, %v6523_v57, %v6525_v41  ;;  %vm12606_vm3 = vmmov %vm12596_vm4 }
 0xac0   : > { %v6540_v48 = vsel %vm12590_vm6, %v6519_v7, %v6521_v16  ;;  %vm12599_vm6 = vmmov %vm12596_vm4 }
 0xac1   : > { %6552 = vmatpush1.msra.mxu0 %v6540_v48 }
 0xac2   : > { %8072 = vmatprep.subr.bf16.mxu0 %v8071_v60  ;;  %v6529_v47 = vpop.permute.xlu0 %6528  ;;  %7805 = vmatmul.mubr.msk.f32.vlgmr.msra.gmra.mrb[4].mxu0 %vm12580_vm7, %v7804_v30  ;;  %vm12600_vm7 = vcmp.lt.s32.totalorder %v9084_v17, 29 }
 0xac3   : > { %v6527_v61 = vpop.permute.xlu1 %6526  ;;  %8074 = vmatpush1.bf16.msra.mxu0 %v8073_v49  ;;  %6753 = vmatprep.mubr.f32.mxu0 %v12277_v19  ;;  %vm12604_vm14 = vmmov %vm12600_vm7 }
 0xac4   : > { %v6537_v6 = vsel %vm12585_vm2, %v6525_v41, %v6527_v61  ;;  %v6536_v14 = vsel %vm12598_vm5, %v6527_v61, %v6529_v47  ;;  %vm12605_vm2 = vmmov %vm12601_vm8 }
 0xac5   : > { %6622 = vmatprep.subr.mxu1 %v6537_v6  ;;  %vm12609_vm5 = vmmov %vm12600_vm7 }
 0xac6   : > { %6623 = vmatpush1.msra.mxu1 %v6538_v11  ;;  %v8878_v35 = vpop.permute.xlu0 %8877  ;;  %v7809_v11 = vld [vmem:[%s11999_s2 + $0x38] sm:$0xff] }
 0xac7   : > { %v6531_v10 = vpop.permute.xlu1 %6530  ;;  %8076 = vmatprep.subr.bf16.mxu1 %v8075_v23  ;;  %7806 = vmatmul.mubr.msk.f32.vlgmr.msra.gmra.mrb[4].mxu1 %vm12596_vm4, %v7804_v30  ;;  %v8880_v15 = vunpack.i.h.bf16 %v8878_v35  ;;  %v8879_v2 = vunpack.i.l.bf16 %v8878_v35  ;;  %vm12607_vm4 = vmmov %vm12605_vm2 }
 0xac8   : > { %8078 = vmatpush1.bf16.msra.mxu1 %v8077_v53  ;;  %v6535_v37 = vsel %vm12597_vm12, %v6529_v47, %v6531_v10  ;;  %6824 = vmatprep.mubr.f32.mxu1 %v12277_v19  ;;  %vm12608_vm12 = vmmov %vm12605_vm2 }
 0xac9   : > { %6693 = vmatprep.subr.mxu0 %v6535_v37  ;;  %v6860_v63 = vsel %vm12600_vm7, %v8879_v2, %v8880_v15  ;;  %vm12611_vm7 = vcmp.lt.s32.totalorder %v9084_v17, 27 }
 0xaca   : > { %6694 = vmatpush1.msra.mxu0 %v6536_v14  ;;  %v11817_v22 = vpop.permute.xlu0 %8887 }
 0xacb   : > { %v8883_v4 = vpop.permute.xlu1 %8882  ;;  %7807 = vmatmul.mubr.msk.f32.vlgmr.msra.gmra.mrb[6].mxu0 %vm12599_vm6, %v7804_v30  ;;  %v8889_v20 = vunpack.i.l.bf16 %v11817_v22  ;;  %v8890_v1 = vunpack.i.h.bf16 %v11817_v22  ;;  %vm12610_vm6 = vmmov %vm12609_vm5 }
 0xacc   : > { %v8885_v24 = vunpack.i.h.bf16 %v8883_v4  ;;  %v8884_v31 = vunpack.i.l.bf16 %v8883_v4  ;;  %6980 = vmatprep.mubr.f32.mxu0 %v12277_v19 }
 0xacd   : > { %v6861_v33 = vsel %vm12604_vm14, %v8889_v20, %v8879_v2  ;;  %v6859_v28 = vsel %vm12610_vm6, %v8880_v15, %v8890_v1  ;;  %vm12615_vm14 = vmmov %vm12605_vm2 }
 0xace   : > { %v6533_v42 = vpop.permute.xlu0 %6532  ;;  %v6884_v43 = vsel %vm12601_vm8, %v8884_v31, %v8885_v24  ;;  %vm12612_vm8 = vmmov %vm12609_vm5 }
 0xacf   : > { %v8893_v21 = vpop.permute.xlu1 %8892  ;;  %v6534_v38 = vsel %vm12602_vm9, %v6531_v10, %v6533_v42  ;;  %v6541_v18 = vsel %vm12603_vm13, %v6533_v42, %v6519_v7  ;;  %v8079_v62 = vpack.c.bf16 %v6884_v43, %v6860_v63  ;;  %vm12613_vm9 = vmmov %vm12605_vm2 }
 0xad0   : > { %v8894_v55 = vunpack.i.l.bf16 %v8893_v21  ;;  %6764 = vmatprep.subr.mxu1 %v6541_v18  ;;  %v8895_v5 = vunpack.i.h.bf16 %v8893_v21  ;;  %vm12614_vm13 = vmmov %vm12609_vm5 }
 0xad1   : > { %8080 = vmatprep.subr.bf16.mxu0 %v8079_v62  ;;  %6765 = vmatpush1.msra.mxu1 %v6534_v38  ;;  %vm12620_vm6 = vmmov %vm12613_vm9 }
 0xad2   : > { %v6885_v51 = vsel %vm12605_vm2, %v8894_v55, %v8884_v31  ;;  %v8903_v45 = vpop.permute.xlu0 %8902  ;;  %7808 = vmatmul.mubr.msk.f32.vlgmr.msra.gmra.mrb[6].mxu1 %vm12606_vm3, %v7804_v30  ;;  %v6883_v39 = vsel %vm12607_vm4, %v8885_v24, %v8895_v5  ;;  %vm12616_vm2 = vmmov %vm12611_vm7 }
 0xad3   : > { %v8081_v44 = vpack.c.bf16 %v6885_v51, %v6861_v33  ;;  %v8898_v29 = vpop.permute.xlu1 %8897  ;;  %v8904_v9 = vunpack.i.l.bf16 %v8903_v45  ;;  %7051 = vmatprep.mubr.f32.mxu1 %v12277_v19  ;;  %v8085_v36 = vpack.c.bf16 %v6883_v39, %v6859_v28  ;;  %v8905_v7 = vunpack.i.h.bf16 %v8903_v45  ;;  %vm12617_vm4 = vmmov %vm12609_vm5 }
 0xad4   : > { %v8899_v32 = vunpack.i.l.bf16 %v8898_v29  ;;  %v8900_v41 = vunpack.i.h.bf16 %v8898_v29 }
 0xad5   : > { %8082 = vmatpush1.bf16.msra.mxu0 %v8081_v44  ;;  %v6882_v57 = vsel %vm12608_vm12, %v8895_v5, %v8904_v9  ;;  %v6881_v13 = vsel %vm12615_vm14, %v8904_v9, %v8905_v7  ;;  %vm12618_vm12 = vmmov %vm12613_vm9 }
 0xad6   : > { %v8913_v16 = vpop.permute.xlu0 %8912  ;;  %v6858_v26 = vsel %vm12609_vm5, %v8890_v1, %v8899_v32  ;;  %v6857_v46 = vsel %vm12614_vm13, %v8899_v32, %v8900_v41  ;;  %vm12619_vm5 = vmmov %vm12617_vm4 }
 0xad7   : > { %v8908_v27 = vpop.permute.xlu1 %8907  ;;  %v8083_v50 = vpack.c.bf16 %v6882_v57, %v6858_v26  ;;  %v8914_v40 = vunpack.i.l.bf16 %v8913_v16  ;;  %v8915_v58 = vunpack.i.h.bf16 %v8913_v16  ;;  %v8089_v35 = vpack.c.bf16 %v6881_v13, %v6857_v46  ;;  %vm12624_vm13 = vmmov %vm12616_vm2 }
 0xad8   : > { %v8909_v34 = vunpack.i.l.bf16 %v8908_v27  ;;  %v8910_v56 = vunpack.i.h.bf16 %v8908_v27  ;;  %vm12625_vm14 = vmmov %vm12616_vm2 }
 0xad9   : > { %8084 = vmatprep.subr.bf16.mxu1 %v8083_v50  ;;  %v6880_v47 = vsel %vm12613_vm9, %v8905_v7, %v8914_v40  ;;  %v6886_v14 = vsel %vm12618_vm12, %v8915_v58, %v8894_v55  ;;  %v6879_v2 = vsel %vm12620_vm6, %v8914_v40, %v8915_v58  ;;  %vm12623_vm9 = vmmov %vm12606_vm3 }
 0xada   : > { %8086 = vmatpush1.bf16.msra.mxu1 %v8085_v36  ;;  %v6892_v30 = vpop.permute.xlu0 %6891  ;;  %v6856_v49 = vsel %vm12612_vm8, %v8900_v41, %v8909_v34  ;;  %v6862_v37 = vsel %vm12617_vm4, %v8910_v56, %v8889_v20  ;;  %v6855_v15 = vsel %vm12619_vm5, %v8909_v34, %v8910_v56  ;;  %vm12622_vm8 = vmmov %vm12616_vm2  ;;  %vm12628_vm4 = vcmp.lt.s32.totalorder %v9084_v17, 18 }
 0xadb   : > { %v6890_v48 = vpop.permute.xlu1 %6889  ;;  %v8087_v53 = vpack.c.bf16 %v6880_v47, %v6856_v49  ;;  %v8091_v31 = vpack.c.bf16 %v6886_v14, %v6862_v37  ;;  %v8093_v20 = vpack.c.bf16 %v6879_v2, %v6855_v15 }
 0xadc   : > { %v6908_v60 = vsel %vm12611_vm7, %v6890_v48, %v6892_v30  ;;  %vm12621_vm7 = vmmov %vm12616_vm2 }
 0xadd   : > { %6920 = vmatprep.subr.mxu0 %v6908_v60  ;;  %vm12629_vm12 = vmmov %vm12621_vm7 }
 0xade   : > { %v6894_v61 = vpop.permute.xlu0 %6893  ;;  %vm12630_vm5 = vmmov %vm12621_vm7 }
 0xadf   : > { %v6888_v6 = vpop.permute.xlu1 %6887  ;;  %v6907_v24 = vsel %vm12622_vm8, %v6892_v30, %v6894_v61 }
 0xae0   : > { %v6909_v23 = vsel %vm12616_vm2, %v6888_v6, %v6890_v48  ;;  %vm12626_vm2 = vmmov %vm12606_vm3 }
 0xae1   : > { %6921 = vmatpush1.msra.mxu0 %v6909_v23  ;;  %vm12633_vm8 = vmmov %vm12626_vm2 }
 0xae2   : > { %8088 = vmatprep.subr.bf16.mxu0 %v8087_v53  ;;  %v6898_v10 = vpop.permute.xlu0 %6897  ;;  %7810 = vmatmul.mubr.msk.f32.vlgmr.msra.gmra.mrb[4].mxu0 %vm12606_vm3, %v7809_v11  ;;  %vm12627_vm3 = vcmp.lt.s32.totalorder %v9084_v17, 19 }
 0xae3   : > { %v6896_v22 = vpop.permute.xlu1 %6895  ;;  %8090 = vmatpush1.bf16.msra.mxu0 %v8089_v35  ;;  %7122 = vmatprep.mubr.f32.mxu0 %v12277_v19  ;;  %vm12631_vm6 = vmmov %vm12627_vm3 }
 0xae4   : > { %v6906_v4 = vsel %vm12621_vm7, %v6894_v61, %v6896_v22  ;;  %v6905_v21 = vsel %vm12625_vm14, %v6896_v22, %v6898_v10  ;;  %vm12632_vm7 = vmmov %vm12628_vm4 }
 0xae5   : > { %6991 = vmatprep.subr.mxu1 %v6906_v4  ;;  %vm12636_vm14 = vmmov %vm12627_vm3  ;;  %v7814_v4 = vld [vmem:[%s11999_s2 + $0x40] sm:$0xff] }
 0xae6   : > { %6992 = vmatpush1.msra.mxu1 %v6907_v24  ;;  %v8918_v42 = vpop.permute.xlu0 %8917 }
 0xae7   : > { %v6900_v63 = vpop.permute.xlu1 %6899  ;;  %8092 = vmatprep.subr.bf16.mxu1 %v8091_v31  ;;  %7811 = vmatmul.mubr.msk.f32.vlgmr.msra.gmra.mrb[4].mxu1 %vm12623_vm9, %v7809_v11  ;;  %v8920_v38 = vunpack.i.h.bf16 %v8918_v42  ;;  %v8919_v18 = vunpack.i.l.bf16 %v8918_v42  ;;  %vm12634_vm9 = vmmov %vm12628_vm4 }
 0xae8   : > { %8094 = vmatpush1.bf16.msra.mxu1 %v8093_v20  ;;  %v6904_v43 = vsel %vm12624_vm13, %v6898_v10, %v6900_v63  ;;  %7193 = vmatprep.mubr.f32.mxu1 %v12277_v19  ;;  %vm12635_vm13 = vmmov %vm12628_vm4 }
 0xae9   : > { %7062 = vmatprep.subr.mxu0 %v6904_v43  ;;  %v7229_v1 = vsel %vm12627_vm3, %v8919_v18, %v8920_v38 }
 0xaea   : > { %7063 = vmatpush1.msra.mxu0 %v6905_v21  ;;  %v11880_v62 = vpop.permute.xlu0 %8927 }
 0xaeb   : > { %v8923_v55 = vpop.permute.xlu1 %8922  ;;  %7812 = vmatmul.mubr.msk.f32.vlgmr.msra.gmra.mrb[6].mxu0 %vm12626_vm2, %v7809_v11  ;;  %v8929_v51 = vunpack.i.l.bf16 %v11880_v62  ;;  %v8930_v50 = vunpack.i.h.bf16 %v11880_v62  ;;  %vm12637_vm2 = vmmov %vm12627_vm3  ;;  %vm12638_vm3 = vcmp.lt.s32.totalorder %v9084_v17, 17 }
 0xaec   : > { %v8925_v5 = vunpack.i.h.bf16 %v8923_v55  ;;  %v8924_v33 = vunpack.i.l.bf16 %v8923_v55  ;;  %7349 = vmatprep.mubr.f32.mxu0 %v12277_v19 }
 0xaed   : > { %v7230_v26 = vsel %vm12631_vm6, %v8929_v51, %v8919_v18  ;;  %v7228_v49 = vsel %vm12637_vm2, %v8920_v38, %v8930_v50  ;;  %vm12641_vm6 = vmmov %vm12628_vm4 }
 0xaee   : > { %v6902_v45 = vpop.permute.xlu0 %6901  ;;  %v7253_v44 = vsel %vm12628_vm4, %v8924_v33, %v8925_v5 }
 0xaef   : > { %v8933_v29 = vpop.permute.xlu1 %8932  ;;  %v6903_v9 = vsel %vm12629_vm12, %v6900_v63, %v6902_v45  ;;  %v6910_v32 = vsel %vm12630_vm5, %v6902_v45, %v6888_v6  ;;  %v8095_v39 = vpack.c.bf16 %v7253_v44, %v7229_v1  ;;  %vm12639_vm12 = vmmov %vm12637_vm2 }
 0xaf0   : > { %v8934_v57 = vunpack.i.l.bf16 %v8933_v29  ;;  %7133 = vmatprep.subr.mxu1 %v6910_v32  ;;  %v8935_v16 = vunpack.i.h.bf16 %v8933_v29  ;;  %vm12640_vm5 = vmmov %vm12637_vm2 }
 0xaf1   : > { %8096 = vmatprep.subr.bf16.mxu0 %v8095_v39  ;;  %7134 = vmatpush1.msra.mxu1 %v6903_v9 }
 0xaf2   : > { %v7254_v28 = vsel %vm12632_vm7, %v8934_v57, %v8924_v33  ;;  %v8943_v27 = vpop.permute.xlu0 %8942  ;;  %7813 = vmatmul.mubr.msk.f32.vlgmr.msra.gmra.mrb[6].mxu1 %vm12633_vm8, %v7809_v11  ;;  %v7252_v7 = vsel %vm12634_vm9, %v8925_v5, %v8935_v16  ;;  %vm12642_vm7 = vmmov %vm12638_vm3 }
 0xaf3   : > { %v8097_v36 = vpack.c.bf16 %v7254_v28, %v7230_v26  ;;  %v8938_v34 = vpop.permute.xlu1 %8937  ;;  %v8944_v40 = vunpack.i.l.bf16 %v8943_v27  ;;  %7420 = vmatprep.mubr.f32.mxu1 %v12277_v19  ;;  %v8101_v13 = vpack.c.bf16 %v7252_v7, %v7228_v49  ;;  %v8945_v58 = vunpack.i.h.bf16 %v8943_v27  ;;  %vm12643_vm9 = vmmov %vm12637_vm2 }
 0xaf4   : > { %v8939_v41 = vunpack.i.l.bf16 %v8938_v34  ;;  %v8940_v61 = vunpack.i.h.bf16 %v8938_v34 }
 0xaf5   : > { %8098 = vmatpush1.bf16.msra.mxu0 %v8097_v36  ;;  %v7251_v30 = vsel %vm12635_vm13, %v8935_v16, %v8944_v40  ;;  %v7250_v53 = vsel %vm12628_vm4, %v8944_v40, %v8945_v58  ;;  %vm12644_vm13 = vmmov %vm12637_vm2 }
 0xaf6   : > { %v7261_v48 = vpop.permute.xlu0 %7260  ;;  %v7227_v60 = vsel %vm12636_vm14, %v8930_v50, %v8939_v41  ;;  %v7226_v35 = vsel %vm12639_vm12, %v8939_v41, %v8940_v61  ;;  %vm12645_vm14 = vmmov %vm12628_vm4 }
 0xaf7   : > { %v7259_v47 = vpop.permute.xlu1 %7258  ;;  %v8099_v46 = vpack.c.bf16 %v7251_v30, %v7227_v60  ;;  %v8105_v31 = vpack.c.bf16 %v7250_v53, %v7226_v35  ;;  %vm12646_vm2 = vmmov %vm12628_vm4 }
 0xaf8   : > { %v7277_v56 = vsel %vm12638_vm3, %v7259_v47, %v7261_v48  ;;  %vm12647_vm4 = vmmov %vm12638_vm3 }
 0xaf9   : > { %7289 = vmatprep.subr.mxu0 %v7277_v56  ;;  %8100 = vmatprep.subr.bf16.mxu1 %v8099_v46  ;;  %vm12648_vm12 = vmmov %vm12633_vm8 }
 0xafa   : > { %8102 = vmatpush1.bf16.msra.mxu1 %v8101_v13  ;;  %v7245_v6 = vpop.permute.xlu0 %7244 }
 0xafb   : > { %v8948_v11 = vpop.permute.xlu1 %8947  ;;  %v7249_v14 = vsel %vm12641_vm6, %v8945_v58, %v7245_v6  ;;  %vm12650_vm6 = vmmov %vm12638_vm3 }
 0xafc   : > { %v8949_v23 = vunpack.i.l.bf16 %v8948_v11  ;;  %v8950_v10 = vunpack.i.h.bf16 %v8948_v11 }
 0xafe   : > { %v7225_v37 = vsel %vm12640_vm5, %v8940_v61, %v8949_v23  ;;  %v7263_v15 = vpop.permute.xlu0 %7262  ;;  %v7224_v20 = vsel %vm12643_vm9, %v8949_v23, %v8950_v10  ;;  %v7231_v43 = vsel %vm12644_vm13, %v8950_v10, %v8929_v51  ;;  %vm12649_vm5 = vmmov %vm12638_vm3 }
 0xaff   : > { %v8103_v2 = vpack.c.bf16 %v7249_v14, %v7225_v37  ;;  %v7257_v22 = vpop.permute.xlu1 %7256  ;;  %v7276_v5 = vsel %vm12647_vm4, %v7261_v48, %v7263_v15  ;;  %vm12653_vm9 = vmmov %vm12638_vm3 }
 0xb00   : > { %v7278_v24 = vsel %vm12642_vm7, %v7257_v22, %v7259_v47  ;;  %vm12651_vm7 = vmmov %vm12633_vm8 }
 0xb01   : > { %7290 = vmatpush1.msra.mxu0 %v7278_v24  ;;  %vm12654_vm13 = vmmov %vm12651_vm7 }
 0xb02   : > { %7815 = vmatmul.mubr.msk.f32.vlgmr.msra.gmra.mrb[4].mxu0 %vm12633_vm8, %v7814_v4  ;;  %8104 = vmatprep.subr.bf16.mxu0 %v8103_v2  ;;  %v7247_v42 = vpop.permute.xlu0 %7246  ;;  %vm12652_vm8 = vmmov %vm12638_vm3 }
 0xb03   : > { %v7265_v63 = vpop.permute.xlu1 %7264  ;;  %v7248_v21 = vsel %vm12645_vm14, %v7245_v6, %v7247_v42  ;;  %v7255_v38 = vsel %vm12646_vm2, %v7247_v42, %v8934_v57  ;;  %8106 = vmatpush1.bf16.msra.mxu0 %v8105_v31  ;;  %7491 = vmatprep.mubr.f32.mxu0 %v12277_v19  ;;  %vm12655_vm14 = vnez %v12295_v0  ;;  %vm12656_vm2 = vnez %v12297_v3 }
 0xb04   : > { %v8107_v18 = vpack.c.bf16 %v7255_v38, %v7231_v43  ;;  %v8109_v62 = vpack.c.bf16 %v7248_v21, %v7224_v20  ;;  %v7275_v55 = vsel %vm12638_vm3, %v7263_v15, %v7265_v63  ;;  %vm12657_vm3 = vnez %v12299_v25 }
 0xb05   : > { %7360 = vmatprep.subr.mxu1 %v7275_v55 }
 0xb06   : > { %7361 = vmatpush1.msra.mxu1 %v7276_v5  ;;  %v7269_v33 = vpop.permute.xlu0 %7268 }
 0xb07   : > { %v7267_v51 = vpop.permute.xlu1 %7266  ;;  %7816 = vmatmul.mubr.msk.f32.vlgmr.msra.gmra.mrb[4].mxu1 %vm12648_vm12, %v7814_v4  ;;  %8108 = vmatprep.subr.bf16.mxu1 %v8107_v18 }
 0xb08   : > { %v7274_v45 = vsel %vm12649_vm5, %v7265_v63, %v7267_v51  ;;  %8110 = vmatpush1.bf16.msra.mxu1 %v8109_v62  ;;  %v7273_v1 = vsel %vm12650_vm6, %v7267_v51, %v7269_v33  ;;  %7562 = vmatprep.mubr.f32.mxu1 %v12277_v19 }
 0xb09   : > { %7431 = vmatprep.subr.mxu0 %v7273_v1 }
 0xb0a   : > { %7432 = vmatpush1.msra.mxu0 %v7274_v45 }
 0xb0b   : > { %v7271_v44 = vpop.permute.xlu1 %7270  ;;  %7817 = vmatmul.mubr.msk.f32.vlgmr.msra.gmra.mrb[6].mxu0 %vm12651_vm7, %v7814_v4 }
 0xb0c   : > { %v7272_v29 = vsel %vm12652_vm8, %v7269_v33, %v7271_v44  ;;  %v7279_v9 = vsel %vm12653_vm9, %v7271_v44, %v7257_v22 }
 0xb0d   : > { %7502 = vmatprep.subr.mxu1 %v7279_v9 }
 0xb0e   : > { %7503 = vmatpush1.msra.mxu1 %v7272_v29 }
 0xb0f   : > { %7818 = vmatmul.mubr.msk.f32.vlgmr.msra.gmra.mrb[6].mxu1 %vm12654_vm13, %v7814_v4 }
 0xbd5   : > { %v7351_v32 = vpop.f32.mrb[4].mxu0 }
 0xbd6   : > { %v7577_v39 = vsel %vm10688_vm10, %v7351_v32, 0.0  ;;  %v7353_v19 = vpop.f32.mrb[5].mxu0 }
 0xbd7   : > { %v7578_v57 = vsel %vm10692_vm0, %v7353_v19, 0.0 }
 0xbd8   : > { %v7585_v16 = vadd.f32 %v7578_v57, %v7577_v39 }
 0xbda   : > { %v7422_v26 = vpop.f32.mrb[4].mxu1 }
 0xbdb   : > { %v7579_v28 = vsel %vm10702_vm1, %v7422_v26, 0.0  ;;  %v7424_v27 = vpop.f32.mrb[5].mxu1 }
 0xbdc   : > { %v7586_v17 = vadd.f32 %v7585_v16, %v7579_v28  ;;  %v7580_v50 = vsel %vm10707_vm11, %v7424_v27, 0.0  ;;  %v8955_v16 = vld [vmem:[%s9046_s20] sm:$0xff]  ;;  %v8956_v28 = vld [vmem:[%s9046_s20 + $0x8] sm:$0xff] }
 0xbde   : > { %v7587_v36 = vadd.f32 %v7586_v17, %v7580_v50  ;;  %v7493_v34 = vpop.f32.mrb[6].mxu0  ;;  %v8957_v17 = vld [vmem:[%s9046_s20 + $0x10] sm:$0xff] }
 0xbdf   : > { %v7581_v40 = vsel %vm10716_vm15, %v7493_v34, 0.0  ;;  %v7495_v41 = vpop.f32.mrb[7].mxu0 }
 0xbe0   : > { %v7588_v7 = vadd.f32 %v7587_v36, %v7581_v40  ;;  %v7582_v30 = vsel %vm12655_vm14, %v7495_v41, 0.0  ;;  %v8958_v36 = vld [vmem:[%s9046_s20 + $0x18] sm:$0xff]  ;;  %v8959_v40 = vld [vmem:[%s9046_s20 + $0x20] sm:$0xff] }
 0xbe2   : > { %v7589_v48 = vadd.f32 %v7588_v7, %v7582_v30  ;;  %v7564_v60 = vpop.f32.mrb[6].mxu1  ;;  %v8960_v7 = vld [vmem:[%s9046_s20 + $0x28] sm:$0xff] }
 0xbe3   : > { %v7583_v49 = vsel %vm12656_vm2, %v7564_v60, 0.0  ;;  %v7566_v47 = vpop.f32.mrb[7].mxu1 }
 0xbe4   : > { %v7590_v46 = vadd.f32 %v7589_v48, %v7583_v49  ;;  %v7584_v13 = vsel %vm12657_vm3, %v7566_v47, 0.0  ;;  %v8961_v48 = vld [vmem:[%s9046_s20 + $0x30] sm:$0xff]  ;;  %v8962_v49 = vld [vmem:[%s9046_s20 + $0x38] sm:$0xff] }
 0xbe6   : > { %v7591_v56 = vadd.f32 %v7590_v46, %v7584_v13 }
 0xbe8   : > { %7592 = vadd.xlane.f32.xlu0 %v7591_v56 }
 0xc75   : > { %v7593_v58 = vpop.xlane.xlu0 %7592 }
 0xc76   : > { %v7594_v61 = vmul.f32 0.001953125, %v7593_v58 }
 0xc78   : > { %v7595_v6 = vsub.f32 %v7351_v32, %v7594_v61  ;;  %v7596_v11 = vsub.f32 %v7353_v19, %v7594_v61  ;;  %v7597_v23 = vsub.f32 %v7422_v26, %v7594_v61  ;;  %v7598_v53 = vsub.f32 %v7424_v27, %v7594_v61 }
 0xc79   : > { %v7599_v37 = vsub.f32 %v7493_v34, %v7594_v61  ;;  %v7600_v22 = vsub.f32 %v7495_v41, %v7594_v61  ;;  %v7601_v20 = vsub.f32 %v7564_v60, %v7594_v61  ;;  %v7602_v54 = vsub.f32 %v7566_v47, %v7594_v61 }
 0xc7a   : > { %v7603_v35 = vsel %vm10688_vm10, %v7595_v6, 0.0  ;;  %v7604_v10 = vsel %vm10692_vm0, %v7596_v11, 0.0  ;;  %v7605_v14 = vsel %vm10702_vm1, %v7597_v23, 0.0  ;;  %v7606_v4 = vsel %vm10707_vm11, %v7598_v53, 0.0 }
 0xc7b   : > { %v7611_v15 = vmul.f32 %v7603_v35, %v7603_v35  ;;  %v7612_v2 = vmul.f32 %v7604_v10, %v7604_v10  ;;  %v7613_v24 = vmul.f32 %v7605_v14, %v7605_v14  ;;  %v7607_v8 = vsel %vm10716_vm15, %v7599_v37, 0.0 }
 0xc7c   : > { %v7614_v42 = vmul.f32 %v7606_v4, %v7606_v4  ;;  %v7608_v43 = vsel %vm12655_vm14, %v7600_v22, 0.0  ;;  %v7615_v12 = vmul.f32 %v7607_v8, %v7607_v8  ;;  %v7609_v38 = vsel %vm12656_vm2, %v7601_v20, 0.0 }
 0xc7d   : > { %v7619_v31 = vadd.f32 %v7612_v2, %v7611_v15  ;;  %v7616_v18 = vmul.f32 %v7608_v43, %v7608_v43  ;;  %v7610_v62 = vsel %vm12657_vm3, %v7602_v54, 0.0  ;;  %v7617_v55 = vmul.f32 %v7609_v38, %v7609_v38 }
 0xc7e   : > { %v7618_v5 = vmul.f32 %v7610_v62, %v7610_v62 }
 0xc7f   : > { %v7620_v63 = vadd.f32 %v7619_v31, %v7613_v24 }
 0xc81   : > { %v7621_v21 = vadd.f32 %v7620_v63, %v7614_v42 }
 0xc83   : > { %v7622_v59 = vadd.f32 %v7621_v21, %v7615_v12 }
 0xc85   : > { %v7623_v52 = vadd.f32 %v7622_v59, %v7616_v18 }
 0xc87   : > { %v7624_v33 = vadd.f32 %v7623_v52, %v7617_v55 }
 0xc89   : > { %v7625_v51 = vadd.f32 %v7624_v33, %v7618_v5 }
 0xc8b   : > { %7626 = vadd.xlane.f32.xlu1 %v7625_v51 }
 0xd18   : > { %v7627_v0 = vpop.xlane.xlu1 %7626 }
 0xd19   : > { %v7628_v45 = vmul.f32 0.001953125, %v7627_v0 }
 0xd1b   : > { %v7629_v1 = vadd.f32 1e-05, %v7628_v45 }
 0xd1d   : > { %8953 = vrsqrt.f32 %v7629_v1 }
 0xd27   : > { %v8954_v3 = vpop.eup %8953 }
 0xd28   : > { %v7631_v44 = vmul.f32 %v8954_v3, %v7595_v6  ;;  %v7632_v29 = vmul.f32 %v8954_v3, %v7596_v11  ;;  %v7633_v25 = vmul.f32 %v8954_v3, %v7597_v23  ;;  %v7634_v9 = vmul.f32 %v8954_v3, %v7598_v53 }
 0xd29   : > { %v7635_v32 = vmul.f32 %v8954_v3, %v7599_v37  ;;  %v7636_v39 = vmul.f32 %v8954_v3, %v7600_v22  ;;  %v7637_v19 = vmul.f32 %v8954_v3, %v7601_v20  ;;  %v7638_v57 = vmul.f32 %v8954_v3, %v7602_v54 }
 0xd2a   : > { %v7639_v26 = vadd.f32 %v8955_v16, %v7631_v44  ;;  %v7640_v27 = vadd.f32 %v8956_v28, %v7632_v29  ;;  %v7641_v50 = vadd.f32 %v8957_v17, %v7633_v25  ;;  %v7642_v34 = vadd.f32 %v8958_v36, %v7634_v9 }
 0xd2b   : > { %v7643_v41 = vadd.f32 %v8959_v40, %v7635_v32  ;;  %v7644_v30 = vadd.f32 %v8960_v7, %v7636_v39  ;;  %v7645_v60 = vadd.f32 %v8961_v48, %v7637_v19  ;;  %v7646_v47 = vadd.f32 %v8962_v49, %v7638_v57 }
 0xd2c   : > { %7647 = vst [vmem:[%s197_s12] sm:$0xff] %v7639_v26  ;;  %7648 = vst [vmem:[%s197_s12 + $0x8] sm:$0xff] %v7640_v27 }
 0xd2d   : > { %7649 = vst [vmem:[%s197_s12 + $0x10] sm:$0xff] %v7641_v50  ;;  %7650 = vst [vmem:[%s197_s12 + $0x18] sm:$0xff] %v7642_v34 }
 0xd2e   : > { %7651 = vst [vmem:[%s197_s12 + $0x20] sm:$0xff] %v7643_v41  ;;  %7652 = vst [vmem:[%s197_s12 + $0x28] sm:$0xff] %v7644_v30 }
 0xd2f   : > { %7653 = vst [vmem:[%s197_s12 + $0x30] sm:$0xff] %v7645_v60  ;;  %7654 = vst [vmem:[%s197_s12 + $0x38] sm:$0xff] %v7646_v47 }
 0xd30 PF: > { %s14_s15 = sadd.s32 1, %s8969_s15  }
 0xd31   : > { %p11_p4 = scmp.ge.s32.totalorder %s14_s15, 4  }
 0xd33   :  { %13 = sbr.rel (!%p11_p4) target bundleno = 1 (0x1), region = 88 }

</bundles_post_ra>
